<compile_context>
chip_gen: v5e
topology: v5e:2x2
jax: 0.10.0
libtpu: 0.0.40
codegen_flags: <defaults>
</compile_context>

<pallas_src>
import jax
import jax.numpy as jnp
from jax import lax
from jax.experimental import pallas as pl
from jax.experimental.pallas import tpu as pltpu

# Matmul operand dtype.  float32 keeps numerics comparable to the pure-JAX
# reference below; set to jnp.bfloat16 on v6e/v7x for ~2x MXU throughput and
# half the VMEM weight residency (accumulation stays f32 via
# preferred_element_type).
MM_DTYPE = jnp.float32
_NEG_BIG = -1e30


def _round_up(x, m):
    return (x + m - 1) // m * m


# --------------------------------------------------------------------------
# Kernel
# --------------------------------------------------------------------------
def bilstm_attention_kernel(
    # inputs
    x_ref,        # (seq, Bt, E)   embedded text tile
    wih_ref,      # (E, 8*Hp)      [fwd | bwd] input->gate weights (transposed)
    bih_ref,      # (1, 8*Hp)      combined gate biases (b_ih + b_hh)
    whhf_ref,     # (Hp, 4*Hp)     fwd recurrent weights
    whhb_ref,     # (Hp, 4*Hp)     bwd recurrent weights
    wwf_ref,      # (Hp, Vp)       attention W_w, forward-half rows
    wwb_ref,      # (Hp, Vp)       attention W_w, backward-half rows
    wzf_ref,      # (Hp, Vp)       attention W_z, forward-half rows
    wzb_ref,      # (Hp, Vp)       attention W_z, backward-half rows
    batt_ref,     # (1, Vp)        attention bias (incl. w_a * alpha_s)
    vwt_ref,      # (1, Vp)        attention v weight (transposed)
    vb_ref,       # (1, 1)         attention v bias
    whidf_ref,    # (Hp, 2*Hp)     hidden_layer weight, forward-half rows
    whidb_ref,    # (Hp, 2*Hp)     hidden_layer weight, backward-half rows
    bhid_ref,     # (1, 2*Hp)
    wdec_ref,     # (2*Hp, Lp)
    bdec_ref,     # (1, Lp)        padded label columns hold -1e30
    # output
    out_ref,      # (Bt, Lp)
    # scratch
    ginf_ref,     # (seq, Bt, 4*Hp)  precomputed fwd input-gate preactivations
    ginb_ref,     # (seq, Bt, 4*Hp)  precomputed bwd input-gate preactivations
    hf_ref,       # (seq, Bt, Hp)
    hb_ref,       # (seq, Bt, Hp)
):
    seq, B, E = x_ref.shape
    Hp = whhf_ref.shape[0]
    G = 4 * Hp

    # ---- (1) hoisted input projection: one big MXU matmul for both directions
    # and all timesteps, bias folded in (no per-step bias broadcast).
    x_flat = x_ref[...].reshape(seq * B, E).astype(MM_DTYPE)
    gin = (jnp.dot(x_flat, wih_ref[...], preferred_element_type=jnp.float32)
           + bih_ref[...])                               # (seq*B, 8*Hp)
    ginf_ref[...] = gin[:, :G].reshape(seq, B, G)        # lane-aligned split
    ginb_ref[...] = gin[:, G:].reshape(seq, B, G)

    whh_f = whhf_ref[...]
    whh_b = whhb_ref[...]

    def gate_act(gates, c):
        # gate blocks are lane-aligned (Hp is a multiple of 128); torch order i,f,g,o
        i_g = jax.nn.sigmoid(gates[:, 0:Hp])
        f_g = jax.nn.sigmoid(gates[:, Hp:2 * Hp])
        g_g = jnp.tanh(gates[:, 2 * Hp:3 * Hp])
        o_g = jax.nn.sigmoid(gates[:, 3 * Hp:4 * Hp])
        c_new = f_g * c + i_g * g_g
        h_new = o_g * jnp.tanh(c_new)
        return h_new, c_new

    h0 = jnp.zeros((B, Hp), jnp.float32)
    c0 = jnp.zeros((B, Hp), jnp.float32)

    # ---- (2) fused fwd+bwd recurrence: the two chains are independent, so
    # interleaving them doubles ILP and halves loop-control overhead.
    def step(t, carry):
        hf, cf, hb, cb = carry
        rb = seq - 1 - t
        g_f = ginf_ref[t] + jnp.dot(hf.astype(MM_DTYPE), whh_f,
                                    preferred_element_type=jnp.float32)
        g_b = ginb_ref[rb] + jnp.dot(hb.astype(MM_DTYPE), whh_b,
                                     preferred_element_type=jnp.float32)
        hf, cf = gate_act(g_f, cf)
        hb, cb = gate_act(g_b, cb)
        hf_ref[t] = hf          # full-lane (Bt, Hp) unmasked stores
        hb_ref[rb] = hb
        return (hf, cf, hb, cb)

    lax.fori_loop(0, seq, step, (h0, c0, h0, c0))

    # ---- (3) dual attention, vectorized over the whole sequence.
    hf_all = hf_ref[...]                                 # (seq, B, Hp)
    hb_all = hb_ref[...]
    zf = hf_ref[seq - 1]                                 # z = h[-1], fwd half
    zb = hb_ref[seq - 1]                                 #            bwd half

    zz = (jnp.dot(zf.astype(MM_DTYPE), wzf_ref[...],
                  preferred_element_type=jnp.float32)
          + jnp.dot(zb.astype(MM_DTYPE), wzb_ref[...],
                    preferred_element_type=jnp.float32)
          + batt_ref[...])                               # (B, Vp)

    hf_flat = hf_all.reshape(seq * B, Hp).astype(MM_DTYPE)
    hb_flat = hb_all.reshape(seq * B, Hp).astype(MM_DTYPE)
    s = (jnp.dot(hf_flat, wwf_ref[...], preferred_element_type=jnp.float32)
         + jnp.dot(hb_flat, wwb_ref[...], preferred_element_type=jnp.float32)
         ).reshape(seq, B, -1) + zz[None]
    s = jnp.tanh(s)
    u = jnp.sum(s * vwt_ref[...][None], axis=-1, keepdims=True) + vb_ref[...]  # (seq,B,1)

    # softmax over the sequence axis (exact divide: tiny op, exact norm)
    m = jnp.max(u, axis=0, keepdims=True)
    e = jnp.exp(u - m)
    attn = e / jnp.sum(e, axis=0, keepdims=True)

    h_sum_f = jnp.sum(attn * hf_all, axis=0)             # (B, Hp)
    h_sum_b = jnp.sum(attn * hb_all, axis=0)

    # ---- (4) MLP head + softmax (dropout = identity in eval mode).
    # TODO(synk): training-mode dropout not implemented.
    h2 = (jnp.dot(h_sum_f.astype(MM_DTYPE), whidf_ref[...],
                  preferred_element_type=jnp.float32)
          + jnp.dot(h_sum_b.astype(MM_DTYPE), whidb_ref[...],
                    preferred_element_type=jnp.float32)
          + bhid_ref[...])                               # (B, 2*Hp)
    logits = (jnp.dot(h2.astype(MM_DTYPE), wdec_ref[...],
                      preferred_element_type=jnp.float32)
              + bdec_ref[...])                           # (B, Lp) lane-dense
    mx = jnp.max(logits, axis=1, keepdims=True)
    e2 = jnp.exp(logits - mx)
    # exact divide so output rows sum to 1 to f32 rounding (B*Lp elems: free)
    out_ref[...] = e2 / jnp.sum(e2, axis=1, keepdims=True)


# --------------------------------------------------------------------------
# Parameter repacking (zero-padding to lane-aligned shapes)
# --------------------------------------------------------------------------
def _pad_cols(a, n, value=0.0):
    return jnp.pad(a, [(0, 0)] * (a.ndim - 1) + [(0, n - a.shape[-1])],
                   constant_values=value)


def _pad_gate_cols(w, H, Hp):
    """Pad the 4H gate axis per gate block (i,f,g,o) from H to Hp columns."""
    lead = w.shape[:-1]
    w4 = w.reshape(lead + (4, H))
    w4 = jnp.pad(w4, [(0, 0)] * len(lead) + [(0, 0), (0, Hp - H)])
    return w4.reshape(lead + (4 * Hp,))


def prepare_kernel_params(p):
    """Repack logical params into lane-aligned kernel operands.

    H, V, label_size are padded up to multiples of 128 with zeros (padded
    hidden units provably stay 0 through the LSTM recurrence and contribute
    nothing to attention / head); padded decoder bias columns get -1e30 so
    their softmax probability is exactly 0.
    """
    E, fourH = p["w_ih_f"].shape
    H = fourH // 4
    V = p["w_w"].shape[1]
    L = p["w_dec"].shape[1]
    Hp = _round_up(H, 128)
    Vp = _round_up(V, 128)
    Lp = _round_up(L, 128)
    f32 = jnp.float32
    mm = lambda a: a.astype(MM_DTYPE)

    wih = jnp.concatenate([_pad_gate_cols(p["w_ih_f"], H, Hp),
                           _pad_gate_cols(p["w_ih_b"], H, Hp)], axis=1)
    bih = jnp.concatenate([_pad_gate_cols(p["b_f"], H, Hp),
                           _pad_gate_cols(p["b_b"], H, Hp)], axis=1)

    def pad_whh(w):
        w = _pad_gate_cols(w, H, Hp)                       # (H, 4Hp)
        return jnp.pad(w, [(0, Hp - H), (0, 0)])           # (Hp, 4Hp)

    def split_rows_pad(w, cols):
        wf, wb = w[:H], w[H:]
        wf = jnp.pad(wf, [(0, Hp - H), (0, cols - w.shape[1])])
        wb = jnp.pad(wb, [(0, Hp - H), (0, cols - w.shape[1])])
        return wf, wb

    wwf, wwb = split_rows_pad(p["w_w"], Vp)
    wzf, wzb = split_rows_pad(p["w_z"], Vp)
    whidf, whidb = split_rows_pad(p["w_hid"], 2 * Hp)
    wdec = jnp.pad(p["w_dec"], [(0, 2 * Hp - 2 * H), (0, Lp - L)])
    bdec = _pad_cols(p["b_dec"], Lp, value=_NEG_BIG)

    return dict(
        wih=mm(wih), bih=bih.astype(f32),
        whh_f=mm(pad_whh(p["w_hh_f"])), whh_b=mm(pad_whh(p["w_hh_b"])),
        wwf=mm(wwf), wwb=mm(wwb), wzf=mm(wzf), wzb=mm(wzb),
        batt=_pad_cols(p["b_att"], Vp).astype(f32),
        vwt=_pad_cols(p["v_wT"], Vp).astype(f32),
        vb=p["v_b"].astype(f32),
        whid_f=mm(whidf), whid_b=mm(whidb),
        bhid=_pad_cols(p["b_hid"], 2 * Hp).astype(f32),
        wdec=mm(wdec), bdec=bdec.astype(f32),
        E=E, H=H, Hp=Hp, Vp=Vp, L=L, Lp=Lp,
    )


# --------------------------------------------------------------------------
# Wrapper
# --------------------------------------------------------------------------
def bilstm_target_net(x_emb, kp, label_size):
    """x_emb: (seq, batch, E) float32.  Returns softmax probs (batch, label_size)."""
    seq, batch, E = x_emb.shape
    Hp, Lp = kp["Hp"], kp["Lp"]

    # Pad batch to a sublane-friendly tile and shard batch tiles over a
    # "parallel" grid axis (uses both TensorCores on v7x when batch is large).
    if batch <= 128:
        b_tile = _round_up(batch, 8)
        pbatch = b_tile
    else:
        b_tile = 128
        pbatch = _round_up(batch, b_tile)
    x_p = jnp.pad(x_emb.astype(jnp.float32),
                  [(0, 0), (0, pbatch - batch), (0, 0)])

    weights = [kp["wih"], kp["bih"], kp["whh_f"], kp["whh_b"],
               kp["wwf"], kp["wwb"], kp["wzf"], kp["wzb"],
               kp["batt"], kp["vwt"], kp["vb"],
               kp["whid_f"], kp["whid_b"], kp["bhid"], kp["wdec"], kp["bdec"]]

    def full_spec(a):
        return pl.BlockSpec(a.shape, lambda i, _nd=a.ndim: (0,) * _nd)

    in_specs = ([pl.BlockSpec((seq, b_tile, E), lambda i: (0, i, 0))]
                + [full_spec(w) for w in weights])
    out_specs = pl.BlockSpec((b_tile, Lp), lambda i: (i, 0))
    scratch = [pltpu.VMEM((seq, b_tile, 4 * Hp), jnp.float32),
               pltpu.VMEM((seq, b_tile, 4 * Hp), jnp.float32),
               pltpu.VMEM((seq, b_tile, Hp), jnp.float32),
               pltpu.VMEM((seq, b_tile, Hp), jnp.float32)]

    # Advisory cost estimate (whole call, all grid steps).
    flops = (2 * seq * pbatch * (E * 8 * Hp + 2 * Hp * 4 * Hp + 2 * Hp * kp["Vp"])
             + 2 * pbatch * (2 * Hp * kp["Vp"] + 2 * Hp * 2 * Hp + 2 * Hp * Lp))
    transc = seq * pbatch * (10 * Hp + kp["Vp"] + 2) + pbatch * Lp
    bytes_acc = (x_p.size * x_p.dtype.itemsize
                 + sum(int(w.size) * w.dtype.itemsize for w in weights)
                 + pbatch * Lp * 4)

    out = pl.pallas_call(
        bilstm_attention_kernel,
        out_shape=jax.ShapeDtypeStruct((pbatch, Lp), jnp.float32),
        grid=(pbatch // b_tile,),
        in_specs=in_specs,
        out_specs=out_specs,
        scratch_shapes=scratch,
        compiler_params=pltpu.CompilerParams(
            dimension_semantics=("parallel",),
            vmem_limit_bytes=32 * 1024 * 1024),
        cost_estimate=pl.CostEstimate(flops=int(flops),
                                      transcendentals=int(transc),
                                      bytes_accessed=int(bytes_acc)),
    )(x_p, *weights)
    return out[:batch, :label_size]


# --------------------------------------------------------------------------
# Pure-JAX reference (unpadded math) for the numerical sanity check
# --------------------------------------------------------------------------
def reference_forward(x_emb, p):
    seq, batch, _ = x_emb.shape
    Hd = p["w_hh_f"].shape[0]

    def run_dir(wih, whh, b, reverse):
        h = jnp.zeros((batch, Hd), jnp.float32)
        c = jnp.zeros((batch, Hd), jnp.float32)
        hs = []
        order = range(seq - 1, -1, -1) if reverse else range(seq)
        for t in order:
            gates = x_emb[t] @ wih + h @ whh + b
            i_g = jax.nn.sigmoid(gates[:, :Hd])
            f_g = jax.nn.sigmoid(gates[:, Hd:2 * Hd])
            g_g = jnp.tanh(gates[:, 2 * Hd:3 * Hd])
            o_g = jax.nn.sigmoid(gates[:, 3 * Hd:])
            c = f_g * c + i_g * g_g
            h = o_g * jnp.tanh(c)
            hs.append(h)
        if reverse:
            hs = hs[::-1]
        return jnp.stack(hs, axis=0)

    hf = run_dir(p["w_ih_f"], p["w_hh_f"], p["b_f"], False)
    hb = run_dir(p["w_ih_b"], p["w_hh_b"], p["b_b"], True)
    h_all = jnp.concatenate([hf, hb], axis=-1)           # (seq, batch, 2H)
    z = h_all[-1]
    sum_w = (jnp.einsum("sbh,hv->sbv", h_all, p["w_w"])
             + (z @ p["w_z"])[None, :, :] + p["b_att"][None, :, :])
    u = jnp.sum(jnp.tanh(sum_w) * p["v_wT"][None, :, :], axis=-1) + p["v_b"][0, 0]
    attn = jax.nn.softmax(u, axis=0)                     # softmax over seq
    H_sum = jnp.sum(attn[:, :, None] * h_all, axis=0)
    h2 = H_sum @ p["w_hid"] + p["b_hid"]
    logits = h2 @ p["w_dec"] + p["b_dec"]
    return jax.nn.softmax(logits, axis=1)


def init_params(key, vocab, E, H, V, L, alpha_s):
    ks = jax.random.split(key, 20)
    n = lambda k, shape, s=0.1: (s * jax.random.normal(k, shape)).astype(jnp.float32)
    w_a = jnp.float32(0.0)   # nn.Parameter(torch.tensor(0))
    return {
        "emb": n(ks[0], (vocab, E), 1.0),
        # forward LSTM (weights stored transposed: x @ W)
        "w_ih_f": n(ks[1], (E, 4 * H)),
        "w_hh_f": n(ks[2], (H, 4 * H)),
        "b_f": (n(ks[3], (4 * H,)) + n(ks[4], (4 * H,)))[None, :],   # b_ih + b_hh
        # backward LSTM
        "w_ih_b": n(ks[5], (E, 4 * H)),
        "w_hh_b": n(ks[6], (H, 4 * H)),
        "b_b": (n(ks[7], (4 * H,)) + n(ks[8], (4 * H,)))[None, :],
        # attention
        "w_w": n(ks[9], (2 * H, V)),
        "w_z": n(ks[10], (2 * H, V)),
        "b_att": (n(ks[11], (V,)) + n(ks[12], (V,)))[None, :] + w_a * alpha_s,
        "v_wT": n(ks[13], (1, V)),
        "v_b": n(ks[14], (1, 1)),
        # head
        "w_hid": n(ks[15], (2 * H, 2 * H)),
        "b_hid": n(ks[16], (2 * H,))[None, :],
        "w_dec": n(ks[17], (2 * H, L)),
        "b_dec": n(ks[18], (L,))[None, :],
    }


if __name__ == "__main__":
    SEQ, BATCH = 8, 2
    VOCAB, EMBED, HIDDEN, V_DIM, LABELS = 50, 16, 32, 16, 4
    ALPHA_S = 0.3

    key = jax.random.PRNGKey(0)
    k_par, k_tok = jax.random.split(key)
    params = init_params(k_par, VOCAB, EMBED, HIDDEN, V_DIM, LABELS, ALPHA_S)
    kparams = prepare_kernel_params(params)

    # text_input: (seq, batch) int32 token ids (seq-major, like torch LSTM default)
    tokens = jax.random.randint(k_tok, (SEQ, BATCH), 0, VOCAB, dtype=jnp.int32)
    x_emb = params["emb"][tokens]                        # embedding gather (JAX glue)

    out = bilstm_target_net(x_emb, kparams, LABELS)
    out = jax.block_until_ready(out)

    assert out.shape == (BATCH, LABELS)
    ref = jax.block_until_ready(reference_forward(x_emb, params))
    assert bool(jnp.allclose(out, ref, rtol=2e-3, atol=2e-3)), (out, ref)
    assert bool(jnp.allclose(jnp.sum(out, axis=1), 1.0, atol=1e-3)), jnp.sum(out, axis=1)

    print("KERNEL_OK")
</pallas_src>

<mosaic_0001>
module attributes {stable_mosaic.version = 11 : i64} {
  func.func @bilstm_attention_kernel(%arg0: i32, %arg1: memref<8x8x16xf32, #tpu.memory_space<vmem>>, %arg2: memref<16x1024xf32, #tpu.memory_space<vmem>>, %arg3: memref<1x1024xf32, #tpu.memory_space<vmem>>, %arg4: memref<128x512xf32, #tpu.memory_space<vmem>>, %arg5: memref<128x512xf32, #tpu.memory_space<vmem>>, %arg6: memref<128x128xf32, #tpu.memory_space<vmem>>, %arg7: memref<128x128xf32, #tpu.memory_space<vmem>>, %arg8: memref<128x128xf32, #tpu.memory_space<vmem>>, %arg9: memref<128x128xf32, #tpu.memory_space<vmem>>, %arg10: memref<1x128xf32, #tpu.memory_space<vmem>>, %arg11: memref<1x128xf32, #tpu.memory_space<vmem>>, %arg12: memref<1x1xf32, #tpu.memory_space<vmem>>, %arg13: memref<128x256xf32, #tpu.memory_space<vmem>>, %arg14: memref<128x256xf32, #tpu.memory_space<vmem>>, %arg15: memref<1x256xf32, #tpu.memory_space<vmem>>, %arg16: memref<256x128xf32, #tpu.memory_space<vmem>>, %arg17: memref<1x128xf32, #tpu.memory_space<vmem>>, %arg18: memref<8x128xf32, #tpu.memory_space<vmem>>, %arg19: memref<8x8x512xf32, #tpu.memory_space<vmem>>, %arg20: memref<8x8x512xf32, #tpu.memory_space<vmem>>, %arg21: memref<8x8x128xf32, #tpu.memory_space<vmem>>, %arg22: memref<8x8x128xf32, #tpu.memory_space<vmem>>) attributes {dimension_semantics = [#tpu.dimension_semantics<parallel>], iteration_bounds = array<i64: 1>, scalar_prefetch = 0 : i64, scratch_operands = 4 : i64, tpu.core_type = #tpu.core_type<tc>, window_params = [{transform_indices = @transform_0, window_bounds = array<i64: 8, 8, 16>}, {pipeline_mode = #tpu.pipeline_mode<synchronous>, transform_indices = @transform_1, window_bounds = array<i64: 16, 1024>}, {pipeline_mode = #tpu.pipeline_mode<synchronous>, transform_indices = @transform_2, window_bounds = array<i64: 1, 1024>}, {pipeline_mode = #tpu.pipeline_mode<synchronous>, transform_indices = @transform_3, window_bounds = array<i64: 128, 512>}, {pipeline_mode = #tpu.pipeline_mode<synchronous>, transform_indices = @transform_4, window_bounds = array<i64: 128, 512>}, {pipeline_mode = #tpu.pipeline_mode<synchronous>, transform_indices = @transform_5, window_bounds = array<i64: 128, 128>}, {pipeline_mode = #tpu.pipeline_mode<synchronous>, transform_indices = @transform_6, window_bounds = array<i64: 128, 128>}, {pipeline_mode = #tpu.pipeline_mode<synchronous>, transform_indices = @transform_7, window_bounds = array<i64: 128, 128>}, {pipeline_mode = #tpu.pipeline_mode<synchronous>, transform_indices = @transform_8, window_bounds = array<i64: 128, 128>}, {pipeline_mode = #tpu.pipeline_mode<synchronous>, transform_indices = @transform_9, window_bounds = array<i64: 1, 128>}, {pipeline_mode = #tpu.pipeline_mode<synchronous>, transform_indices = @transform_10, window_bounds = array<i64: 1, 128>}, {pipeline_mode = #tpu.pipeline_mode<synchronous>, transform_indices = @transform_11, window_bounds = array<i64: 1, 1>}, {pipeline_mode = #tpu.pipeline_mode<synchronous>, transform_indices = @transform_12, window_bounds = array<i64: 128, 256>}, {pipeline_mode = #tpu.pipeline_mode<synchronous>, transform_indices = @transform_13, window_bounds = array<i64: 128, 256>}, {pipeline_mode = #tpu.pipeline_mode<synchronous>, transform_indices = @transform_14, window_bounds = array<i64: 1, 256>}, {pipeline_mode = #tpu.pipeline_mode<synchronous>, transform_indices = @transform_15, window_bounds = array<i64: 256, 128>}, {pipeline_mode = #tpu.pipeline_mode<synchronous>, transform_indices = @transform_16, window_bounds = array<i64: 1, 128>}, {transform_indices = @transform_17, window_bounds = array<i64: 8, 128>}]} {
    %c0 = arith.constant 0 : index
    %c0_0 = arith.constant 0 : index
    %c0_1 = arith.constant 0 : index
    %0 = vector.load %arg1[%c0, %c0_0, %c0_1] : memref<8x8x16xf32, #tpu.memory_space<vmem>>, vector<8x8x16xf32>
    %1 = vector.shape_cast %0 : vector<8x8x16xf32> to vector<64x16xf32>
    %c0_2 = arith.constant 0 : index
    %c0_3 = arith.constant 0 : index
    %2 = vector.load %arg2[%c0_2, %c0_3] : memref<16x1024xf32, #tpu.memory_space<vmem>>, vector<16x1024xf32>
    %cst = arith.constant dense<0.000000e+00> : vector<64x1024xf32>
    %3 = tpu.matmul %1, %2, %cst {dimension_numbers = #tpu.dot_dimension_numbers<[1], [0], [0], [1], [0, 0, 1, 1], [], []>} : vector<64x16xf32>, vector<16x1024xf32>, vector<64x1024xf32> -> vector<64x1024xf32>
    %c0_4 = arith.constant 0 : index
    %c0_5 = arith.constant 0 : index
    %4 = vector.load %arg3[%c0_4, %c0_5] : memref<1x1024xf32, #tpu.memory_space<vmem>>, vector<1x1024xf32>
    %5 = vector.broadcast %4 : vector<1x1024xf32> to vector<64x1024xf32>
    %6 = arith.addf %3, %5 : vector<64x1024xf32>
    %7 = vector.extract_strided_slice %6 {offsets = [0, 0], sizes = [64, 512], strides = [1, 1]} : vector<64x1024xf32> to vector<64x512xf32>
    %8 = vector.shape_cast %7 : vector<64x512xf32> to vector<8x8x512xf32>
    %c0_6 = arith.constant 0 : index
    %c0_7 = arith.constant 0 : index
    %c0_8 = arith.constant 0 : index
    %9 = vector.load %arg19[%c0_6, %c0_7, %c0_8] : memref<8x8x512xf32, #tpu.memory_space<vmem>>, vector<8x8x512xf32>
    tpu.vector_store %arg19[%c0_6, %c0_7, %c0_8], %8 {strides = array<i32>} : memref<8x8x512xf32, #tpu.memory_space<vmem>>, vector<8x8x512xf32>,
    %10 = vector.extract_strided_slice %6 {offsets = [0, 512], sizes = [64, 512], strides = [1, 1]} : vector<64x1024xf32> to vector<64x512xf32>
    %11 = vector.shape_cast %10 : vector<64x512xf32> to vector<8x8x512xf32>
    %c0_9 = arith.constant 0 : index
    %c0_10 = arith.constant 0 : index
    %c0_11 = arith.constant 0 : index
    %12 = vector.load %arg20[%c0_9, %c0_10, %c0_11] : memref<8x8x512xf32, #tpu.memory_space<vmem>>, vector<8x8x512xf32>
    tpu.vector_store %arg20[%c0_9, %c0_10, %c0_11], %11 {strides = array<i32>} : memref<8x8x512xf32, #tpu.memory_space<vmem>>, vector<8x8x512xf32>,
    %c0_12 = arith.constant 0 : index
    %c0_13 = arith.constant 0 : index
    %13 = vector.load %arg4[%c0_12, %c0_13] : memref<128x512xf32, #tpu.memory_space<vmem>>, vector<128x512xf32>
    %c0_14 = arith.constant 0 : index
    %c0_15 = arith.constant 0 : index
    %14 = vector.load %arg5[%c0_14, %c0_15] : memref<128x512xf32, #tpu.memory_space<vmem>>, vector<128x512xf32>
    %cst_16 = arith.constant 0.000000e+00 : f32
    %15 = vector.broadcast %cst_16 : f32 to vector<8x128xf32>
    %cst_17 = arith.constant 0.000000e+00 : f32
    %16 = vector.broadcast %cst_17 : f32 to vector<8x128xf32>
    %c0_i32 = arith.constant 0 : i32
    %c8_i32 = arith.constant 8 : i32
    %17 = arith.addi %c0_i32, %c8_i32 : i32
    %c1_i32 = arith.constant 1 : i32
    %18:4 = scf.for %arg23 = %c0_i32 to %17 step %c1_i32 iter_args(%arg24 = %15, %arg25 = %16, %arg26 = %15, %arg27 = %16) -> (vector<8x128xf32>, vector<8x128xf32>, vector<8x128xf32>, vector<8x128xf32>)  : i32 {
      %c7_i32 = arith.constant 7 : i32
      %93 = arith.subi %c7_i32, %arg23 : i32
      %94 = arith.index_cast %arg23 : i32 to index
      %c0_70 = arith.constant 0 : index
      %c0_71 = arith.constant 0 : index
      %95 = vector.load %arg19[%94, %c0_70, %c0_71] : memref<8x8x512xf32, #tpu.memory_space<vmem>>, vector<1x8x512xf32>
      %96 = vector.shape_cast %95 : vector<1x8x512xf32> to vector<8x512xf32>
      %cst_72 = arith.constant dense<0.000000e+00> : vector<8x512xf32>
      %97 = tpu.matmul %arg24, %13, %cst_72 {dimension_numbers = #tpu.dot_dimension_numbers<[1], [0], [0], [1], [0, 0, 1, 1], [], []>} : vector<8x128xf32>, vector<128x512xf32>, vector<8x512xf32> -> vector<8x512xf32>
      %98 = arith.addf %96, %97 : vector<8x512xf32>
      %99 = arith.index_cast %93 : i32 to index
      %c0_73 = arith.constant 0 : index
      %c0_74 = arith.constant 0 : index
      %100 = vector.load %arg20[%99, %c0_73, %c0_74] : memref<8x8x512xf32, #tpu.memory_space<vmem>>, vector<1x8x512xf32>
      %101 = vector.shape_cast %100 : vector<1x8x512xf32> to vector<8x512xf32>
      %cst_75 = arith.constant dense<0.000000e+00> : vector<8x512xf32>
      %102 = tpu.matmul %arg26, %14, %cst_75 {dimension_numbers = #tpu.dot_dimension_numbers<[1], [0], [0], [1], [0, 0, 1, 1], [], []>} : vector<8x128xf32>, vector<128x512xf32>, vector<8x512xf32> -> vector<8x512xf32>
      %103 = arith.addf %101, %102 : vector<8x512xf32>
      %104 = vector.extract_strided_slice %98 {offsets = [0, 0], sizes = [8, 128], strides = [1, 1]} : vector<8x512xf32> to vector<8x128xf32>
      %105 = arith.negf %104 : vector<8x128xf32>
      %106 = math.exp %105 : vector<8x128xf32>
      %cst_76 = arith.constant 1.000000e+00 : f32
      %107 = vector.broadcast %cst_76 : f32 to vector<8x128xf32>
      %108 = arith.addf %107, %106 : vector<8x128xf32>
      %109 = arith.divf %107, %108 : vector<8x128xf32>
      %110 = vector.extract_strided_slice %98 {offsets = [0, 128], sizes = [8, 128], strides = [1, 1]} : vector<8x512xf32> to vector<8x128xf32>
      %111 = arith.negf %110 : vector<8x128xf32>
      %112 = math.exp %111 : vector<8x128xf32>
      %cst_77 = arith.constant 1.000000e+00 : f32
      %113 = vector.broadcast %cst_77 : f32 to vector<8x128xf32>
      %114 = arith.addf %113, %112 : vector<8x128xf32>
      %115 = arith.divf %113, %114 : vector<8x128xf32>
      %116 = vector.extract_strided_slice %98 {offsets = [0, 256], sizes = [8, 128], strides = [1, 1]} : vector<8x512xf32> to vector<8x128xf32>
      %117 = math.tanh %116 : vector<8x128xf32>
      %118 = vector.extract_strided_slice %98 {offsets = [0, 384], sizes = [8, 128], strides = [1, 1]} : vector<8x512xf32> to vector<8x128xf32>
      %119 = arith.negf %118 : vector<8x128xf32>
      %120 = math.exp %119 : vector<8x128xf32>
      %cst_78 = arith.constant 1.000000e+00 : f32
      %121 = vector.broadcast %cst_78 : f32 to vector<8x128xf32>
      %122 = arith.addf %121, %120 : vector<8x128xf32>
      %123 = arith.divf %121, %122 : vector<8x128xf32>
      %124 = arith.mulf %115, %arg25 : vector<8x128xf32>
      %125 = arith.mulf %109, %117 : vector<8x128xf32>
      %126 = arith.addf %124, %125 : vector<8x128xf32>
      %127 = math.tanh %126 : vector<8x128xf32>
      %128 = arith.mulf %123, %127 : vector<8x128xf32>
      %129 = vector.extract_strided_slice %103 {offsets = [0, 0], sizes = [8, 128], strides = [1, 1]} : vector<8x512xf32> to vector<8x128xf32>
      %130 = arith.negf %129 : vector<8x128xf32>
      %131 = math.exp %130 : vector<8x128xf32>
      %cst_79 = arith.constant 1.000000e+00 : f32
      %132 = vector.broadcast %cst_79 : f32 to vector<8x128xf32>
      %133 = arith.addf %132, %131 : vector<8x128xf32>
      %134 = arith.divf %132, %133 : vector<8x128xf32>
      %135 = vector.extract_strided_slice %103 {offsets = [0, 128], sizes = [8, 128], strides = [1, 1]} : vector<8x512xf32> to vector<8x128xf32>
      %136 = arith.negf %135 : vector<8x128xf32>
      %137 = math.exp %136 : vector<8x128xf32>
      %cst_80 = arith.constant 1.000000e+00 : f32
      %138 = vector.broadcast %cst_80 : f32 to vector<8x128xf32>
      %139 = arith.addf %138, %137 : vector<8x128xf32>
      %140 = arith.divf %138, %139 : vector<8x128xf32>
      %141 = vector.extract_strided_slice %103 {offsets = [0, 256], sizes = [8, 128], strides = [1, 1]} : vector<8x512xf32> to vector<8x128xf32>
      %142 = math.tanh %141 : vector<8x128xf32>
      %143 = vector.extract_strided_slice %103 {offsets = [0, 384], sizes = [8, 128], strides = [1, 1]} : vector<8x512xf32> to vector<8x128xf32>
      %144 = arith.negf %143 : vector<8x128xf32>
      %145 = math.exp %144 : vector<8x128xf32>
      %cst_81 = arith.constant 1.000000e+00 : f32
      %146 = vector.broadcast %cst_81 : f32 to vector<8x128xf32>
      %147 = arith.addf %146, %145 : vector<8x128xf32>
      %148 = arith.divf %146, %147 : vector<8x128xf32>
      %149 = arith.mulf %140, %arg27 : vector<8x128xf32>
      %150 = arith.mulf %134, %142 : vector<8x128xf32>
      %151 = arith.addf %149, %150 : vector<8x128xf32>
      %152 = math.tanh %151 : vector<8x128xf32>
      %153 = arith.mulf %148, %152 : vector<8x128xf32>
      %154 = arith.index_cast %arg23 : i32 to index
      %c0_82 = arith.constant 0 : index
      %c0_83 = arith.constant 0 : index
      %155 = vector.load %arg21[%154, %c0_82, %c0_83] : memref<8x8x128xf32, #tpu.memory_space<vmem>>, vector<1x8x128xf32>
      %156 = vector.shape_cast %155 : vector<1x8x128xf32> to vector<8x128xf32>
      %157 = vector.shape_cast %128 : vector<8x128xf32> to vector<1x8x128xf32>
      tpu.vector_store %arg21[%154, %c0_82, %c0_83], %157 {strides = array<i32>} : memref<8x8x128xf32, #tpu.memory_space<vmem>>, vector<1x8x128xf32>,
      %158 = arith.index_cast %93 : i32 to index
      %c0_84 = arith.constant 0 : index
      %c0_85 = arith.constant 0 : index
      %159 = vector.load %arg22[%158, %c0_84, %c0_85] : memref<8x8x128xf32, #tpu.memory_space<vmem>>, vector<1x8x128xf32>
      %160 = vector.shape_cast %159 : vector<1x8x128xf32> to vector<8x128xf32>
      %161 = vector.shape_cast %153 : vector<8x128xf32> to vector<1x8x128xf32>
      tpu.vector_store %arg22[%158, %c0_84, %c0_85], %161 {strides = array<i32>} : memref<8x8x128xf32, #tpu.memory_space<vmem>>, vector<1x8x128xf32>,
      scf.yield %128, %126, %153, %151 : vector<8x128xf32>, vector<8x128xf32>, vector<8x128xf32>, vector<8x128xf32>
    }
    %c8_i32_18 = arith.constant 8 : i32
    %c0_19 = arith.constant 0 : index
    %c0_20 = arith.constant 0 : index
    %c0_21 = arith.constant 0 : index
    %19 = vector.load %arg21[%c0_19, %c0_20, %c0_21] : memref<8x8x128xf32, #tpu.memory_space<vmem>>, vector<8x8x128xf32>
    %c0_22 = arith.constant 0 : index
    %c0_23 = arith.constant 0 : index
    %c0_24 = arith.constant 0 : index
    %20 = vector.load %arg22[%c0_22, %c0_23, %c0_24] : memref<8x8x128xf32, #tpu.memory_space<vmem>>, vector<8x8x128xf32>
    %c7 = arith.constant 7 : index
    %c0_25 = arith.constant 0 : index
    %c0_26 = arith.constant 0 : index
    %21 = vector.load %arg21[%c7, %c0_25, %c0_26] : memref<8x8x128xf32, #tpu.memory_space<vmem>>, vector<1x8x128xf32>
    %22 = vector.shape_cast %21 : vector<1x8x128xf32> to vector<8x128xf32>
    %c7_27 = arith.constant 7 : index
    %c0_28 = arith.constant 0 : index
    %c0_29 = arith.constant 0 : index
    %23 = vector.load %arg22[%c7_27, %c0_28, %c0_29] : memref<8x8x128xf32, #tpu.memory_space<vmem>>, vector<1x8x128xf32>
    %24 = vector.shape_cast %23 : vector<1x8x128xf32> to vector<8x128xf32>
    %c0_30 = arith.constant 0 : index
    %c0_31 = arith.constant 0 : index
    %25 = vector.load %arg8[%c0_30, %c0_31] : memref<128x128xf32, #tpu.memory_space<vmem>>, vector<128x128xf32>
    %cst_32 = arith.constant dense<0.000000e+00> : vector<8x128xf32>
    %26 = tpu.matmul %22, %25, %cst_32 {dimension_numbers = #tpu.dot_dimension_numbers<[1], [0], [0], [1], [0, 0, 1, 1], [], []>} : vector<8x128xf32>, vector<128x128xf32>, vector<8x128xf32> -> vector<8x128xf32>
    %c0_33 = arith.constant 0 : index
    %c0_34 = arith.constant 0 : index
    %27 = vector.load %arg9[%c0_33, %c0_34] : memref<128x128xf32, #tpu.memory_space<vmem>>, vector<128x128xf32>
    %cst_35 = arith.constant dense<0.000000e+00> : vector<8x128xf32>
    %28 = tpu.matmul %24, %27, %cst_35 {dimension_numbers = #tpu.dot_dimension_numbers<[1], [0], [0], [1], [0, 0, 1, 1], [], []>} : vector<8x128xf32>, vector<128x128xf32>, vector<8x128xf32> -> vector<8x128xf32>
    %29 = arith.addf %26, %28 : vector<8x128xf32>
    %c0_36 = arith.constant 0 : index
    %c0_37 = arith.constant 0 : index
    %30 = vector.load %arg10[%c0_36, %c0_37] : memref<1x128xf32, #tpu.memory_space<vmem>>, vector<1x128xf32>
    %31 = vector.broadcast %30 : vector<1x128xf32> to vector<8x128xf32>
    %32 = arith.addf %29, %31 : vector<8x128xf32>
    %33 = vector.shape_cast %19 : vector<8x8x128xf32> to vector<64x128xf32>
    %34 = vector.shape_cast %20 : vector<8x8x128xf32> to vector<64x128xf32>
    %c0_38 = arith.constant 0 : index
    %c0_39 = arith.constant 0 : index
    %35 = vector.load %arg6[%c0_38, %c0_39] : memref<128x128xf32, #tpu.memory_space<vmem>>, vector<128x128xf32>
    %cst_40 = arith.constant dense<0.000000e+00> : vector<64x128xf32>
    %36 = tpu.matmul %33, %35, %cst_40 {dimension_numbers = #tpu.dot_dimension_numbers<[1], [0], [0], [1], [0, 0, 1, 1], [], []>} : vector<64x128xf32>, vector<128x128xf32>, vector<64x128xf32> -> vector<64x128xf32>
    %c0_41 = arith.constant 0 : index
    %c0_42 = arith.constant 0 : index
    %37 = vector.load %arg7[%c0_41, %c0_42] : memref<128x128xf32, #tpu.memory_space<vmem>>, vector<128x128xf32>
    %cst_43 = arith.constant dense<0.000000e+00> : vector<64x128xf32>
    %38 = tpu.matmul %34, %37, %cst_43 {dimension_numbers = #tpu.dot_dimension_numbers<[1], [0], [0], [1], [0, 0, 1, 1], [], []>} : vector<64x128xf32>, vector<128x128xf32>, vector<64x128xf32> -> vector<64x128xf32>
    %39 = arith.addf %36, %38 : vector<64x128xf32>
    %40 = vector.shape_cast %39 : vector<64x128xf32> to vector<8x8x128xf32>
    %41 = vector.shape_cast %32 : vector<8x128xf32> to vector<1x8x128xf32>
    %42 = vector.broadcast %41 : vector<1x8x128xf32> to vector<8x8x128xf32>
    %43 = arith.addf %40, %42 : vector<8x8x128xf32>
    %44 = math.tanh %43 : vector<8x8x128xf32>
    %c0_44 = arith.constant 0 : index
    %c0_45 = arith.constant 0 : index
    %45 = vector.load %arg11[%c0_44, %c0_45] : memref<1x128xf32, #tpu.memory_space<vmem>>, vector<1x128xf32>
    %46 = vector.shape_cast %45 : vector<1x128xf32> to vector<1x1x128xf32>
    %47 = vector.broadcast %46 : vector<1x1x128xf32> to vector<8x8x128xf32>
    %48 = arith.mulf %44, %47 : vector<8x8x128xf32>
    %cst_46 = arith.constant dense<0.000000e+00> : vector<8x8xf32>
    %49 = vector.multi_reduction <add>, %48, %cst_46 [2] : vector<8x8x128xf32> to vector<8x8xf32>
    %50 = vector.shape_cast %49 : vector<8x8xf32> to vector<8x8x1xf32>
    %c0_47 = arith.constant 0 : index
    %c0_48 = arith.constant 0 : index
    %51 = vector.load %arg12[%c0_47, %c0_48] : memref<1x1xf32, #tpu.memory_space<vmem>>, vector<1x1xf32>
    %52 = vector.shape_cast %51 : vector<1x1xf32> to vector<1x1x1xf32>
    %53 = vector.broadcast %52 : vector<1x1x1xf32> to vector<8x8x1xf32>
    %54 = arith.addf %50, %53 : vector<8x8x1xf32>
    %cst_49 = arith.constant dense<0xFF800000> : vector<8x1xf32>
    %55 = vector.multi_reduction <maximumf>, %54, %cst_49 [0] : vector<8x8x1xf32> to vector<8x1xf32>
    %56 = vector.shape_cast %55 : vector<8x1xf32> to vector<1x8x1xf32>
    %57 = vector.broadcast %56 : vector<1x8x1xf32> to vector<8x8x1xf32>
    %58 = arith.subf %54, %57 : vector<8x8x1xf32>
    %59 = math.exp %58 : vector<8x8x1xf32>
    %cst_50 = arith.constant dense<0.000000e+00> : vector<8x1xf32>
    %60 = vector.multi_reduction <add>, %59, %cst_50 [0] : vector<8x8x1xf32> to vector<8x1xf32>
    %61 = vector.shape_cast %60 : vector<8x1xf32> to vector<1x8x1xf32>
    %62 = vector.broadcast %61 : vector<1x8x1xf32> to vector<8x8x1xf32>
    %63 = arith.divf %59, %62 : vector<8x8x1xf32>
    %64 = vector.broadcast %63 : vector<8x8x1xf32> to vector<8x8x128xf32>
    %65 = arith.mulf %64, %19 : vector<8x8x128xf32>
    %cst_51 = arith.constant dense<0.000000e+00> : vector<8x128xf32>
    %66 = vector.multi_reduction <add>, %65, %cst_51 [0] : vector<8x8x128xf32> to vector<8x128xf32>
    %67 = vector.broadcast %63 : vector<8x8x1xf32> to vector<8x8x128xf32>
    %68 = arith.mulf %67, %20 : vector<8x8x128xf32>
    %cst_52 = arith.constant dense<0.000000e+00> : vector<8x128xf32>
    %69 = vector.multi_reduction <add>, %68, %cst_52 [0] : vector<8x8x128xf32> to vector<8x128xf32>
    %c0_53 = arith.constant 0 : index
    %c0_54 = arith.constant 0 : index
    %70 = vector.load %arg13[%c0_53, %c0_54] : memref<128x256xf32, #tpu.memory_space<vmem>>, vector<128x256xf32>
    %cst_55 = arith.constant dense<0.000000e+00> : vector<8x256xf32>
    %71 = tpu.matmul %66, %70, %cst_55 {dimension_numbers = #tpu.dot_dimension_numbers<[1], [0], [0], [1], [0, 0, 1, 1], [], []>} : vector<8x128xf32>, vector<128x256xf32>, vector<8x256xf32> -> vector<8x256xf32>
    %c0_56 = arith.constant 0 : index
    %c0_57 = arith.constant 0 : index
    %72 = vector.load %arg14[%c0_56, %c0_57] : memref<128x256xf32, #tpu.memory_space<vmem>>, vector<128x256xf32>
    %cst_58 = arith.constant dense<0.000000e+00> : vector<8x256xf32>
    %73 = tpu.matmul %69, %72, %cst_58 {dimension_numbers = #tpu.dot_dimension_numbers<[1], [0], [0], [1], [0, 0, 1, 1], [], []>} : vector<8x128xf32>, vector<128x256xf32>, vector<8x256xf32> -> vector<8x256xf32>
    %74 = arith.addf %71, %73 : vector<8x256xf32>
    %c0_59 = arith.constant 0 : index
    %c0_60 = arith.constant 0 : index
    %75 = vector.load %arg15[%c0_59, %c0_60] : memref<1x256xf32, #tpu.memory_space<vmem>>, vector<1x256xf32>
    %76 = vector.broadcast %75 : vector<1x256xf32> to vector<8x256xf32>
    %77 = arith.addf %74, %76 : vector<8x256xf32>
    %c0_61 = arith.constant 0 : index
    %c0_62 = arith.constant 0 : index
    %78 = vector.load %arg16[%c0_61, %c0_62] : memref<256x128xf32, #tpu.memory_space<vmem>>, vector<256x128xf32>
    %cst_63 = arith.constant dense<0.000000e+00> : vector<8x128xf32>
    %79 = tpu.matmul %77, %78, %cst_63 {dimension_numbers = #tpu.dot_dimension_numbers<[1], [0], [0], [1], [0, 0, 1, 1], [], []>} : vector<8x256xf32>, vector<256x128xf32>, vector<8x128xf32> -> vector<8x128xf32>
    %c0_64 = arith.constant 0 : index
    %c0_65 = arith.constant 0 : index
    %80 = vector.load %arg17[%c0_64, %c0_65] : memref<1x128xf32, #tpu.memory_space<vmem>>, vector<1x128xf32>
    %81 = vector.broadcast %80 : vector<1x128xf32> to vector<8x128xf32>
    %82 = arith.addf %79, %81 : vector<8x128xf32>
    %cst_66 = arith.constant dense<0xFF800000> : vector<8xf32>
    %83 = vector.multi_reduction <maximumf>, %82, %cst_66 [1] : vector<8x128xf32> to vector<8xf32>
    %84 = vector.shape_cast %83 : vector<8xf32> to vector<8x1xf32>
    %85 = vector.broadcast %84 : vector<8x1xf32> to vector<8x128xf32>
    %86 = arith.subf %82, %85 : vector<8x128xf32>
    %87 = math.exp %86 : vector<8x128xf32>
    %cst_67 = arith.constant dense<0.000000e+00> : vector<8xf32>
    %88 = vector.multi_reduction <add>, %87, %cst_67 [1] : vector<8x128xf32> to vector<8xf32>
    %89 = vector.shape_cast %88 : vector<8xf32> to vector<8x1xf32>
    %90 = vector.broadcast %89 : vector<8x1xf32> to vector<8x128xf32>
    %91 = arith.divf %87, %90 : vector<8x128xf32>
    %c0_68 = arith.constant 0 : index
    %c0_69 = arith.constant 0 : index
    %92 = vector.load %arg18[%c0_68, %c0_69] : memref<8x128xf32, #tpu.memory_space<vmem>>, vector<8x128xf32>
    tpu.vector_store %arg18[%c0_68, %c0_69], %91 {strides = array<i32>} : memref<8x128xf32, #tpu.memory_space<vmem>>, vector<8x128xf32>,
    return
  }
  func.func @transform_0(%arg0: i32) -> (i32, i32, i32) {
    %c0_i32 = arith.constant 0 : i32
    %c0_i32_0 = arith.constant 0 : i32
    %c0_i32_1 = arith.constant 0 : i32
    return %c0_i32, %arg0, %c0_i32_0 : i32, i32, i32
  }
  func.func @transform_1(%arg0: i32) -> (i32, i32) {
    %c0_i32 = arith.constant 0 : i32
    %c0_i32_0 = arith.constant 0 : i32
    %c0_i32_1 = arith.constant 0 : i32
    return %c0_i32, %c0_i32_0 : i32, i32
  }
  func.func @transform_2(%arg0: i32) -> (i32, i32) {
    %c0_i32 = arith.constant 0 : i32
    %c0_i32_0 = arith.constant 0 : i32
    %c0_i32_1 = arith.constant 0 : i32
    return %c0_i32, %c0_i32_0 : i32, i32
  }
  func.func @transform_3(%arg0: i32) -> (i32, i32) {
    %c0_i32 = arith.constant 0 : i32
    %c0_i32_0 = arith.constant 0 : i32
    %c0_i32_1 = arith.constant 0 : i32
    return %c0_i32, %c0_i32_0 : i32, i32
  }
  func.func @transform_4(%arg0: i32) -> (i32, i32) {
    %c0_i32 = arith.constant 0 : i32
    %c0_i32_0 = arith.constant 0 : i32
    %c0_i32_1 = arith.constant 0 : i32
    return %c0_i32, %c0_i32_0 : i32, i32
  }
  func.func @transform_5(%arg0: i32) -> (i32, i32) {
    %c0_i32 = arith.constant 0 : i32
    %c0_i32_0 = arith.constant 0 : i32
    %c0_i32_1 = arith.constant 0 : i32
    return %c0_i32, %c0_i32_0 : i32, i32
  }
  func.func @transform_6(%arg0: i32) -> (i32, i32) {
    %c0_i32 = arith.constant 0 : i32
    %c0_i32_0 = arith.constant 0 : i32
    %c0_i32_1 = arith.constant 0 : i32
    return %c0_i32, %c0_i32_0 : i32, i32
  }
  func.func @transform_7(%arg0: i32) -> (i32, i32) {
    %c0_i32 = arith.constant 0 : i32
    %c0_i32_0 = arith.constant 0 : i32
    %c0_i32_1 = arith.constant 0 : i32
    return %c0_i32, %c0_i32_0 : i32, i32
  }
  func.func @transform_8(%arg0: i32) -> (i32, i32) {
    %c0_i32 = arith.constant 0 : i32
    %c0_i32_0 = arith.constant 0 : i32
    %c0_i32_1 = arith.constant 0 : i32
    return %c0_i32, %c0_i32_0 : i32, i32
  }
  func.func @transform_9(%arg0: i32) -> (i32, i32) {
    %c0_i32 = arith.constant 0 : i32
    %c0_i32_0 = arith.constant 0 : i32
    %c0_i32_1 = arith.constant 0 : i32
    return %c0_i32, %c0_i32_0 : i32, i32
  }
  func.func @transform_10(%arg0: i32) -> (i32, i32) {
    %c0_i32 = arith.constant 0 : i32
    %c0_i32_0 = arith.constant 0 : i32
    %c0_i32_1 = arith.constant 0 : i32
    return %c0_i32, %c0_i32_0 : i32, i32
  }
  func.func @transform_11(%arg0: i32) -> (i32, i32) {
    %c0_i32 = arith.constant 0 : i32
    %c0_i32_0 = arith.constant 0 : i32
    %c0_i32_1 = arith.constant 0 : i32
    return %c0_i32, %c0_i32_0 : i32, i32
  }
  func.func @transform_12(%arg0: i32) -> (i32, i32) {
    %c0_i32 = arith.constant 0 : i32
    %c0_i32_0 = arith.constant 0 : i32
    %c0_i32_1 = arith.constant 0 : i32
    return %c0_i32, %c0_i32_0 : i32, i32
  }
  func.func @transform_13(%arg0: i32) -> (i32, i32) {
    %c0_i32 = arith.constant 0 : i32
    %c0_i32_0 = arith.constant 0 : i32
    %c0_i32_1 = arith.constant 0 : i32
    return %c0_i32, %c0_i32_0 : i32, i32
  }
  func.func @transform_14(%arg0: i32) -> (i32, i32) {
    %c0_i32 = arith.constant 0 : i32
    %c0_i32_0 = arith.constant 0 : i32
    %c0_i32_1 = arith.constant 0 : i32
    return %c0_i32, %c0_i32_0 : i32, i32
  }
  func.func @transform_15(%arg0: i32) -> (i32, i32) {
    %c0_i32 = arith.constant 0 : i32
    %c0_i32_0 = arith.constant 0 : i32
    %c0_i32_1 = arith.constant 0 : i32
    return %c0_i32, %c0_i32_0 : i32, i32
  }
  func.func @transform_16(%arg0: i32) -> (i32, i32) {
    %c0_i32 = arith.constant 0 : i32
    %c0_i32_0 = arith.constant 0 : i32
    %c0_i32_1 = arith.constant 0 : i32
    return %c0_i32, %c0_i32_0 : i32, i32
  }
  func.func @transform_17(%arg0: i32) -> (i32, i32) {
    %c0_i32 = arith.constant 0 : i32
    %c0_i32_0 = arith.constant 0 : i32
    return %arg0, %c0_i32 : i32, i32
  }
}

</mosaic_0001>

<bundles_post_ra>
// kernel: tpu_custom_call.1
= control target key start
LH: loop header
LB: loop body
LE: loop exit
PB: predicated region body
PF: predicated region fallthrough
CT: control target
= control target key end

     0   :  { %s3378_s0 = inlined_call_operand.hbm [shape: f32[8,8,16], index: 0, kind: input, shape index: {}]   ;;  %s3379_s1 = inlined_call_operand.hbm [shape: f32[16,1024], index: 1, kind: input, shape index: {}]   ;;  %s3380_s2 = inlined_call_operand.hbm [shape: f32[1,1024], index: 2, kind: input, shape index: {}]   ;;  %s3381_s3 = inlined_call_operand.hbm [shape: f32[128,512], index: 3, kind: input, shape index: {}]   ;;  %s3382_s4 = inlined_call_operand.hbm [shape: f32[128,512], index: 4, kind: input, shape index: {}]   ;;  %s3383_s5 = inlined_call_operand.hbm [shape: f32[128,128], index: 5, kind: input, shape index: {}]   ;;  %s3384_s6 = inlined_call_operand.hbm [shape: f32[128,128], index: 6, kind: input, shape index: {}]   ;;  %s3385_s7 = inlined_call_operand.hbm [shape: f32[128,128], index: 7, kind: input, shape index: {}]   ;;  %s3386_s8 = inlined_call_operand.hbm [shape: f32[128,128], index: 8, kind: input, shape index: {}]   ;;  %s3387_s9 = inlined_call_operand.vmem [shape: f32[1,128], index: 9, kind: input, shape index: {}]   ;;  %s3388_s10 = inlined_call_operand.vmem [shape: f32[1,128], index: 10, kind: input, shape index: {}]   ;;  %s3389_s11 = inlined_call_operand.<no memory space> [shape: f32[1,1], index: 11, kind: input, shape index: {}]   ;;  %s3390_s12 = inlined_call_operand.hbm [shape: f32[128,256], index: 12, kind: input, shape index: {}]   ;;  %s3391_s13 = inlined_call_operand.hbm [shape: f32[128,256], index: 13, kind: input, shape index: {}]   ;;  %s3392_s14 = inlined_call_operand.vmem [shape: f32[1,256], index: 14, kind: input, shape index: {}]   ;;  %s3393_s15 = inlined_call_operand.hbm [shape: f32[256,128], index: 15, kind: input, shape index: {}]   ;;  %s3394_s16 = inlined_call_operand.vmem [shape: f32[1,128], index: 16, kind: input, shape index: {}]   ;;  %s3395_s17 = inlined_call_operand.hbm [shape: f32[8,128], index: 17, kind: output, shape index: {}]  }
   0x1   :  { %3396 = sst [smem:[#allocation130_spill]] %s3378_s0  ;;  %v22_v0 = vstv %s3389_s11 }
   0x2   :  { %3397 = sst [smem:[#allocation131_spill]] %s3379_s1  ;;  %23 = vst [vmem:[#allocation6] sm:$0x1] %v22_v0 }
   0x3   :  { %24 = vsyncpa [#allocation8], 0 }
   0x4   :  { %25 = vsyncpa [#allocation11], 0 }
   0x5   :  { %26 = vsyncpa [#allocation14], 0 }
   0x6   :  { %27 = vsyncpa [#allocation17], 0 }
   0x7   :  { %28 = vsyncpa [#allocation20], 0 }
   0x8   :  { %29 = vsyncpa [#allocation23], 0 }
   0x9   :  { %30 = vsyncpa [#allocation26], 0  ;;  %s3398_s28 = sld [smem:[#allocation131_spill]] }
   0xf   :  { %s49_s29 = sshll.u32 %s3398_s28, 4  ;;  %s50_s29 = int_to_ptr.hbm [resolvable:$true] %s49_s29 }
  0x10   :  { %31 = vsyncpa [#allocation9], 0  ;;  %s2454_s0 = smov [#allocation10]   ;;  %s73_s11 = sshll.u32 %s3381_s3, 4  ;;  %s74_s11 = int_to_ptr.hbm [resolvable:$true] %s73_s11 }
  0x11   :  { %s51_s30 = sshll.u32 %s2454_s0, 4  ;;  %s2455_s1 = smov 1024   ;;  %s52_s30 = int_to_ptr.vmem [resolvable:$true] %s51_s30 }
  0x12   :  { %s2456_s20 = smov 64   ;;  %s2457_s21 = smov [#allocation13]  }
  0x13   :  { %57 = dma.hbm_to_vmem [thread:$0]  %s50_s29, 2048, %s52_s30, [#allocation11], %s2455_s1, %s2455_s1, %s2456_s20  }
  0x14   :  { %s75_s22 = sshll.u32 %s2457_s21, 4  ;;  %s2458_s23 = smov 512   ;;  %s76_s22 = int_to_ptr.vmem [resolvable:$true] %s75_s22 }
  0x15   :  { %s2459_s24 = smov 32   ;;  %s99_s27 = sshll.u32 %s3383_s5, 4  ;;  %s100_s27 = int_to_ptr.hbm [resolvable:$true] %s99_s27 }
  0x16   :  { %81 = dma.hbm_to_vmem [thread:$0]  %s74_s11, 8192, %s76_s22, [#allocation14], %s2458_s23, %s2458_s23, %s2459_s24  }
  0x17   :  { %s2460_s28 = smov [#allocation16]   ;;  %s125_s30 = sshll.u32 %s3385_s7, 4  ;;  %s126_s30 = int_to_ptr.hbm [resolvable:$true] %s125_s30 }
  0x18   :  { %s101_s3 = sshll.u32 %s2460_s28, 4  ;;  %s2461_s18 = smov 128   ;;  %s102_s3 = int_to_ptr.vmem [resolvable:$true] %s101_s3 }
  0x19   :  { %s2462_s19 = smov 8   ;;  %s2463_s11 = smov [#allocation19]  }
  0x1a   :  { %107 = dma.hbm_to_vmem [thread:$0]  %s100_s27, 2048, %s102_s3, [#allocation17], %s2461_s18, %s2461_s18, %s2462_s19  }
  0x1b   :  { %s127_s1 = sshll.u32 %s2463_s11, 4  ;;  %s157_s5 = sshll.u32 %s3390_s12, 4  ;;  %s128_s1 = int_to_ptr.vmem [resolvable:$true] %s127_s1  ;;  %s158_s5 = int_to_ptr.hbm [resolvable:$true] %s157_s5 }
  0x1c   :  { %133 = dma.hbm_to_vmem [thread:$0]  %s126_s30, 2048, %s128_s1, [#allocation20], %s2461_s18, %s2461_s18, %s2462_s19  }
  0x1d   :  { %s2464_s7 = smov [#allocation22]   ;;  %s3399_s28 = sld [smem:[#allocation130_spill]] }
  0x1e   :  { %s159_s22 = sshll.u32 %s2464_s7, 4  ;;  %s2465_s3 = smov 256   ;;  %s160_s22 = int_to_ptr.vmem [resolvable:$true] %s159_s22 }
  0x1f   :  { %s2466_s0 = smov 16   ;;  %s2467_s12 = smov [#allocation7]  }
  0x20   :  { %165 = dma.hbm_to_vmem [thread:$0]  %s158_s5, 4096, %s160_s22, [#allocation23], %s2465_s3, %s2465_s3, %s2466_s0  }
  0x21   :  { %s38_s29 = sshll.u32 %s2467_s12, 4  ;;  %s63_s30 = sshll.u32 %s3380_s2, 4  ;;  %s39_s29 = int_to_ptr.vmem [resolvable:$true] %s38_s29  ;;  %s64_s30 = int_to_ptr.hbm [resolvable:$true] %s63_s30 }
  0x22   :  { %s86_s7 = sshll.u32 %s3382_s4, 4  ;;  %s2468_s25 = smov [#allocation12]   ;;  %s87_s7 = int_to_ptr.hbm [resolvable:$true] %s86_s7 }
  0x23   :  { %s36_s27 = sshll.u32 %s3399_s28, 4  ;;  %s65_s26 = sshll.u32 %s2468_s25, 4  ;;  %s37_s27 = int_to_ptr.hbm [resolvable:$true] %s36_s27  ;;  %s66_s26 = int_to_ptr.vmem [resolvable:$true] %s65_s26 }
  0x24   :  { %44 = dma.hbm_to_vmem [thread:$0]  %s37_s27, 1024, %s39_s29, [#allocation8], %s2461_s18, %s2461_s18, %s2462_s19  }
  0x25   :  { %68 = dma.hbm_to_vmem [thread:$0]  %s64_s30, 128, %s66_s26, [#allocation11]  }
  0x26   :  { %s2469_s5 = smov [#allocation15]   ;;  %s112_s2 = sshll.u32 %s3384_s6, 4  ;;  %s113_s2 = int_to_ptr.hbm [resolvable:$true] %s112_s2 }
  0x27   :  { %s88_s22 = sshll.u32 %s2469_s5, 4  ;;  %s138_s4 = sshll.u32 %s3386_s8, 4  ;;  %s89_s22 = int_to_ptr.vmem [resolvable:$true] %s88_s22  ;;  %s139_s4 = int_to_ptr.hbm [resolvable:$true] %s138_s4 }
  0x28   :  { %94 = dma.hbm_to_vmem [thread:$0]  %s87_s7, 8192, %s89_s22, [#allocation14], %s2458_s23, %s2458_s23, %s2459_s24  }
  0x29   :  { %s2470_s11 = smov [#allocation18]   ;;  %s2471_s30 = smov [#allocation21]  }
  0x2a   :  { %s114_s20 = sshll.u32 %s2470_s11, 4  ;;  %s140_s6 = sshll.u32 %s2471_s30, 4  ;;  %s115_s20 = int_to_ptr.vmem [resolvable:$true] %s114_s20  ;;  %s141_s6 = int_to_ptr.vmem [resolvable:$true] %s140_s6 }
  0x2b   :  { %120 = dma.hbm_to_vmem [thread:$0]  %s113_s2, 2048, %s115_s20, [#allocation17], %s2461_s18, %s2461_s18, %s2462_s19  }
  0x2c   :  { %s170_s25 = sshll.u32 %s3391_s13, 4  ;;  %s185_s24 = sshll.u32 %s3393_s15, 4  ;;  %s171_s25 = int_to_ptr.hbm [resolvable:$true] %s170_s25  ;;  %s186_s24 = int_to_ptr.hbm [resolvable:$true] %s185_s24 }
  0x2d   :  { %146 = dma.hbm_to_vmem [thread:$0]  %s139_s4, 2048, %s141_s6, [#allocation20], %s2461_s18, %s2461_s18, %s2462_s19  }
  0x2e   :  { %s2472_s7 = smov [#allocation24]   ;;  %s2473_s5 = smov [#allocation25]  }
  0x2f   :  { %s172_s26 = sshll.u32 %s2472_s7, 4  ;;  %s187_s13 = sshll.u32 %s2473_s5, 4  ;;  %s173_s26 = int_to_ptr.vmem [resolvable:$true] %s172_s26  ;;  %s188_s13 = int_to_ptr.vmem [resolvable:$true] %s187_s13 }
  0x30   :  { %178 = dma.hbm_to_vmem [thread:$0]  %s171_s25, 4096, %s173_s26, [#allocation23], %s2465_s3, %s2465_s3, %s2466_s0  }
  0x31   :  { %193 = dma.hbm_to_vmem [thread:$0]  %s186_s24, 4096, %s188_s13, [#allocation26], %s2461_s18, %s2461_s18, %s2462_s19  }
  0x32   :  { %2418 = dma.done.wait [#allocation8], 1024  }
  0x33   :  { %2419 = vsyncadd [#allocation8], 4294966272 }
  0x34   :  { %2420 = dma.done.wait [#allocation11], 2176  }
  0x35   :  { %2421 = vsyncadd [#allocation11], 4294965120 }
  0x36   :  { %2422 = dma.done.wait [#allocation14], 16384  }
  0x37   :  { %2423 = vsyncadd [#allocation14], 4294950912 }
  0x38   :  { %2424 = dma.done.wait [#allocation17], 4096  }
  0x39   :  { %2425 = vsyncadd [#allocation17], 4294963200 }
  0x3a   :  { %2426 = dma.done.wait [#allocation20], 4096  }
  0x3b   :  { %2427 = vsyncadd [#allocation20], 4294963200 }
  0x3c   :  { %2428 = dma.done.wait [#allocation23], 8192  }
  0x3d   :  { %2429 = vsyncadd [#allocation23], 4294959104 }
  0x3e   :  { %2430 = dma.done.wait [#allocation26], 4096  }
  0x3f   :  { %2431 = vsyncadd [#allocation26], 4294963200  ;;  %v2635_v1 = vld [vmem:[#allocation13] sm:$0xff]  ;;  %v2637_v2 = vld [vmem:[#allocation13 + $0x8] sm:$0xff]  ;;  %vm286_vm0 = vcmask 130048   ;;  %s3063_s15 = smov 0  }
  0x40   :  { %3400 = vst [vmem:[#allocation36_spill] sm:$0xff] %v2635_v1  ;;  %v2639_v3 = vld [vmem:[#allocation13 + $0x10] sm:$0xff]  ;;  %v2641_v4 = vld [vmem:[#allocation13 + $0x18] sm:$0xff]  ;;  %v2643_v5 = vld [vmem:[#allocation13 + $0x20] sm:$0xff] }
  0x41   :  { %3401 = vst [vmem:[#allocation37_spill] sm:$0xff] %v2637_v2  ;;  %v2645_v6 = vld [vmem:[#allocation13 + $0x28] sm:$0xff]  ;;  %v2647_v7 = vld [vmem:[#allocation13 + $0x30] sm:$0xff]  ;;  %v2649_v8 = vld [vmem:[#allocation13 + $0x38] sm:$0xff] }
  0x42   :  { %3402 = vst [vmem:[#allocation38_spill] sm:$0xff] %v2639_v3  ;;  %v2651_v9 = vld [vmem:[#allocation13 + $0x40] sm:$0xff]  ;;  %v2653_v10 = vld [vmem:[#allocation13 + $0x48] sm:$0xff]  ;;  %v2655_v11 = vld [vmem:[#allocation13 + $0x50] sm:$0xff] }
  0x43   :  { %3403 = vst [vmem:[#allocation39_spill] sm:$0xff] %v2641_v4  ;;  %v2657_v12 = vld [vmem:[#allocation13 + $0x58] sm:$0xff]  ;;  %v2659_v13 = vld [vmem:[#allocation13 + $0x60] sm:$0xff]  ;;  %v2661_v14 = vld [vmem:[#allocation13 + $0x68] sm:$0xff] }
  0x44   :  { %3404 = vst [vmem:[#allocation40_spill] sm:$0xff] %v2643_v5  ;;  %v2663_v15 = vld [vmem:[#allocation13 + $0x70] sm:$0xff]  ;;  %v2665_v16 = vld [vmem:[#allocation13 + $0x78] sm:$0xff]  ;;  %v2667_v17 = vld [vmem:[#allocation13 + $0x80] sm:$0xff] }
  0x45   :  { %3405 = vst [vmem:[#allocation41_spill] sm:$0xff] %v2645_v6  ;;  %v2669_v18 = vld [vmem:[#allocation13 + $0x88] sm:$0xff]  ;;  %v2671_v19 = vld [vmem:[#allocation13 + $0x90] sm:$0xff]  ;;  %v2673_v20 = vld [vmem:[#allocation13 + $0x98] sm:$0xff] }
  0x46   :  { %3406 = vst [vmem:[#allocation42_spill] sm:$0xff] %v2647_v7  ;;  %v2675_v21 = vld [vmem:[#allocation13 + $0xa0] sm:$0xff]  ;;  %v2677_v22 = vld [vmem:[#allocation13 + $0xa8] sm:$0xff]  ;;  %v2679_v23 = vld [vmem:[#allocation13 + $0xb0] sm:$0xff] }
  0x47   :  { %3407 = vst [vmem:[#allocation43_spill] sm:$0xff] %v2649_v8  ;;  %v2681_v24 = vld [vmem:[#allocation13 + $0xb8] sm:$0xff]  ;;  %v2683_v25 = vld [vmem:[#allocation13 + $0xc0] sm:$0xff]  ;;  %v2685_v26 = vld [vmem:[#allocation13 + $0xc8] sm:$0xff] }
  0x48   :  { %3408 = vst [vmem:[#allocation44_spill] sm:$0xff] %v2651_v9  ;;  %v2687_v27 = vld [vmem:[#allocation13 + $0xd0] sm:$0xff]  ;;  %v2689_v28 = vld [vmem:[#allocation13 + $0xd8] sm:$0xff]  ;;  %v2691_v29 = vld [vmem:[#allocation13 + $0xe0] sm:$0xff] }
  0x49   :  { %3409 = vst [vmem:[#allocation45_spill] sm:$0xff] %v2653_v10  ;;  %v2693_v30 = vld [vmem:[#allocation13 + $0xe8] sm:$0xff]  ;;  %v2695_v31 = vld [vmem:[#allocation13 + $0xf0] sm:$0xff]  ;;  %v2697_v32 = vld [vmem:[#allocation13 + $0xf8] sm:$0xff] }
  0x4a   :  { %3410 = vst [vmem:[#allocation46_spill] sm:$0xff] %v2655_v11  ;;  %v2699_v33 = vld [vmem:[#allocation13 + $0x100] sm:$0xff]  ;;  %v2701_v34 = vld [vmem:[#allocation13 + $0x108] sm:$0xff]  ;;  %v2703_v35 = vld [vmem:[#allocation13 + $0x110] sm:$0xff] }
  0x4b   :  { %3411 = vst [vmem:[#allocation47_spill] sm:$0xff] %v2657_v12  ;;  %v2705_v36 = vld [vmem:[#allocation13 + $0x118] sm:$0xff]  ;;  %v2707_v37 = vld [vmem:[#allocation13 + $0x120] sm:$0xff]  ;;  %v2709_v38 = vld [vmem:[#allocation13 + $0x128] sm:$0xff] }
  0x4c   :  { %3412 = vst [vmem:[#allocation48_spill] sm:$0xff] %v2659_v13  ;;  %v2711_v39 = vld [vmem:[#allocation13 + $0x130] sm:$0xff]  ;;  %v2713_v40 = vld [vmem:[#allocation13 + $0x138] sm:$0xff]  ;;  %v2715_v41 = vld [vmem:[#allocation13 + $0x140] sm:$0xff] }
  0x4d   :  { %3413 = vst [vmem:[#allocation49_spill] sm:$0xff] %v2661_v14  ;;  %v2717_v42 = vld [vmem:[#allocation13 + $0x148] sm:$0xff]  ;;  %v2719_v43 = vld [vmem:[#allocation13 + $0x150] sm:$0xff]  ;;  %v2721_v44 = vld [vmem:[#allocation13 + $0x158] sm:$0xff] }
  0x4e   :  { %3414 = vst [vmem:[#allocation50_spill] sm:$0xff] %v2663_v15  ;;  %v2723_v45 = vld [vmem:[#allocation13 + $0x160] sm:$0xff]  ;;  %v2725_v46 = vld [vmem:[#allocation13 + $0x168] sm:$0xff]  ;;  %v2727_v47 = vld [vmem:[#allocation13 + $0x170] sm:$0xff] }
  0x4f   :  { %3415 = vst [vmem:[#allocation51_spill] sm:$0xff] %v2665_v16  ;;  %v2729_v48 = vld [vmem:[#allocation13 + $0x178] sm:$0xff]  ;;  %v2731_v49 = vld [vmem:[#allocation13 + $0x180] sm:$0xff]  ;;  %v2733_v50 = vld [vmem:[#allocation13 + $0x188] sm:$0xff] }
  0x50   :  { %3416 = vst [vmem:[#allocation52_spill] sm:$0xff] %v2667_v17  ;;  %v2735_v51 = vld [vmem:[#allocation13 + $0x190] sm:$0xff]  ;;  %v2737_v52 = vld [vmem:[#allocation13 + $0x198] sm:$0xff]  ;;  %v2739_v53 = vld [vmem:[#allocation13 + $0x1a0] sm:$0xff] }
  0x51   :  { %3417 = vst [vmem:[#allocation53_spill] sm:$0xff] %v2669_v18  ;;  %v2741_v54 = vld [vmem:[#allocation13 + $0x1a8] sm:$0xff]  ;;  %v2743_v55 = vld [vmem:[#allocation13 + $0x1b0] sm:$0xff]  ;;  %v2745_v56 = vld [vmem:[#allocation13 + $0x1b8] sm:$0xff] }
  0x52   :  { %3418 = vst [vmem:[#allocation54_spill] sm:$0xff] %v2671_v19  ;;  %v2747_v57 = vld [vmem:[#allocation13 + $0x1c0] sm:$0xff]  ;;  %v2749_v58 = vld [vmem:[#allocation13 + $0x1c8] sm:$0xff]  ;;  %v2751_v59 = vld [vmem:[#allocation13 + $0x1d0] sm:$0xff] }
  0x53   :  { %3419 = vst [vmem:[#allocation55_spill] sm:$0xff] %v2673_v20  ;;  %v2753_v60 = vld [vmem:[#allocation13 + $0x1d8] sm:$0xff]  ;;  %v2755_v61 = vld [vmem:[#allocation13 + $0x1e0] sm:$0xff]  ;;  %v2757_v62 = vld [vmem:[#allocation13 + $0x1e8] sm:$0xff] }
  0x54   :  { %3420 = vst [vmem:[#allocation56_spill] sm:$0xff] %v2675_v21  ;;  %v2759_v63 = vld [vmem:[#allocation13 + $0x1f0] sm:$0xff]  ;;  %v2761_v0 = vld [vmem:[#allocation13 + $0x1f8] sm:$0xff]  ;;  %v2763_v3 = vld [vmem:[#allocation15] sm:$0xff] }
  0x55   :  { %3421 = vst [vmem:[#allocation57_spill] sm:$0xff] %v2677_v22  ;;  %v2765_v4 = vld [vmem:[#allocation15 + $0x8] sm:$0xff]  ;;  %v2767_v2 = vld [vmem:[#allocation15 + $0x10] sm:$0xff]  ;;  %v2769_v1 = vld [vmem:[#allocation15 + $0x18] sm:$0xff] }
  0x56   :  { %3422 = vst [vmem:[#allocation58_spill] sm:$0xff] %v2679_v23  ;;  %v2771_v7 = vld [vmem:[#allocation15 + $0x20] sm:$0xff]  ;;  %v2773_v8 = vld [vmem:[#allocation15 + $0x28] sm:$0xff]  ;;  %v2775_v6 = vld [vmem:[#allocation15 + $0x30] sm:$0xff] }
  0x57   :  { %3423 = vst [vmem:[#allocation59_spill] sm:$0xff] %v2681_v24  ;;  %v2777_v5 = vld [vmem:[#allocation15 + $0x38] sm:$0xff]  ;;  %v2779_v11 = vld [vmem:[#allocation15 + $0x40] sm:$0xff]  ;;  %v2781_v12 = vld [vmem:[#allocation15 + $0x48] sm:$0xff] }
  0x58   :  { %3424 = vst [vmem:[#allocation60_spill] sm:$0xff] %v2683_v25  ;;  %v2783_v10 = vld [vmem:[#allocation15 + $0x50] sm:$0xff] }
  0x59   :  { %3425 = vst [vmem:[#allocation61_spill] sm:$0xff] %v2685_v26  ;;  %v255_v9 = vld [vmem:[#allocation10 + $0x18] sm:$0xff] }
  0x5a   :  { %3426 = vst [vmem:[#allocation62_spill] sm:$0xff] %v2687_v27 }
  0x5b   :  { %3427 = vst [vmem:[#allocation63_spill] sm:$0xff] %v2689_v28 }
  0x5c   :  { %3428 = vst [vmem:[#allocation64_spill] sm:$0xff] %v2691_v29 }
  0x5d   :  { %3429 = vst [vmem:[#allocation65_spill] sm:$0xff] %v2761_v0 }
  0x5e   :  { %3430 = vst [vmem:[#allocation66_spill] sm:$0xff] %v2763_v3  ;;  %v2785_v3 = vld [vmem:[#allocation15 + $0x58] sm:$0xff] }
  0x5f   :  { %3431 = vst [vmem:[#allocation67_spill] sm:$0xff] %v2765_v4  ;;  %v2787_v4 = vld [vmem:[#allocation15 + $0x60] sm:$0xff] }
  0x60   :  { %3432 = vst [vmem:[#allocation68_spill] sm:$0xff] %v2767_v2  ;;  %v2789_v2 = vld [vmem:[#allocation15 + $0x68] sm:$0xff] }
  0x61   :  { %3433 = vst [vmem:[#allocation69_spill] sm:$0xff] %v2769_v1  ;;  %v2791_v1 = vld [vmem:[#allocation15 + $0x70] sm:$0xff] }
  0x62   :  { %3434 = vst [vmem:[#allocation70_spill] sm:$0xff] %v2771_v7  ;;  %v2793_v7 = vld [vmem:[#allocation15 + $0x78] sm:$0xff] }
  0x63   :  { %3435 = vst [vmem:[#allocation71_spill] sm:$0xff] %v2773_v8  ;;  %v2795_v8 = vld [vmem:[#allocation15 + $0x80] sm:$0xff] }
  0x64   :  { %3436 = vst [vmem:[#allocation72_spill] sm:$0xff] %v2775_v6  ;;  %v2797_v6 = vld [vmem:[#allocation15 + $0x88] sm:$0xff] }
  0x65   :  { %3437 = vst [vmem:[#allocation73_spill] sm:$0xff] %v2777_v5  ;;  %v2799_v5 = vld [vmem:[#allocation15 + $0x90] sm:$0xff] }
  0x66   :  { %3438 = vst [vmem:[#allocation74_spill] sm:$0xff] %v2779_v11  ;;  %v2801_v11 = vld [vmem:[#allocation15 + $0x98] sm:$0xff] }
  0x67   :  { %3439 = vst [vmem:[#allocation75_spill] sm:$0xff] %v2781_v12  ;;  %v2803_v12 = vld [vmem:[#allocation15 + $0xa0] sm:$0xff] }
  0x68   :  { %3440 = vst [vmem:[#allocation76_spill] sm:$0xff] %v2783_v10  ;;  %v2805_v10 = vld [vmem:[#allocation15 + $0xa8] sm:$0xff] }
  0x69   :  { %3441 = vst [vmem:[#allocation77_spill] sm:$0xff] %v2785_v3  ;;  %v2807_v3 = vld [vmem:[#allocation15 + $0xb0] sm:$0xff] }
  0x6a   :  { %3442 = vst [vmem:[#allocation78_spill] sm:$0xff] %v2787_v4  ;;  %v2809_v4 = vld [vmem:[#allocation15 + $0xb8] sm:$0xff] }
  0x6b   :  { %3443 = vst [vmem:[#allocation79_spill] sm:$0xff] %v2789_v2  ;;  %v2811_v2 = vld [vmem:[#allocation15 + $0xc0] sm:$0xff] }
  0x6c   :  { %3444 = vst [vmem:[#allocation80_spill] sm:$0xff] %v2791_v1  ;;  %v2813_v1 = vld [vmem:[#allocation15 + $0xc8] sm:$0xff] }
  0x6d   :  { %3445 = vst [vmem:[#allocation81_spill] sm:$0xff] %v2793_v7  ;;  %v2815_v7 = vld [vmem:[#allocation15 + $0xd0] sm:$0xff] }
  0x6e   :  { %3446 = vst [vmem:[#allocation82_spill] sm:$0xff] %v2795_v8  ;;  %v2817_v8 = vld [vmem:[#allocation15 + $0xd8] sm:$0xff] }
  0x6f   :  { %3447 = vst [vmem:[#allocation83_spill] sm:$0xff] %v2797_v6  ;;  %v2819_v6 = vld [vmem:[#allocation15 + $0xe0] sm:$0xff] }
  0x70   :  { %3448 = vst [vmem:[#allocation84_spill] sm:$0xff] %v2799_v5  ;;  %v2821_v5 = vld [vmem:[#allocation15 + $0xe8] sm:$0xff] }
  0x71   :  { %3449 = vst [vmem:[#allocation85_spill] sm:$0xff] %v2801_v11  ;;  %v2823_v11 = vld [vmem:[#allocation15 + $0xf0] sm:$0xff] }
  0x72   :  { %3450 = vst [vmem:[#allocation86_spill] sm:$0xff] %v2803_v12  ;;  %v2825_v12 = vld [vmem:[#allocation15 + $0xf8] sm:$0xff] }
  0x73   :  { %3451 = vst [vmem:[#allocation87_spill] sm:$0xff] %v2805_v10  ;;  %v2827_v10 = vld [vmem:[#allocation15 + $0x100] sm:$0xff] }
  0x74   :  { %3452 = vst [vmem:[#allocation88_spill] sm:$0xff] %v2807_v3  ;;  %v2829_v3 = vld [vmem:[#allocation15 + $0x108] sm:$0xff] }
  0x75   :  { %3453 = vst [vmem:[#allocation89_spill] sm:$0xff] %v2809_v4  ;;  %v2831_v4 = vld [vmem:[#allocation15 + $0x110] sm:$0xff] }
  0x76   :  { %3454 = vst [vmem:[#allocation90_spill] sm:$0xff] %v2811_v2  ;;  %v2833_v2 = vld [vmem:[#allocation15 + $0x118] sm:$0xff] }
  0x77   :  { %3455 = vst [vmem:[#allocation91_spill] sm:$0xff] %v2813_v1  ;;  %v2835_v1 = vld [vmem:[#allocation15 + $0x120] sm:$0xff] }
  0x78   :  { %3456 = vst [vmem:[#allocation92_spill] sm:$0xff] %v2815_v7  ;;  %v2837_v7 = vld [vmem:[#allocation15 + $0x128] sm:$0xff] }
  0x79   :  { %3457 = vst [vmem:[#allocation93_spill] sm:$0xff] %v2817_v8  ;;  %v2839_v8 = vld [vmem:[#allocation15 + $0x130] sm:$0xff] }
  0x7a   :  { %3458 = vst [vmem:[#allocation94_spill] sm:$0xff] %v2819_v6  ;;  %v2841_v6 = vld [vmem:[#allocation15 + $0x138] sm:$0xff] }
  0x7b   :  { %3459 = vst [vmem:[#allocation95_spill] sm:$0xff] %v2821_v5  ;;  %v2843_v5 = vld [vmem:[#allocation15 + $0x140] sm:$0xff] }
  0x7c   :  { %3460 = vst [vmem:[#allocation96_spill] sm:$0xff] %v2823_v11  ;;  %v2845_v11 = vld [vmem:[#allocation15 + $0x148] sm:$0xff] }
  0x7d   :  { %3461 = vst [vmem:[#allocation97_spill] sm:$0xff] %v2825_v12  ;;  %v2847_v12 = vld [vmem:[#allocation15 + $0x150] sm:$0xff] }
  0x7e   :  { %3462 = vst [vmem:[#allocation98_spill] sm:$0xff] %v2827_v10  ;;  %v2849_v10 = vld [vmem:[#allocation15 + $0x158] sm:$0xff] }
  0x7f   :  { %3463 = vst [vmem:[#allocation99_spill] sm:$0xff] %v2829_v3  ;;  %v2851_v3 = vld [vmem:[#allocation15 + $0x160] sm:$0xff] }
  0x80   :  { %3464 = vst [vmem:[#allocation100_spill] sm:$0xff] %v2831_v4  ;;  %v2853_v4 = vld [vmem:[#allocation15 + $0x168] sm:$0xff] }
  0x81   :  { %3465 = vst [vmem:[#allocation101_spill] sm:$0xff] %v2833_v2  ;;  %v2855_v2 = vld [vmem:[#allocation15 + $0x170] sm:$0xff] }
  0x82   :  { %3466 = vst [vmem:[#allocation102_spill] sm:$0xff] %v2835_v1  ;;  %v2857_v1 = vld [vmem:[#allocation15 + $0x178] sm:$0xff] }
  0x83   :  { %3467 = vst [vmem:[#allocation103_spill] sm:$0xff] %v2837_v7  ;;  %v2859_v7 = vld [vmem:[#allocation15 + $0x180] sm:$0xff] }
  0x84   :  { %3468 = vst [vmem:[#allocation104_spill] sm:$0xff] %v2839_v8  ;;  %v2861_v8 = vld [vmem:[#allocation15 + $0x188] sm:$0xff] }
  0x85   :  { %3469 = vst [vmem:[#allocation105_spill] sm:$0xff] %v2841_v6  ;;  %v2863_v6 = vld [vmem:[#allocation15 + $0x190] sm:$0xff] }
  0x86   :  { %3470 = vst [vmem:[#allocation106_spill] sm:$0xff] %v2843_v5  ;;  %v2865_v5 = vld [vmem:[#allocation15 + $0x198] sm:$0xff] }
  0x87   :  { %3471 = vst [vmem:[#allocation107_spill] sm:$0xff] %v2845_v11  ;;  %v2867_v11 = vld [vmem:[#allocation15 + $0x1a0] sm:$0xff] }
  0x88   :  { %3472 = vst [vmem:[#allocation108_spill] sm:$0xff] %v2847_v12  ;;  %v2869_v12 = vld [vmem:[#allocation15 + $0x1a8] sm:$0xff] }
  0x89   :  { %3473 = vst [vmem:[#allocation109_spill] sm:$0xff] %v2849_v10  ;;  %v2871_v10 = vld [vmem:[#allocation15 + $0x1b0] sm:$0xff] }
  0x8a   :  { %3474 = vst [vmem:[#allocation110_spill] sm:$0xff] %v2851_v3  ;;  %v2873_v3 = vld [vmem:[#allocation15 + $0x1b8] sm:$0xff] }
  0x8b   :  { %3475 = vst [vmem:[#allocation111_spill] sm:$0xff] %v2853_v4  ;;  %v2875_v4 = vld [vmem:[#allocation15 + $0x1c0] sm:$0xff] }
  0x8c   :  { %3476 = vst [vmem:[#allocation112_spill] sm:$0xff] %v2855_v2  ;;  %v2877_v2 = vld [vmem:[#allocation15 + $0x1c8] sm:$0xff] }
  0x8d   :  { %3477 = vst [vmem:[#allocation113_spill] sm:$0xff] %v2857_v1  ;;  %v2879_v1 = vld [vmem:[#allocation15 + $0x1d0] sm:$0xff] }
  0x8e   :  { %3478 = vst [vmem:[#allocation114_spill] sm:$0xff] %v2859_v7  ;;  %v2881_v7 = vld [vmem:[#allocation15 + $0x1d8] sm:$0xff] }
  0x8f   :  { %3479 = vst [vmem:[#allocation115_spill] sm:$0xff] %v2861_v8  ;;  %v2883_v8 = vld [vmem:[#allocation15 + $0x1e0] sm:$0xff] }
  0x90   :  { %3480 = vst [vmem:[#allocation116_spill] sm:$0xff] %v2863_v6  ;;  %v2885_v6 = vld [vmem:[#allocation15 + $0x1e8] sm:$0xff] }
  0x91   :  { %3481 = vst [vmem:[#allocation117_spill] sm:$0xff] %v2865_v5  ;;  %v2887_v5 = vld [vmem:[#allocation15 + $0x1f0] sm:$0xff] }
  0x92   :  { %3482 = vst [vmem:[#allocation118_spill] sm:$0xff] %v2867_v11  ;;  %v2889_v11 = vld [vmem:[#allocation15 + $0x1f8] sm:$0xff] }
  0x93   :  { %3483 = vst [vmem:[#allocation119_spill] sm:$0xff] %v2869_v12  ;;  %v262_v12 = vld [vmem:[#allocation10 + $0x50] sm:$0xff] }
  0x94   :  { %3484 = vst [vmem:[#allocation120_spill] sm:$0xff] %v2871_v10  ;;  %407 = vmatpush.msra.mxu2 %v262_v12  ;;  %v263_v10 = vld [vmem:[#allocation10 + $0x58] sm:$0xff]  ;;  %v252_v12 = vld [vmem:[#allocation10] sm:$0xff] }
  0x95   :  { %3485 = vst [vmem:[#allocation121_spill] sm:$0xff] %v2873_v3  ;;  %v254_v3 = vld [vmem:[#allocation10 + $0x10] sm:$0xff]  ;;  %448 = vmatpush.msra.mxu3 %v263_v10 }
  0x96   :  { %3486 = vst [vmem:[#allocation122_spill] sm:$0xff] %v2875_v4  ;;  %408 = vmatpush.msra.mxu2 %v254_v3  ;;  %v260_v4 = vld [vmem:[#allocation10 + $0x40] sm:$0xff]  ;;  %v258_v10 = vld [vmem:[#allocation10 + $0x30] sm:$0xff]  ;;  %v265_v3 = vld [vmem:[#allocation10 + $0x68] sm:$0xff] }
  0x97   :  { %3487 = vst [vmem:[#allocation123_spill] sm:$0xff] %v2877_v2  ;;  %v2891_v2 = vld [vmem:[#allocation7] sm:$0xff]  ;;  %449 = vmatpush.msra.mxu3 %v255_v9  ;;  %325 = vmatpush.msra.mxu0 %v260_v4  ;;  %v245_v9 = vld [vmem:[#allocation7 + $0x8] sm:$0xff] }
  0x98   :  { %3488 = vst [vmem:[#allocation124_spill] sm:$0xff] %v2879_v1  ;;  %v266_v1 = vld [vmem:[#allocation10 + $0x70] sm:$0xff]  ;;  %1885 = vmatmul.msk.f32.vlgmr.msra.gmra.mxu2 %vm286_vm0, %v2891_v2  ;;  %1893 = vmatmul.msk.f32.vlgmr.msra.gmra.mxu3 %vm286_vm0, %v2891_v2  ;;  %v257_v4 = vld [vmem:[#allocation10 + $0x28] sm:$0xff] }
  0x99   :  { %3489 = vst [vmem:[#allocation125_spill] sm:$0xff] %v2881_v7  ;;  %v267_v7 = vld [vmem:[#allocation10 + $0x78] sm:$0xff]  ;;  %571 = vmatpush.msrb.mxu2 %v266_v1  ;;  %326 = vmatpush.msra.mxu0 %v252_v12  ;;  %v256_v1 = vld [vmem:[#allocation10 + $0x20] sm:$0xff] }
  0x9a   :  { %3490 = vst [vmem:[#allocation126_spill] sm:$0xff] %v2883_v8  ;;  %612 = vmatpush.msrb.mxu3 %v267_v7  ;;  %v264_v8 = vld [vmem:[#allocation10 + $0x60] sm:$0xff]  ;;  %1869 = vmatmul.msk.f32.vlgmr.msra.gmra.mxu0 %vm286_vm0, %v2891_v2  ;;  %v251_v12 = vld [vmem:[#allocation7 + $0x38] sm:$0xff] }
  0x9b   :  { %3491 = vst [vmem:[#allocation127_spill] sm:$0xff] %v2885_v6  ;;  %v259_v6 = vld [vmem:[#allocation10 + $0x38] sm:$0xff]  ;;  %572 = vmatpush.msrb.mxu2 %v258_v10  ;;  %489 = vmatpush.msrb.mxu0 %v264_v8  ;;  %v248_v7 = vld [vmem:[#allocation7 + $0x20] sm:$0xff]  ;;  %v249_v8 = vld [vmem:[#allocation7 + $0x28] sm:$0xff] }
  0x9c   :  { %3492 = vst [vmem:[#allocation128_spill] sm:$0xff] %v2887_v5  ;;  %v261_v5 = vld [vmem:[#allocation10 + $0x48] sm:$0xff]  ;;  %613 = vmatpush.msrb.mxu3 %v259_v6  ;;  %v247_v6 = vld [vmem:[#allocation7 + $0x18] sm:$0xff] }
  0x9d   :  { %3493 = vst [vmem:[#allocation129_spill] sm:$0xff] %v2889_v11  ;;  %v253_v11 = vld [vmem:[#allocation10 + $0x8] sm:$0xff]  ;;  %366 = vmatpush.msra.mxu1 %v261_v5  ;;  %490 = vmatpush.msrb.mxu0 %v256_v1  ;;  %v246_v5 = vld [vmem:[#allocation7 + $0x10] sm:$0xff] }
  0x9f   :  { %367 = vmatpush.msra.mxu1 %v253_v11  ;;  %v250_v11 = vld [vmem:[#allocation7 + $0x30] sm:$0xff] }
  0xa0   :  { %1877 = vmatmul.msk.f32.vlgmr.msra.gmra.mxu1 %vm286_vm0, %v2891_v2  ;;  %1886 = vmatmul.msk.f32.gmra.mxu2 %vm286_vm0, %v245_v9 }
  0xa1   :  { %530 = vmatpush.msrb.mxu1 %v265_v3  ;;  %1894 = vmatmul.msk.f32.gmra.mxu3 %vm286_vm0, %v245_v9 }
  0xa2   :  { %1870 = vmatmul.msk.f32.gmra.mxu0 %vm286_vm0, %v245_v9 }
  0xa3   :  { %531 = vmatpush.msrb.mxu1 %v257_v4 }
  0xa8   :  { %1878 = vmatmul.msk.f32.gmra.mxu1 %vm286_vm0, %v245_v9  ;;  %1887 = vmatmul.msk.f32.gmra.mxu2 %vm286_vm0, %v246_v5 }
  0xa9   :  { %1895 = vmatmul.msk.f32.gmra.mxu3 %vm286_vm0, %v246_v5 }
  0xaa   :  { %1871 = vmatmul.msk.f32.gmra.mxu0 %vm286_vm0, %v246_v5 }
  0xb0   :  { %1879 = vmatmul.msk.f32.gmra.mxu1 %vm286_vm0, %v246_v5  ;;  %1888 = vmatmul.msk.f32.gmra.mxu2 %vm286_vm0, %v247_v6 }
  0xb1   :  { %1896 = vmatmul.msk.f32.gmra.mxu3 %vm286_vm0, %v247_v6 }
  0xb2   :  { %1872 = vmatmul.msk.f32.gmra.mxu0 %vm286_vm0, %v247_v6 }
  0xb8   :  { %1880 = vmatmul.msk.f32.gmra.mxu1 %vm286_vm0, %v247_v6  ;;  %1889 = vmatmul.msk.f32.gmra.mxu2 %vm286_vm0, %v248_v7 }
  0xb9   :  { %1897 = vmatmul.msk.f32.gmra.mxu3 %vm286_vm0, %v248_v7 }
  0xba   :  { %1873 = vmatmul.msk.f32.gmra.mxu0 %vm286_vm0, %v248_v7 }
  0xc0   :  { %1881 = vmatmul.msk.f32.gmra.mxu1 %vm286_vm0, %v248_v7  ;;  %1890 = vmatmul.msk.f32.gmra.mxu2 %vm286_vm0, %v249_v8 }
  0xc1   :  { %1898 = vmatmul.msk.f32.gmra.mxu3 %vm286_vm0, %v249_v8 }
  0xc2   :  { %1874 = vmatmul.msk.f32.gmra.mxu0 %vm286_vm0, %v249_v8 }
  0xc8   :  { %1882 = vmatmul.msk.f32.gmra.mxu1 %vm286_vm0, %v249_v8  ;;  %1891 = vmatmul.msk.f32.gmra.mxu2 %vm286_vm0, %v250_v11 }
  0xc9   :  { %1899 = vmatmul.msk.f32.gmra.mxu3 %vm286_vm0, %v250_v11 }
  0xca   :  { %1875 = vmatmul.msk.f32.gmra.mxu0 %vm286_vm0, %v250_v11 }
  0xd0   :  { %1883 = vmatmul.msk.f32.gmra.mxu1 %vm286_vm0, %v250_v11  ;;  %1892 = vmatmul.msk.f32.gmra.mxu2 %vm286_vm0, %v251_v12 }
  0xd1   :  { %1900 = vmatmul.msk.f32.gmra.mxu3 %vm286_vm0, %v251_v12 }
  0xd2   :  { %1876 = vmatmul.msk.f32.gmra.mxu0 %vm286_vm0, %v251_v12 }
  0xd8   :  { %1884 = vmatmul.msk.f32.gmra.mxu1 %vm286_vm0, %v251_v12  ;;  %1917 = vmatmul.msk.f32.vlgmr.msrb.gmra.mxu2 %vm286_vm0, %v2891_v2 }
  0xd9   :  { %1925 = vmatmul.msk.f32.vlgmr.msrb.gmra.mxu3 %vm286_vm0, %v2891_v2 }
  0xda   :  { %1901 = vmatmul.msk.f32.vlgmr.msrb.gmra.mxu0 %vm286_vm0, %v2891_v2 }
  0xe0   :  { %1909 = vmatmul.msk.f32.vlgmr.msrb.gmra.mxu1 %vm286_vm0, %v2891_v2  ;;  %1918 = vmatmul.msk.f32.gmra.mxu2 %vm286_vm0, %v245_v9  ;;  %v2963_v2 = vld [vmem:[#allocation12] sm:$0xff] }
  0xe1   :  { %1926 = vmatmul.msk.f32.gmra.mxu3 %vm286_vm0, %v245_v9  ;;  %v2968_v10 = vperm.slane %v2963_v2, 0  ;;  %v2971_v3 = vperm.slane %v2963_v2, 1  ;;  %v2977_v1 = vperm.slane %v2963_v2, 3 }
  0xe2   :  { %1902 = vmatmul.msk.f32.gmra.mxu0 %vm286_vm0, %v245_v9 }
  0xe8   :  { %1910 = vmatmul.msk.f32.gmra.mxu1 %vm286_vm0, %v245_v9  ;;  %1919 = vmatmul.msk.f32.gmra.mxu2 %vm286_vm0, %v246_v5  ;;  %v2974_v9 = vperm.slane %v2963_v2, 2 }
  0xe9   :  { %1927 = vmatmul.msk.f32.gmra.mxu3 %vm286_vm0, %v246_v5 }
  0xea   :  { %1903 = vmatmul.msk.f32.gmra.mxu0 %vm286_vm0, %v246_v5 }
  0xf0   :  { %1911 = vmatmul.msk.f32.gmra.mxu1 %vm286_vm0, %v246_v5  ;;  %1920 = vmatmul.msk.f32.gmra.mxu2 %vm286_vm0, %v247_v6 }
  0xf1   :  { %1928 = vmatmul.msk.f32.gmra.mxu3 %vm286_vm0, %v247_v6 }
  0xf2   :  { %1904 = vmatmul.msk.f32.gmra.mxu0 %vm286_vm0, %v247_v6 }
  0xf8   :  { %1912 = vmatmul.msk.f32.gmra.mxu1 %vm286_vm0, %v247_v6  ;;  %1921 = vmatmul.msk.f32.gmra.mxu2 %vm286_vm0, %v248_v7 }
  0xf9   :  { %1929 = vmatmul.msk.f32.gmra.mxu3 %vm286_vm0, %v248_v7 }
  0xfa   :  { %1905 = vmatmul.msk.f32.gmra.mxu0 %vm286_vm0, %v248_v7 }
 0x100   :  { %1913 = vmatmul.msk.f32.gmra.mxu1 %vm286_vm0, %v248_v7  ;;  %1922 = vmatmul.msk.f32.gmra.mxu2 %vm286_vm0, %v249_v8 }
 0x101   :  { %1930 = vmatmul.msk.f32.gmra.mxu3 %vm286_vm0, %v249_v8 }
 0x102   :  { %1906 = vmatmul.msk.f32.gmra.mxu0 %vm286_vm0, %v249_v8 }
 0x108   :  { %1914 = vmatmul.msk.f32.gmra.mxu1 %vm286_vm0, %v249_v8  ;;  %1923 = vmatmul.msk.f32.gmra.mxu2 %vm286_vm0, %v250_v11 }
 0x109   :  { %1931 = vmatmul.msk.f32.gmra.mxu3 %vm286_vm0, %v250_v11 }
 0x10a   :  { %1907 = vmatmul.msk.f32.gmra.mxu0 %vm286_vm0, %v250_v11 }
 0x110   :  { %1915 = vmatmul.msk.f32.gmra.mxu1 %vm286_vm0, %v250_v11  ;;  %1924 = vmatmul.msk.f32.gmra.mxu2 %vm286_vm0, %v251_v12 }
 0x111   :  { %1932 = vmatmul.msk.f32.gmra.mxu3 %vm286_vm0, %v251_v12 }
 0x112   :  { %1908 = vmatmul.msk.f32.gmra.mxu0 %vm286_vm0, %v251_v12 }
 0x117   :  { %v328_v4 = vpop.f32.mrf.mxu0 }
 0x118   :  { %1916 = vmatmul.msk.f32.gmra.mxu1 %vm286_vm0, %v251_v12  ;;  %v329_v5 = vadd.f32 %v328_v4, %v2968_v10 }
 0x11a   :  { %639 = vst [vmem:[#allocation2] sm:$0xff] %v329_v5 }
 0x11b   :  { %v410_v7 = vpop.f32.mrf.mxu2  ;;  %v451_v12 = vpop.f32.mrf.mxu3 }
 0x11c   :  { %v411_v11 = vadd.f32 %v410_v7, %v2974_v9  ;;  %v452_v15 = vadd.f32 %v451_v12, %v2977_v1 }
 0x11d   :  { %v369_v6 = vpop.f32.mrf.mxu1 }
 0x11e   :  { %v370_v8 = vadd.f32 %v369_v6, %v2971_v3  ;;  %641 = vst [vmem:[#allocation2 + $0x10] sm:$0xff] %v411_v11 }
 0x11f   :  { %642 = vst [vmem:[#allocation2 + $0x18] sm:$0xff] %v452_v15  ;;  %v331_v16 = vpop.f32.mrf.mxu0 }
 0x120   :  { %640 = vst [vmem:[#allocation2 + $0x8] sm:$0xff] %v370_v8  ;;  %v332_v14 = vadd.f32 %v331_v16, %v2968_v10 }
 0x122   :  { %643 = vst [vmem:[#allocation2 + $0x20] sm:$0xff] %v332_v14 }
 0x123   :  { %v413_v19 = vpop.f32.mrf.mxu2 }
 0x124   :  { %v414_v20 = vadd.f32 %v413_v19, %v2974_v9  ;;  %v454_v18 = vpop.f32.mrf.mxu3 }
 0x125   :  { %v372_v13 = vpop.f32.mrf.mxu1  ;;  %v455_v6 = vadd.f32 %v454_v18, %v2977_v1 }
 0x126   :  { %v373_v4 = vadd.f32 %v372_v13, %v2971_v3  ;;  %645 = vst [vmem:[#allocation2 + $0x30] sm:$0xff] %v414_v20 }
 0x127   :  { %646 = vst [vmem:[#allocation2 + $0x38] sm:$0xff] %v455_v6  ;;  %v334_v5 = vpop.f32.mrf.mxu0 }
 0x128   :  { %644 = vst [vmem:[#allocation2 + $0x28] sm:$0xff] %v373_v4  ;;  %v335_v7 = vadd.f32 %v334_v5, %v2968_v10 }
 0x12a   :  { %647 = vst [vmem:[#allocation2 + $0x40] sm:$0xff] %v335_v7 }
 0x12b   :  { %v416_v8 = vpop.f32.mrf.mxu2 }
 0x12c   :  { %v417_v11 = vadd.f32 %v416_v8, %v2974_v9  ;;  %v457_v12 = vpop.f32.mrf.mxu3 }
 0x12d   :  { %v375_v15 = vpop.f32.mrf.mxu1  ;;  %v458_v13 = vadd.f32 %v457_v12, %v2977_v1 }
 0x12e   :  { %v376_v16 = vadd.f32 %v375_v15, %v2971_v3  ;;  %649 = vst [vmem:[#allocation2 + $0x50] sm:$0xff] %v417_v11 }
 0x12f   :  { %650 = vst [vmem:[#allocation2 + $0x58] sm:$0xff] %v458_v13  ;;  %v337_v14 = vpop.f32.mrf.mxu0 }
 0x130   :  { %648 = vst [vmem:[#allocation2 + $0x48] sm:$0xff] %v376_v16  ;;  %v338_v18 = vadd.f32 %v337_v14, %v2968_v10 }
 0x132   :  { %651 = vst [vmem:[#allocation2 + $0x60] sm:$0xff] %v338_v18 }
 0x133   :  { %v419_v20 = vpop.f32.mrf.mxu2 }
 0x134   :  { %v420_v6 = vadd.f32 %v419_v20, %v2974_v9  ;;  %v460_v5 = vpop.f32.mrf.mxu3 }
 0x135   :  { %v378_v19 = vpop.f32.mrf.mxu1  ;;  %v461_v15 = vadd.f32 %v460_v5, %v2977_v1 }
 0x136   :  { %v379_v4 = vadd.f32 %v378_v19, %v2971_v3  ;;  %653 = vst [vmem:[#allocation2 + $0x70] sm:$0xff] %v420_v6 }
 0x137   :  { %654 = vst [vmem:[#allocation2 + $0x78] sm:$0xff] %v461_v15  ;;  %v340_v7 = vpop.f32.mrf.mxu0 }
 0x138   :  { %652 = vst [vmem:[#allocation2 + $0x68] sm:$0xff] %v379_v4  ;;  %v341_v8 = vadd.f32 %v340_v7, %v2968_v10 }
 0x13a   :  { %655 = vst [vmem:[#allocation2 + $0x80] sm:$0xff] %v341_v8 }
 0x13b   :  { %v422_v11 = vpop.f32.mrf.mxu2 }
 0x13c   :  { %v423_v13 = vadd.f32 %v422_v11, %v2974_v9  ;;  %v463_v14 = vpop.f32.mrf.mxu3 }
 0x13d   :  { %v381_v16 = vpop.f32.mrf.mxu1  ;;  %v464_v19 = vadd.f32 %v463_v14, %v2977_v1 }
 0x13e   :  { %v382_v12 = vadd.f32 %v381_v16, %v2971_v3  ;;  %657 = vst [vmem:[#allocation2 + $0x90] sm:$0xff] %v423_v13 }
 0x13f   :  { %658 = vst [vmem:[#allocation2 + $0x98] sm:$0xff] %v464_v19  ;;  %v343_v18 = vpop.f32.mrf.mxu0 }
 0x140   :  { %656 = vst [vmem:[#allocation2 + $0x88] sm:$0xff] %v382_v12  ;;  %v344_v20 = vadd.f32 %v343_v18, %v2968_v10 }
 0x142   :  { %659 = vst [vmem:[#allocation2 + $0xa0] sm:$0xff] %v344_v20 }
 0x143   :  { %v425_v6 = vpop.f32.mrf.mxu2 }
 0x144   :  { %v426_v15 = vadd.f32 %v425_v6, %v2974_v9  ;;  %v466_v7 = vpop.f32.mrf.mxu3 }
 0x145   :  { %v384_v4 = vpop.f32.mrf.mxu1  ;;  %v467_v16 = vadd.f32 %v466_v7, %v2977_v1 }
 0x146   :  { %v385_v5 = vadd.f32 %v384_v4, %v2971_v3  ;;  %661 = vst [vmem:[#allocation2 + $0xb0] sm:$0xff] %v426_v15 }
 0x147   :  { %662 = vst [vmem:[#allocation2 + $0xb8] sm:$0xff] %v467_v16  ;;  %v346_v8 = vpop.f32.mrf.mxu0 }
 0x148   :  { %660 = vst [vmem:[#allocation2 + $0xa8] sm:$0xff] %v385_v5  ;;  %v347_v11 = vadd.f32 %v346_v8, %v2968_v10 }
 0x14a   :  { %663 = vst [vmem:[#allocation2 + $0xc0] sm:$0xff] %v347_v11  ;;  %v3012_v11 = vperm.slane %v2963_v2, 4 }
 0x14b   :  { %v428_v13 = vpop.f32.mrf.mxu2 }
 0x14c   :  { %v429_v19 = vadd.f32 %v428_v13, %v2974_v9  ;;  %v469_v18 = vpop.f32.mrf.mxu3  ;;  %v3015_v13 = vperm.slane %v2963_v2, 5 }
 0x14d   :  { %v387_v12 = vpop.f32.mrf.mxu1  ;;  %v470_v4 = vadd.f32 %v469_v18, %v2977_v1 }
 0x14e   :  { %v388_v14 = vadd.f32 %v387_v12, %v2971_v3  ;;  %665 = vst [vmem:[#allocation2 + $0xd0] sm:$0xff] %v429_v19 }
 0x14f   :  { %666 = vst [vmem:[#allocation2 + $0xd8] sm:$0xff] %v470_v4  ;;  %v349_v20 = vpop.f32.mrf.mxu0 }
 0x150   :  { %664 = vst [vmem:[#allocation2 + $0xc8] sm:$0xff] %v388_v14  ;;  %v350_v6 = vadd.f32 %v349_v20, %v2968_v10  ;;  %v3018_v10 = vperm.slane %v2963_v2, 6 }
 0x152   :  { %667 = vst [vmem:[#allocation2 + $0xe0] sm:$0xff] %v350_v6 }
 0x153   :  { %v431_v15 = vpop.f32.mrf.mxu2 }
 0x154   :  { %v432_v16 = vadd.f32 %v431_v15, %v2974_v9  ;;  %v472_v8 = vpop.f32.mrf.mxu3 }
 0x155   :  { %v390_v5 = vpop.f32.mrf.mxu1  ;;  %v473_v12 = vadd.f32 %v472_v8, %v2977_v1 }
 0x156   :  { %v391_v7 = vadd.f32 %v390_v5, %v2971_v3  ;;  %669 = vst [vmem:[#allocation2 + $0xf0] sm:$0xff] %v432_v16  ;;  %v3021_v3 = vperm.slane %v2963_v2, 7 }
 0x157   :  { %670 = vst [vmem:[#allocation2 + $0xf8] sm:$0xff] %v473_v12  ;;  %v492_v9 = vpop.f32.mrf.mxu0 }
 0x158   :  { %668 = vst [vmem:[#allocation2 + $0xe8] sm:$0xff] %v391_v7  ;;  %v493_v14 = vadd.f32 %v492_v9, %v3012_v11 }
 0x15a   :  { %671 = vst [vmem:[#allocation3] sm:$0xff] %v493_v14 }
 0x15b   :  { %v574_v1 = vpop.f32.mrf.mxu2 }
 0x15c   :  { %v575_v4 = vadd.f32 %v574_v1, %v3018_v10  ;;  %v615_v20 = vpop.f32.mrf.mxu3 }
 0x15d   :  { %v533_v19 = vpop.f32.mrf.mxu1  ;;  %v616_v6 = vadd.f32 %v615_v20, %v3021_v3 }
 0x15e   :  { %v534_v18 = vadd.f32 %v533_v19, %v3015_v13  ;;  %673 = vst [vmem:[#allocation3 + $0x10] sm:$0xff] %v575_v4 }
 0x15f   :  { %674 = vst [vmem:[#allocation3 + $0x18] sm:$0xff] %v616_v6  ;;  %v495_v5 = vpop.f32.mrf.mxu0 }
 0x160   :  { %672 = vst [vmem:[#allocation3 + $0x8] sm:$0xff] %v534_v18  ;;  %v496_v2 = vadd.f32 %v495_v5, %v3012_v11 }
 0x162   :  { %675 = vst [vmem:[#allocation3 + $0x20] sm:$0xff] %v496_v2 }
 0x163   :  { %v577_v7 = vpop.f32.mrf.mxu2 }
 0x164   :  { %v578_v8 = vadd.f32 %v577_v7, %v3018_v10  ;;  %v618_v12 = vpop.f32.mrf.mxu3 }
 0x165   :  { %v536_v15 = vpop.f32.mrf.mxu1  ;;  %v619_v9 = vadd.f32 %v618_v12, %v3021_v3 }
 0x166   :  { %v537_v16 = vadd.f32 %v536_v15, %v3015_v13  ;;  %677 = vst [vmem:[#allocation3 + $0x30] sm:$0xff] %v578_v8 }
 0x167   :  { %678 = vst [vmem:[#allocation3 + $0x38] sm:$0xff] %v619_v9  ;;  %v498_v14 = vpop.f32.mrf.mxu0 }
 0x168   :  { %676 = vst [vmem:[#allocation3 + $0x28] sm:$0xff] %v537_v16  ;;  %v499_v19 = vadd.f32 %v498_v14, %v3012_v11 }
 0x16a   :  { %679 = vst [vmem:[#allocation3 + $0x40] sm:$0xff] %v499_v19 }
 0x16b   :  { %v580_v18 = vpop.f32.mrf.mxu2 }
 0x16c   :  { %v581_v20 = vadd.f32 %v580_v18, %v3018_v10  ;;  %v621_v6 = vpop.f32.mrf.mxu3 }
 0x16d   :  { %v539_v1 = vpop.f32.mrf.mxu1  ;;  %v622_v5 = vadd.f32 %v621_v6, %v3021_v3 }
 0x16e   :  { %v540_v4 = vadd.f32 %v539_v1, %v3015_v13  ;;  %681 = vst [vmem:[#allocation3 + $0x50] sm:$0xff] %v581_v20 }
 0x16f   :  { %682 = vst [vmem:[#allocation3 + $0x58] sm:$0xff] %v622_v5  ;;  %v501_v2 = vpop.f32.mrf.mxu0 }
 0x170   :  { %680 = vst [vmem:[#allocation3 + $0x48] sm:$0xff] %v540_v4  ;;  %v502_v15 = vadd.f32 %v501_v2, %v3012_v11 }
 0x172   :  { %683 = vst [vmem:[#allocation3 + $0x60] sm:$0xff] %v502_v15 }
 0x173   :  { %v583_v16 = vpop.f32.mrf.mxu2 }
 0x174   :  { %v584_v12 = vadd.f32 %v583_v16, %v3018_v10  ;;  %v624_v9 = vpop.f32.mrf.mxu3 }
 0x175   :  { %v542_v7 = vpop.f32.mrf.mxu1  ;;  %v625_v14 = vadd.f32 %v624_v9, %v3021_v3 }
 0x176   :  { %v543_v8 = vadd.f32 %v542_v7, %v3015_v13  ;;  %685 = vst [vmem:[#allocation3 + $0x70] sm:$0xff] %v584_v12 }
 0x177   :  { %686 = vst [vmem:[#allocation3 + $0x78] sm:$0xff] %v625_v14  ;;  %v504_v19 = vpop.f32.mrf.mxu0 }
 0x178   :  { %684 = vst [vmem:[#allocation3 + $0x68] sm:$0xff] %v543_v8  ;;  %v505_v1 = vadd.f32 %v504_v19, %v3012_v11 }
 0x17a   :  { %687 = vst [vmem:[#allocation3 + $0x80] sm:$0xff] %v505_v1 }
 0x17b   :  { %v586_v4 = vpop.f32.mrf.mxu2 }
 0x17c   :  { %v587_v6 = vadd.f32 %v586_v4, %v3018_v10  ;;  %v627_v5 = vpop.f32.mrf.mxu3 }
 0x17d   :  { %v545_v18 = vpop.f32.mrf.mxu1  ;;  %v628_v2 = vadd.f32 %v627_v5, %v3021_v3 }
 0x17e   :  { %v546_v20 = vadd.f32 %v545_v18, %v3015_v13  ;;  %689 = vst [vmem:[#allocation3 + $0x90] sm:$0xff] %v587_v6 }
 0x17f   :  { %690 = vst [vmem:[#allocation3 + $0x98] sm:$0xff] %v628_v2  ;;  %v507_v15 = vpop.f32.mrf.mxu0 }
 0x180   :  { %688 = vst [vmem:[#allocation3 + $0x88] sm:$0xff] %v546_v20  ;;  %v508_v7 = vadd.f32 %v507_v15, %v3012_v11 }
 0x182   :  { %691 = vst [vmem:[#allocation3 + $0xa0] sm:$0xff] %v508_v7 }
 0x183   :  { %v589_v8 = vpop.f32.mrf.mxu2 }
 0x184   :  { %v590_v9 = vadd.f32 %v589_v8, %v3018_v10  ;;  %v630_v14 = vpop.f32.mrf.mxu3 }
 0x185   :  { %v548_v16 = vpop.f32.mrf.mxu1  ;;  %v631_v19 = vadd.f32 %v630_v14, %v3021_v3 }
 0x186   :  { %v549_v12 = vadd.f32 %v548_v16, %v3015_v13  ;;  %693 = vst [vmem:[#allocation3 + $0xb0] sm:$0xff] %v590_v9 }
 0x187   :  { %694 = vst [vmem:[#allocation3 + $0xb8] sm:$0xff] %v631_v19  ;;  %v510_v1 = vpop.f32.mrf.mxu0 }
 0x188   :  { %692 = vst [vmem:[#allocation3 + $0xa8] sm:$0xff] %v549_v12  ;;  %v511_v18 = vadd.f32 %v510_v1, %v3012_v11 }
 0x18a   :  { %695 = vst [vmem:[#allocation3 + $0xc0] sm:$0xff] %v511_v18  ;;  %v3055_v18 = vmov 0.0  }
 0x18b   :  { %v592_v20 = vpop.f32.mrf.mxu2 }
 0x18c   :  { %v593_v5 = vadd.f32 %v592_v20, %v3018_v10  ;;  %v633_v2 = vpop.f32.mrf.mxu3  ;;  %v3059_v20 = vmov 0.0  }
 0x18d   :  { %v551_v4 = vpop.f32.mrf.mxu1  ;;  %v634_v15 = vadd.f32 %v633_v2, %v3021_v3 }
 0x18e   :  { %v552_v6 = vadd.f32 %v551_v4, %v3015_v13  ;;  %697 = vst [vmem:[#allocation3 + $0xd0] sm:$0xff] %v593_v5  ;;  %v3057_v4 = vmov 0.0  }
 0x18f   :  { %698 = vst [vmem:[#allocation3 + $0xd8] sm:$0xff] %v634_v15  ;;  %v513_v7 = vpop.f32.mrf.mxu0 }
 0x190   :  { %696 = vst [vmem:[#allocation3 + $0xc8] sm:$0xff] %v552_v6  ;;  %v514_v16 = vadd.f32 %v513_v7, %v3012_v11  ;;  %v3061_v11 = vmov 0.0  }
 0x192   :  { %699 = vst [vmem:[#allocation3 + $0xe0] sm:$0xff] %v514_v16 }
 0x193   :  { %v595_v12 = vpop.f32.mrf.mxu2 }
 0x194   :  { %v596_v14 = vadd.f32 %v595_v12, %v3018_v10  ;;  %v636_v19 = vpop.f32.mrf.mxu3 }
 0x195   :  { %v554_v8 = vpop.f32.mrf.mxu1  ;;  %v637_v1 = vadd.f32 %v636_v19, %v3021_v3 }
 0x196   :  { %v555_v9 = vadd.f32 %v554_v8, %v3015_v13  ;;  %701 = vst [vmem:[#allocation3 + $0xf0] sm:$0xff] %v596_v14 }
 0x197   :  { %702 = vst [vmem:[#allocation3 + $0xf8] sm:$0xff] %v637_v1 }
 0x198   :  { %700 = vst [vmem:[#allocation3 + $0xe8] sm:$0xff] %v555_v9 }
 0x199 LB: > { %849 = vmatpush.msra.mxu0 %v2755_v61  ;;  %869 = vmatpush.msra.mxu1 %v2757_v62  ;;  %v3494_v0 = vld [vmem:[#allocation65_spill] sm:$0xff]  ;;  %v3495_v29 = vld [vmem:[#allocation64_spill] sm:$0xff]  ;;  %v3498_v28 = vld [vmem:[#allocation63_spill] sm:$0xff]  ;;  %s1945_s18 = sshll.u32 %s2452_s15, 5  ;;  %s841_s3 = ssub.s32 7, %s2452_s15  ;;  %s2452_s15 = sphi %s3063_s15, %s836_s15   ;;  %v2448_v11 = vphi %v3061_v11, %v1086_v11   ;;  %v2444_v20 = vphi %v3059_v20, %v3255_v20   ;;  %v2440_v4 = vphi %v3057_v4, %v1149_v4   ;;  %v2436_v18 = vphi %v3055_v18, %v1147_v18  }
 0x19a   : > { %909 = vmatpush.msra.mxu3 %v3494_v0  ;;  %889 = vmatpush.msra.mxu2 %v2759_v63  ;;  %v3496_v25 = vld [vmem:[#allocation60_spill] sm:$0xff]  ;;  %v3497_v26 = vld [vmem:[#allocation61_spill] sm:$0xff]  ;;  %v3499_v27 = vld [vmem:[#allocation62_spill] sm:$0xff]  ;;  %s844_s19 = scalar_lea.vmem [#allocation2], %s1945_s18  ;;  %s1946_s0 = sshll.u32 %s841_s3, 5 }
 0x19b   : > { %850 = vmatpush.msra.mxu0 %v2747_v57  ;;  %870 = vmatpush.msra.mxu1 %v2749_v58  ;;  %v3500_v21 = vld [vmem:[#allocation56_spill] sm:$0xff]  ;;  %v3501_v22 = vld [vmem:[#allocation57_spill] sm:$0xff]  ;;  %v3502_v24 = vld [vmem:[#allocation59_spill] sm:$0xff]  ;;  %s3231_s22 = scalar_lea.vmem [#allocation3], %s1946_s0  ;;  %s1943_s28 = sshll.u32 %s2452_s15, 3 }
 0x19c   : > { %910 = vmatpush.msra.mxu3 %v2753_v60  ;;  %890 = vmatpush.msra.mxu2 %v2751_v59  ;;  %v3503_v23 = vld [vmem:[#allocation58_spill] sm:$0xff]  ;;  %v3504_v17 = vld [vmem:[#allocation52_spill] sm:$0xff]  ;;  %v3505_v13 = vld [vmem:[#allocation53_spill] sm:$0xff]  ;;  %s1151_s12 = scalar_lea.vmem [#allocation4], %s1943_s28  ;;  %s1944_s2 = sshll.u32 %s841_s3, 3 }
 0x19d   : > { %851 = vmatpush.msra.mxu0 %v2739_v53  ;;  %871 = vmatpush.msra.mxu1 %v2741_v54  ;;  %v3506_v10 = vld [vmem:[#allocation55_spill] sm:$0xff]  ;;  %v3507_v3 = vld [vmem:[#allocation54_spill] sm:$0xff]  ;;  %v3508_v6 = vld [vmem:[#allocation48_spill] sm:$0xff]  ;;  %s1154_s27 = scalar_lea.vmem [#allocation5], %s1944_s2  ;;  %s836_s15 = sadd.s32 1, %s2452_s15  }
 0x19e   : > { %911 = vmatpush.msra.mxu3 %v2745_v56  ;;  %891 = vmatpush.msra.mxu2 %v2743_v55  ;;  %v3509_v5 = vld [vmem:[#allocation49_spill] sm:$0xff]  ;;  %v3510_v2 = vld [vmem:[#allocation51_spill] sm:$0xff]  ;;  %v3511_v15 = vld [vmem:[#allocation50_spill] sm:$0xff]  ;;  %p833_p0 = scmp.ge.s32.totalorder %s836_s15, 8  }
 0x19f   : > { %852 = vmatpush.msra.mxu0 %v2731_v49  ;;  %872 = vmatpush.msra.mxu1 %v2733_v50  ;;  %v3512_v7 = vld [vmem:[#allocation44_spill] sm:$0xff]  ;;  %v3513_v16 = vld [vmem:[#allocation45_spill] sm:$0xff]  ;;  %v3514_v8 = vld [vmem:[#allocation47_spill] sm:$0xff]  ;;  %s1828_s25 = sshll.u32 (%p833_p0), %s3395_s17, 4  ;;  %s1829_s25 = int_to_ptr.hbm [resolvable:$true] %s1828_s25 }
 0x1a0   : > { %912 = vmatpush.msra.mxu3 %v2737_v52  ;;  %892 = vmatpush.msra.mxu2 %v2735_v51  ;;  %v3515_v12 = vld [vmem:[#allocation46_spill] sm:$0xff]  ;;  %v3516_v9 = vld [vmem:[#allocation40_spill] sm:$0xff]  ;;  %v3517_v14 = vld [vmem:[#allocation41_spill] sm:$0xff] }
 0x1a1   : > { %853 = vmatpush.msra.mxu0 %v2723_v45  ;;  %873 = vmatpush.msra.mxu1 %v2725_v46  ;;  %v3518_v19 = vld [vmem:[#allocation43_spill] sm:$0xff]  ;;  %v3519_v1 = vld [vmem:[#allocation42_spill] sm:$0xff]  ;;  %v1185_v45 = vld [vmem:[#allocation19 + $0x48] sm:$0xff] (%p833_p0) }
 0x1a2   : > { %913 = vmatpush.msra.mxu3 %v2729_v48  ;;  %893 = vmatpush.msra.mxu2 %v2727_v47  ;;  %v937_v0 = vld [vmem:[%s3231_s22 + $0x8] sm:$0xff]  ;;  %v1275_v54 = vld [vmem:[#allocation18 + $0x30] sm:$0xff] (%p833_p0)  ;;  %v1274_v58 = vld [vmem:[#allocation18 + $0x28] sm:$0xff] (%p833_p0) }
 0x1a3   : > { %854 = vmatpush.msra.mxu0 %v2715_v41  ;;  %874 = vmatpush.msra.mxu1 %v2717_v42  ;;  %v1186_v41 = vld [vmem:[#allocation19 + $0x50] sm:$0xff] (%p833_p0)  ;;  %v1278_v42 = vld [vmem:[#allocation18 + $0x48] sm:$0xff] (%p833_p0)  ;;  %v1277_v46 = vld [vmem:[#allocation18 + $0x40] sm:$0xff] (%p833_p0) }
 0x1a4   : > { %914 = vmatpush.msra.mxu3 %v2721_v44  ;;  %894 = vmatpush.msra.mxu2 %v2719_v43  ;;  %v1262_v43 = vld [vmem:[#allocation16 + $0x48] sm:$0xff] (%p833_p0)  ;;  %v1261_v47 = vld [vmem:[#allocation16 + $0x40] sm:$0xff] (%p833_p0)  ;;  %v1276_v50 = vld [vmem:[#allocation18 + $0x38] sm:$0xff] (%p833_p0) }
 0x1a5   : > { %855 = vmatpush.msra.mxu0 %v2707_v37  ;;  %875 = vmatpush.msra.mxu1 %v2709_v38  ;;  %v1187_v37 = vld [vmem:[#allocation19 + $0x58] sm:$0xff] (%p833_p0)  ;;  %v1279_v38 = vld [vmem:[#allocation18 + $0x50] sm:$0xff] (%p833_p0)  ;;  %v1201_v44 = vld [vmem:[#allocation21 + $0x48] sm:$0xff] (%p833_p0) }
 0x1a6   : > { %915 = vmatpush.msra.mxu3 %v2713_v40  ;;  %895 = vmatpush.msra.mxu2 %v2711_v39  ;;  %v1263_v39 = vld [vmem:[#allocation16 + $0x50] sm:$0xff] (%p833_p0)  ;;  %v1200_v48 = vld [vmem:[#allocation21 + $0x40] sm:$0xff] (%p833_p0)  ;;  %v1260_v51 = vld [vmem:[#allocation16 + $0x38] sm:$0xff] (%p833_p0) }
 0x1a7   : > { %856 = vmatpush.msra.mxu0 %v2699_v33  ;;  %876 = vmatpush.msra.mxu1 %v2701_v34  ;;  %v1188_v33 = vld [vmem:[#allocation19 + $0x60] sm:$0xff] (%p833_p0)  ;;  %v1280_v34 = vld [vmem:[#allocation18 + $0x58] sm:$0xff] (%p833_p0)  ;;  %v1202_v40 = vld [vmem:[#allocation21 + $0x50] sm:$0xff] (%p833_p0) }
 0x1a8   : > { %916 = vmatpush.msra.mxu3 %v2705_v36  ;;  %896 = vmatpush.msra.mxu2 %v2703_v35  ;;  %v1264_v35 = vld [vmem:[#allocation16 + $0x58] sm:$0xff] (%p833_p0)  ;;  %v1184_v49 = vld [vmem:[#allocation19 + $0x40] sm:$0xff] (%p833_p0)  ;;  %v1259_v55 = vld [vmem:[#allocation16 + $0x30] sm:$0xff] (%p833_p0) }
 0x1a9   : > { %857 = vmatpush.msra.mxu0 %v3495_v29  ;;  %877 = vmatpush.msra.mxu1 %v2693_v30  ;;  %v939_v29 = vld [vmem:[%s3231_s22 + $0x18] sm:$0xff]  ;;  %v1203_v36 = vld [vmem:[#allocation21 + $0x58] sm:$0xff] (%p833_p0)  ;;  %v1273_v62 = vld [vmem:[#allocation18 + $0x20] sm:$0xff] (%p833_p0) }
 0x1aa   : > { %917 = vmatpush.msra.mxu3 %v2697_v32  ;;  %897 = vmatpush.msra.mxu2 %v2695_v31  ;;  %v1205_v30 = vld [vmem:[#allocation21 + $0x68] sm:$0xff] (%p833_p0)  ;;  %v1204_v32 = vld [vmem:[#allocation21 + $0x60] sm:$0xff] (%p833_p0)  ;;  %v1199_v52 = vld [vmem:[#allocation21 + $0x38] sm:$0xff] (%p833_p0) }
 0x1ab   : > { %858 = vmatpush.msra.mxu0 %v3496_v25  ;;  %878 = vmatpush.msra.mxu1 %v3497_v26  ;;  %v1189_v31 = vld [vmem:[#allocation19 + $0x68] sm:$0xff] (%p833_p0)  ;;  %v1183_v53 = vld [vmem:[#allocation19 + $0x38] sm:$0xff] (%p833_p0)  ;;  %v1198_v56 = vld [vmem:[#allocation21 + $0x30] sm:$0xff] (%p833_p0) }
 0x1ac   : > { %918 = vmatpush.msra.mxu3 %v3498_v28  ;;  %898 = vmatpush.msra.mxu2 %v3499_v27  ;;  %v1182_v57 = vld [vmem:[#allocation19 + $0x30] sm:$0xff] (%p833_p0)  ;;  %v1258_v59 = vld [vmem:[#allocation16 + $0x28] sm:$0xff] (%p833_p0)  ;;  %v1257_v63 = vld [vmem:[#allocation16 + $0x20] sm:$0xff] (%p833_p0) }
 0x1ad   : > { %859 = vmatpush.msra.mxu0 %v3500_v21  ;;  %879 = vmatpush.msra.mxu1 %v3501_v22  ;;  %v1197_v60 = vld [vmem:[#allocation21 + $0x28] sm:$0xff] (%p833_p0) }
 0x1ae   : > { %919 = vmatpush.msra.mxu3 %v3502_v24  ;;  %899 = vmatpush.msra.mxu2 %v3503_v23  ;;  %v1181_v61 = vld [vmem:[#allocation19 + $0x28] sm:$0xff] (%p833_p0) }
 0x1af   : > { %860 = vmatpush.msra.mxu0 %v3504_v17  ;;  %880 = vmatpush.msra.mxu1 %v3505_v13  ;;  %v3520_v13 = vld [vmem:[#allocation36_spill] sm:$0xff] }
 0x1b0   : > { %920 = vmatpush.msra.mxu3 %v3506_v10  ;;  %900 = vmatpush.msra.mxu2 %v3507_v3  ;;  %v3521_v10 = vld [vmem:[#allocation37_spill] sm:$0xff]  ;;  %v3522_v3 = vld [vmem:[#allocation39_spill] sm:$0xff] }
 0x1b1   : > { %861 = vmatpush.msra.mxu0 %v3508_v6  ;;  %881 = vmatpush.msra.mxu1 %v3509_v5  ;;  %v3523_v6 = vld [vmem:[#allocation126_spill] sm:$0xff]  ;;  %v3524_v5 = vld [vmem:[#allocation127_spill] sm:$0xff] }
 0x1b2   : > { %921 = vmatpush.msra.mxu3 %v3510_v2  ;;  %901 = vmatpush.msra.mxu2 %v3511_v15  ;;  %v3525_v2 = vld [vmem:[#allocation129_spill] sm:$0xff]  ;;  %v3526_v15 = vld [vmem:[#allocation122_spill] sm:$0xff] }
 0x1b3   : > { %862 = vmatpush.msra.mxu0 %v3512_v7  ;;  %882 = vmatpush.msra.mxu1 %v3513_v16  ;;  %v3527_v7 = vld [vmem:[#allocation123_spill] sm:$0xff]  ;;  %v3528_v16 = vld [vmem:[#allocation125_spill] sm:$0xff] }
 0x1b4   : > { %922 = vmatpush.msra.mxu3 %v3514_v8  ;;  %902 = vmatpush.msra.mxu2 %v3515_v12  ;;  %v3529_v8 = vld [vmem:[#allocation118_spill] sm:$0xff] }
 0x1b5   : > { %863 = vmatpush.msra.mxu0 %v3516_v9  ;;  %883 = vmatpush.msra.mxu1 %v3517_v14  ;;  %v3530_v12 = vld [vmem:[#allocation38_spill] sm:$0xff]  ;;  %v3531_v9 = vld [vmem:[#allocation119_spill] sm:$0xff]  ;;  %v3532_v14 = vld [vmem:[#allocation121_spill] sm:$0xff] }
 0x1b6   : > { %923 = vmatpush.msra.mxu3 %v3518_v19  ;;  %903 = vmatpush.msra.mxu2 %v3519_v1  ;;  %v3533_v19 = vld [vmem:[#allocation114_spill] sm:$0xff]  ;;  %v3534_v1 = vld [vmem:[#allocation115_spill] sm:$0xff] }
 0x1b7   : > { %864 = vmatpush.msra.mxu0 %v3520_v13  ;;  %884 = vmatpush.msra.mxu1 %v3521_v10  ;;  %v3535_v13 = vld [vmem:[#allocation117_spill] sm:$0xff]  ;;  %v3536_v10 = vld [vmem:[#allocation110_spill] sm:$0xff] }
 0x1b8   : > { %924 = vmatpush.msra.mxu3 %v3522_v3  ;;  %885 = vmatmul.f32.vlgmr.msra.gmra.mxu1 %v2448_v11  ;;  %v3537_v3 = vld [vmem:[#allocation128_spill] sm:$0xff] }
 0x1b9   : > { %940 = vmatpush.msrb.mxu0 %v3523_v6  ;;  %960 = vmatpush.msrb.mxu1 %v3524_v5  ;;  %v3538_v6 = vld [vmem:[#allocation111_spill] sm:$0xff]  ;;  %v3539_v5 = vld [vmem:[#allocation113_spill] sm:$0xff] }
 0x1ba   : > { %1000 = vmatpush.msrb.mxu3 %v3525_v2  ;;  %904 = vmatpush.msra.mxu2 %v3530_v12  ;;  %v3540_v2 = vld [vmem:[#allocation124_spill] sm:$0xff]  ;;  %v3545_v12 = vld [vmem:[#allocation102_spill] sm:$0xff] }
 0x1bb   : > { %941 = vmatpush.msrb.mxu0 %v3526_v15  ;;  %961 = vmatpush.msrb.mxu1 %v3527_v7  ;;  %v3541_v15 = vld [vmem:[#allocation106_spill] sm:$0xff]  ;;  %v3542_v7 = vld [vmem:[#allocation107_spill] sm:$0xff] }
 0x1bc   : > { %1001 = vmatpush.msrb.mxu3 %v3528_v16  ;;  %980 = vmatpush.msrb.mxu2 %v3537_v3  ;;  %v3543_v16 = vld [vmem:[#allocation109_spill] sm:$0xff]  ;;  %v3552_v3 = vld [vmem:[#allocation112_spill] sm:$0xff] }
 0x1bd   : > { %942 = vmatpush.msrb.mxu0 %v3529_v8  ;;  %962 = vmatpush.msrb.mxu1 %v3531_v9  ;;  %v3544_v8 = vld [vmem:[#allocation120_spill] sm:$0xff]  ;;  %v3546_v9 = vld [vmem:[#allocation103_spill] sm:$0xff] }
 0x1be   : > { %1002 = vmatpush.msrb.mxu3 %v3532_v14  ;;  %865 = vmatmul.f32.vlgmr.msra.gmra.mxu0 %v2448_v11  ;;  %v3547_v14 = vld [vmem:[#allocation105_spill] sm:$0xff] }
 0x1bf   : > { %943 = vmatpush.msrb.mxu0 %v3533_v19  ;;  %925 = vmatmul.f32.vlgmr.msra.gmra.mxu3 %v2448_v11  ;;  %v3548_v19 = vld [vmem:[#allocation116_spill] sm:$0xff] }
 0x1c0   : > { %963 = vmatpush.msrb.mxu1 %v3534_v1  ;;  %1003 = vmatpush.msrb.mxu3 %v3535_v13  ;;  %v3549_v1 = vld [vmem:[#allocation98_spill] sm:$0xff]  ;;  %v3550_v13 = vld [vmem:[#allocation99_spill] sm:$0xff] }
 0x1c1   : > { %944 = vmatpush.msrb.mxu0 %v3536_v10  ;;  %981 = vmatpush.msrb.mxu2 %v3540_v2  ;;  %v3551_v10 = vld [vmem:[#allocation101_spill] sm:$0xff] }
 0x1c2   : > { %964 = vmatpush.msrb.mxu1 %v3538_v6  ;;  %1004 = vmatpush.msrb.mxu3 %v3539_v5  ;;  %v3553_v6 = vld [vmem:[#allocation94_spill] sm:$0xff]  ;;  %v3554_v5 = vld [vmem:[#allocation95_spill] sm:$0xff]  ;;  %v3555_v2 = vld [vmem:[#allocation97_spill] sm:$0xff] }
 0x1c3   : > { %945 = vmatpush.msrb.mxu0 %v3541_v15  ;;  %982 = vmatpush.msrb.mxu2 %v3544_v8  ;;  %v3556_v15 = vld [vmem:[#allocation90_spill] sm:$0xff]  ;;  %v3559_v8 = vld [vmem:[#allocation108_spill] sm:$0xff] }
 0x1c4   : > { %965 = vmatpush.msrb.mxu1 %v3542_v7  ;;  %1005 = vmatpush.msrb.mxu3 %v3543_v16  ;;  %v3557_v7 = vld [vmem:[#allocation91_spill] sm:$0xff]  ;;  %v3558_v16 = vld [vmem:[#allocation93_spill] sm:$0xff] }
 0x1c5   : > { %946 = vmatpush.msrb.mxu0 %v3545_v12  ;;  %983 = vmatpush.msrb.mxu2 %v3548_v19  ;;  %v3560_v12 = vld [vmem:[#allocation86_spill] sm:$0xff]  ;;  %v3563_v19 = vld [vmem:[#allocation104_spill] sm:$0xff] }
 0x1c6   : > { %966 = vmatpush.msrb.mxu1 %v3546_v9  ;;  %1006 = vmatpush.msrb.mxu3 %v3547_v14  ;;  %v3561_v9 = vld [vmem:[#allocation87_spill] sm:$0xff]  ;;  %v3562_v14 = vld [vmem:[#allocation89_spill] sm:$0xff] }
 0x1c7   : > { %947 = vmatpush.msrb.mxu0 %v3549_v1  ;;  %984 = vmatpush.msrb.mxu2 %v3552_v3  ;;  %v3564_v1 = vld [vmem:[#allocation82_spill] sm:$0xff] }
 0x1c8   : > { %967 = vmatpush.msrb.mxu1 %v3550_v13  ;;  %1007 = vmatpush.msrb.mxu3 %v3551_v10  ;;  %v3565_v13 = vld [vmem:[#allocation83_spill] sm:$0xff]  ;;  %v3567_v10 = vld [vmem:[#allocation100_spill] sm:$0xff]  ;;  %v3568_v3 = vld [vmem:[#allocation78_spill] sm:$0xff] }
 0x1c9   : > { %948 = vmatpush.msrb.mxu0 %v3553_v6  ;;  %905 = vmatmul.f32.vlgmr.msra.gmra.mxu2 %v2448_v11  ;;  %v3566_v11 = vld [vmem:[#allocation85_spill] sm:$0xff]  ;;  %v3569_v6 = vld [vmem:[#allocation79_spill] sm:$0xff] }
 0x1ca   : > { %968 = vmatpush.msrb.mxu1 %v3554_v5  ;;  %1008 = vmatpush.msrb.mxu3 %v3555_v2  ;;  %v3570_v5 = vld [vmem:[#allocation81_spill] sm:$0xff]  ;;  %v3571_v2 = vld [vmem:[#allocation96_spill] sm:$0xff] }
 0x1cb   : > { %949 = vmatpush.msrb.mxu0 %v3556_v15  ;;  %985 = vmatpush.msrb.mxu2 %v3559_v8  ;;  %v3572_v15 = vld [vmem:[#allocation74_spill] sm:$0xff]  ;;  %v3575_v8 = vld [vmem:[#allocation92_spill] sm:$0xff] }
 0x1cc   : > { %969 = vmatpush.msrb.mxu1 %v3557_v7  ;;  %1009 = vmatpush.msrb.mxu3 %v3558_v16  ;;  %v3573_v7 = vld [vmem:[#allocation75_spill] sm:$0xff]  ;;  %v3574_v16 = vld [vmem:[#allocation77_spill] sm:$0xff] }
 0x1cd   : > { %950 = vmatpush.msrb.mxu0 %v3560_v12  ;;  %986 = vmatpush.msrb.mxu2 %v3563_v19  ;;  %v3576_v12 = vld [vmem:[#allocation70_spill] sm:$0xff]  ;;  %v3579_v19 = vld [vmem:[#allocation88_spill] sm:$0xff] }
 0x1ce   : > { %970 = vmatpush.msrb.mxu1 %v3561_v9  ;;  %1010 = vmatpush.msrb.mxu3 %v3562_v14  ;;  %v3577_v9 = vld [vmem:[#allocation71_spill] sm:$0xff]  ;;  %v3578_v14 = vld [vmem:[#allocation73_spill] sm:$0xff] }
 0x1cf   : > { %951 = vmatpush.msrb.mxu0 %v3564_v1  ;;  %987 = vmatpush.msrb.mxu2 %v3567_v10  ;;  %v3580_v1 = vld [vmem:[#allocation66_spill] sm:$0xff]  ;;  %v3583_v10 = vld [vmem:[#allocation84_spill] sm:$0xff] }
 0x1d0   : > { %971 = vmatpush.msrb.mxu1 %v3565_v13  ;;  %1011 = vmatpush.msrb.mxu3 %v3566_v11  ;;  %v3581_v13 = vld [vmem:[#allocation67_spill] sm:$0xff]  ;;  %v3582_v11 = vld [vmem:[#allocation69_spill] sm:$0xff] }
 0x1d1   : > { %952 = vmatpush.msrb.mxu0 %v3568_v3  ;;  %988 = vmatpush.msrb.mxu2 %v3571_v2  ;;  %v3584_v3 = vld [vmem:[#allocation80_spill] sm:$0xff] }
 0x1d2   : > { %972 = vmatpush.msrb.mxu1 %v3569_v6  ;;  %1012 = vmatpush.msrb.mxu3 %v3570_v5  ;;  %v3585_v6 = vld [vmem:[#allocation76_spill] sm:$0xff] }
 0x1d3   : > { %953 = vmatpush.msrb.mxu0 %v3572_v15  ;;  %989 = vmatpush.msrb.mxu2 %v3575_v8  ;;  %v3586_v5 = vld [vmem:[#allocation72_spill] sm:$0xff]  ;;  %v846_v15 = vld [vmem:[%s844_s19 + $0x8] sm:$0xff] }
 0x1d4   : > { %973 = vmatpush.msrb.mxu1 %v3573_v7  ;;  %1013 = vmatpush.msrb.mxu3 %v3574_v16  ;;  %v3587_v2 = vld [vmem:[#allocation68_spill] sm:$0xff] }
 0x1d5   : > { %954 = vmatpush.msrb.mxu0 %v3576_v12  ;;  %990 = vmatpush.msrb.mxu2 %v3579_v19  ;;  %v845_v12 = vld [vmem:[%s844_s19] sm:$0xff] }
 0x1d6   : > { %974 = vmatpush.msrb.mxu1 %v3577_v9  ;;  %1014 = vmatpush.msrb.mxu3 %v3578_v14  ;;  %v848_v14 = vld [vmem:[%s844_s19 + $0x18] sm:$0xff] }
 0x1d7   : > { %955 = vmatpush.msrb.mxu0 %v3580_v1  ;;  %991 = vmatpush.msrb.mxu2 %v3583_v10 }
 0x1d8   : > { %975 = vmatpush.msrb.mxu1 %v3581_v13  ;;  %1015 = vmatpush.msrb.mxu3 %v3582_v11 }
 0x1d9   : > { %956 = vmatmul.f32.vlgmr.msrb.gmra.mxu0 %v2440_v4  ;;  %976 = vmatmul.f32.vlgmr.msrb.gmra.mxu1 %v2440_v4 }
 0x1da   : > { %1016 = vmatmul.f32.vlgmr.msrb.gmra.mxu3 %v2440_v4  ;;  %992 = vmatpush.msrb.mxu2 %v3584_v3 }
 0x1dc   : > { %993 = vmatpush.msrb.mxu2 %v3585_v6 }
 0x1de   : > { %994 = vmatpush.msrb.mxu2 %v3586_v5 }
 0x1e0   : > { %995 = vmatpush.msrb.mxu2 %v3587_v2 }
 0x1e1   : > { %996 = vmatmul.f32.vlgmr.msrb.gmra.mxu2 %v2440_v4 }
 0x235   : > { %v886_v7 = vpop.f32.mrf.mxu1 }
 0x236   : > { %v930_v16 = vadd.f32 %v886_v7, %v846_v15 }
 0x238   : > { %v1938_v8 = vmul.f32 -1.442695, %v930_v16 }
 0x23a   : > { %2009 = vpow2.f32 %v1938_v8 }
 0x23b   : > { %v866_v9 = vpop.f32.mrf.mxu0 }
 0x23c   : > { %v929_v19 = vadd.f32 %v866_v9, %v845_v12  ;;  %v847_v12 = vld [vmem:[%s844_s19 + $0x10] sm:$0xff] }
 0x23e   : > { %v1937_v11 = vmul.f32 -1.442695, %v929_v19 }
 0x240   : > { %v2010_v13 = vpop.eup %2009  ;;  %2011 = vpow2.f32 %v1937_v11 }
 0x241   : > { %v1046_v3 = vadd.f32 1.0, %v2010_v13 }
 0x242   : > { %v926_v1 = vpop.f32.mrf.mxu3 }
 0x243   : > { %v932_v10 = vadd.f32 %v926_v1, %v848_v14  ;;  %2013 = vrcp.f32 %v1046_v3  ;;  %vm1052_vm1 = vweird.f32 %v1046_v3  ;;  %v1058_v19 = vand.u32 2147483648, %v1046_v3 }
 0x244   : > { %v1056_v1 = vand.u32 2147483647, %v1046_v3 }
 0x245   : > { %v1939_v4 = vmul.f32 -1.442695, %v932_v10 }
 0x246   : > { %v2012_v6 = vpop.eup %2011  ;;  %vm3227_vm4 = vcmp.eq.f32.partialorder %v1056_v1, 8.507059e+37 }
 0x247   : > { %2015 = vpow2.f32 %v1939_v4  ;;  %v1027_v2 = vadd.f32 1.0, %v2012_v6 }
 0x249   : > { %v2014_v5 = vpop.eup %2013  ;;  %2017 = vrcp.f32 %v1027_v2  ;;  %vm1033_vm5 = vweird.f32 %v1027_v2 }
 0x24a   : > { %v1048_v7 = vmul.f32 %v2014_v5, %v1046_v3  ;;  %vm1053_vm2 = vweird.f32 %v2014_v5 }
 0x24b   : > { %vm3223_vm3 = vmor %vm1052_vm1, %vm1053_vm2 }
 0x24c   : > { %v1049_v8 = vsub.f32 1.0, %v1048_v7  ;;  %v906_v9 = vpop.f32.mrf.mxu2 }
 0x24d   : > { %v2016_v15 = vpop.eup %2015  ;;  %v931_v13 = vadd.f32 %v906_v9, %v847_v12  ;;  %v1037_v12 = vand.u32 2147483647, %v1027_v2  ;;  %v1039_v9 = vand.u32 2147483648, %v1027_v2 }
 0x24e   : > { %v3218_v16 = vadd.f32 1.0, %v2016_v15  ;;  %v1050_v14 = vmul.f32 %v2014_v5, %v1049_v8  ;;  %v1059_v15 = vor.u32 1.1754944e-38, %v1058_v19  ;;  %v936_v8 = vld [vmem:[%s3231_s22] sm:$0xff] }
 0x24f   : > { %v2018_v10 = vpop.eup %2017  ;;  %vm1038_vm8 = vcmp.eq.f32.partialorder %v1037_v12, 8.507059e+37  ;;  %v938_v12 = vld [vmem:[%s3231_s22 + $0x10] sm:$0xff] }
 0x250   : > { %2019 = vrcp.f32 %v3218_v16  ;;  %v1051_v11 = vadd.f32 %v2014_v5, %v1050_v14  ;;  %v1029_v6 = vmul.f32 %v2018_v10, %v1027_v2  ;;  %vm1034_vm6 = vweird.f32 %v2018_v10 }
 0x251   : > { %2021 = vtanh.f32 %v931_v13  ;;  %vm3238_vm7 = vmor %vm1033_vm5, %vm1034_vm6  ;;  %v1040_v2 = vor.u32 1.1754944e-38, %v1039_v9  ;;  %vm1072_vm9 = vweird.f32 %v3218_v16 }
 0x252   : > { %v1030_v17 = vsub.f32 1.0, %v1029_v6  ;;  %v1055_v1 = vsel %vm3223_vm3, %v2014_v5, %v1051_v11 }
 0x253   : > { %v1060_v13 = vsel %vm3227_vm4, %v1059_v15, %v1055_v1 }
 0x254   : > { %v1031_v25 = vmul.f32 %v2018_v10, %v1030_v17  ;;  %v1082_v17 = vmul.f32 %v2444_v20, %v1060_v13 }
 0x256   : > { %v2020_v3 = vpop.eup %2019  ;;  %v957_v14 = vpop.f32.mrf.mxu0  ;;  %v1032_v28 = vadd.f32 %v2018_v10, %v1031_v25 }
 0x257   : > { %v1068_v19 = vmul.f32 %v2020_v3, %v3218_v16  ;;  %v977_v21 = vpop.f32.mrf.mxu1  ;;  %v1020_v22 = vadd.f32 %v957_v14, %v936_v8  ;;  %v2022_v4 = vpop.eup %2021  ;;  %vm1073_vm10 = vweird.f32 %v2020_v3 }
 0x258   : > { %v1021_v23 = vadd.f32 %v977_v21, %v937_v0  ;;  %v1036_v21 = vsel %vm3238_vm7, %v2018_v10, %v1032_v28  ;;  %vm3251_vm11 = vmor %vm1072_vm9, %vm1073_vm10  ;;  %vm1423_vm9 = vcmask (%p833_p0), 7168  }
 0x259   : > { %v1069_v24 = vsub.f32 1.0, %v1068_v19  ;;  %v1940_v6 = vmul.f32 -1.442695, %v1020_v22  ;;  %v1041_v11 = vsel %vm1038_vm8, %v1040_v2, %v1036_v21  ;;  %v1078_v22 = vand.u32 2147483648, %v3218_v16 }
 0x25a   : > { %v1941_v27 = vmul.f32 -1.442695, %v1021_v23  ;;  %v1083_v23 = vmul.f32 %v2022_v4, %v1041_v11 }
 0x25b   : > { %v1070_v5 = vmul.f32 %v2020_v3, %v1069_v24  ;;  %2023 = vpow2.f32 %v1940_v6  ;;  %v1076_v24 = vand.u32 2147483647, %v3218_v16  ;;  %v1079_v10 = vor.u32 1.1754944e-38, %v1078_v22 }
 0x25c   : > { %2025 = vpow2.f32 %v1941_v27  ;;  %v3255_v20 = vadd.f32 %v1083_v23, %v1082_v17  }
 0x25d   : > { %v1017_v0 = vpop.f32.mrf.mxu3  ;;  %v1071_v25 = vadd.f32 %v2020_v3, %v1070_v5  ;;  %vm1077_vm12 = vcmp.eq.f32.partialorder %v1076_v24, 8.507059e+37 }
 0x25e   : > { %v1023_v15 = vadd.f32 %v1017_v0, %v939_v29 }
 0x25f   : > { %v1075_v8 = vsel %vm3251_vm11, %v2020_v3, %v1071_v25 }
 0x260   : > { %v1942_v7 = vmul.f32 -1.442695, %v1023_v15  ;;  %v1080_v9 = vsel %vm1077_vm12, %v1079_v10, %v1075_v8 }
 0x261   : > { %v2024_v27 = vpop.eup %2023 }
 0x262   : > { %2027 = vpow2.f32 %v1942_v7  ;;  %v2026_v28 = vpop.eup %2025  ;;  %v1090_v29 = vadd.f32 1.0, %v2024_v27 }
 0x263   : > { %2029 = vtanh.f32 %v3255_v20  ;;  %v1109_v16 = vadd.f32 1.0, %v2026_v28  ;;  %v1180_v20 = vld [vmem:[#allocation19 + $0x20] sm:$0xff] (%p833_p0) }
 0x264   : > { %2031 = vrcp.f32 %v1090_v29  ;;  %v997_v14 = vpop.f32.mrf.mxu2  ;;  %v1102_v0 = vand.u32 2147483648, %v1090_v29  ;;  %v1100_v23 = vand.u32 2147483647, %v1090_v29  ;;  %vm1096_vm15 = vweird.f32 %v1090_v29 }
 0x265   : > { %2033 = vrcp.f32 %v1109_v16  ;;  %v1022_v13 = vadd.f32 %v997_v14, %v938_v12  ;;  %v1121_v15 = vand.u32 2147483648, %v1109_v16  ;;  %v1119_v7 = vand.u32 2147483647, %v1109_v16 }
 0x266   : > { %vm1115_vm0 = vweird.f32 %v1109_v16  ;;  %v1103_v10 = vor.u32 1.1754944e-38, %v1102_v0  ;;  %vm1101_vm3 = vcmp.eq.f32.partialorder %v1100_v23, 8.507059e+37  ;;  %v1283_v23 = vld [vmem:[#allocation18 + $0x70] sm:$0xff] (%p833_p0) }
 0x267   : > { %v1122_v12 = vor.u32 1.1754944e-38, %v1121_v15  ;;  %vm1120_vm4 = vcmp.eq.f32.partialorder %v1119_v7, 8.507059e+37  ;;  %v1191_v7 = vld [vmem:[#allocation19 + $0x78] sm:$0xff] (%p833_p0) }
 0x268   : > { %v2028_v19 = vpop.eup %2027  ;;  %1228 = vmatpush.msra.mxu1 (%p833_p0), %v1191_v7 }
 0x269   : > { %v2030_v1 = vpop.eup %2029  ;;  %v1129_v2 = vadd.f32 1.0, %v2028_v19 }
 0x26a   : > { %v1086_v11 = vmul.f32 %v2030_v1, %v1080_v9   ;;  %v2032_v6 = vpop.eup %2031 }
 0x26b   : > { %2035 = vrcp.f32 %v1129_v2  ;;  %v2034_v4 = vpop.eup %2033  ;;  %v1092_v5 = vmul.f32 %v2032_v6, %v1090_v29  ;;  %vm1097_vm13 = vweird.f32 %v2032_v6  ;;  %vm1135_vm6 = vweird.f32 %v1129_v2 }
 0x26c   : > { %1152 = vst [vmem:[%s1151_s12] sm:$0xff] %v1086_v11  ;;  %v1111_v3 = vmul.f32 %v2034_v4, %v1109_v16  ;;  %2037 = vtanh.f32 %v1022_v13  ;;  %vm1116_vm14 = vweird.f32 %v2034_v4  ;;  %vm1098_vm1 = vmor %vm1096_vm15, %vm1097_vm13  ;;  %v1141_v16 = vand.u32 2147483648, %v1129_v2  ;;  %v1281_v11 = vld [vmem:[#allocation18 + $0x60] sm:$0xff] (%p833_p0) }
 0x26d   : > { %v1093_v21 = vsub.f32 1.0, %v1092_v5  ;;  %vm1117_vm2 = vmor %vm1115_vm0, %vm1116_vm14 }
 0x26e   : > { %v1112_v17 = vsub.f32 1.0, %v1111_v3  ;;  %v1142_v0 = vor.u32 1.1754944e-38, %v1141_v16  ;;  %v1193_v16 = vld [vmem:[#allocation21 + $0x8] sm:$0xff] (%p833_p0) }
 0x26f   : > { %v1094_v22 = vmul.f32 %v2032_v6, %v1093_v21 }
 0x270   : > { %v1113_v24 = vmul.f32 %v2034_v4, %v1112_v17  ;;  %v1139_v17 = vand.u32 2147483647, %v1129_v2 }
 0x271   : > { %v2036_v25 = vpop.eup %2035  ;;  %v1095_v27 = vadd.f32 %v2032_v6, %v1094_v22  ;;  %v1268_v22 = vld [vmem:[#allocation16 + $0x78] sm:$0xff] (%p833_p0) }
 0x272   : > { %v1131_v26 = vmul.f32 %v2036_v25, %v1129_v2  ;;  %v2038_v28 = vpop.eup %2037  ;;  %v1114_v8 = vadd.f32 %v2034_v4, %v1113_v24  ;;  %vm1136_vm5 = vweird.f32 %v2036_v25  ;;  %vm1140_vm8 = vcmp.eq.f32.partialorder %v1139_v17, 8.507059e+37  ;;  %v1284_v2 = vld [vmem:[#allocation18 + $0x78] sm:$0xff] (%p833_p0)  ;;  %1326 = vmatpush.msra.mxu3 (%p833_p0), %v1268_v22  ;;  %v1177_v17 = vld [vmem:[#allocation19 + $0x8] sm:$0xff] (%p833_p0)  ;;  %v1176_v22 = vld [vmem:[#allocation19] sm:$0xff] (%p833_p0) }
 0x273   : > { %v1099_v14 = vsel %vm1098_vm1, %v2032_v6, %v1095_v27  ;;  %vm1137_vm7 = vmor %vm1135_vm6, %vm1136_vm5  ;;  %1285 = vmatpush.msra.mxu2 (%p833_p0), %v1284_v2  ;;  %v1207_v24 = vld [vmem:[#allocation21 + $0x78] sm:$0xff] (%p833_p0)  ;;  %v1266_v27 = vld [vmem:[#allocation16 + $0x68] sm:$0xff] (%p833_p0) }
 0x274   : > { %v1132_v9 = vsub.f32 1.0, %v1131_v26  ;;  %v1104_v19 = vsel %vm1101_vm3, %v1103_v10, %v1099_v14  ;;  %v1118_v1 = vsel %vm1117_vm2, %v2034_v4, %v1114_v8  ;;  %1208 = vmatpush.msra.mxu0 (%p833_p0), %v1207_v24  ;;  %v1282_v26 = vld [vmem:[#allocation18 + $0x68] sm:$0xff] (%p833_p0)  ;;  %v1190_v10 = vld [vmem:[#allocation19 + $0x70] sm:$0xff] (%p833_p0)  ;;  %v1265_v8 = vld [vmem:[#allocation16 + $0x60] sm:$0xff] (%p833_p0) }
 0x275   : > { %v1123_v5 = vsel %vm1120_vm4, %v1122_v12, %v1118_v1  ;;  %v1146_v3 = vmul.f32 %v2038_v28, %v1104_v19  ;;  %v1206_v28 = vld [vmem:[#allocation21 + $0x70] sm:$0xff] (%p833_p0)  ;;  %1286 = vmatpush.msra.mxu2 (%p833_p0), %v1283_v23  ;;  %1229 = vmatpush.msra.mxu1 (%p833_p0), %v1190_v10  ;;  %v1272_v12 = vld [vmem:[#allocation18 + $0x18] sm:$0xff] (%p833_p0)  ;;  %v1192_v2 = vld [vmem:[#allocation21] sm:$0xff] (%p833_p0) }
 0x276   : > { %v1133_v13 = vmul.f32 %v2036_v25, %v1132_v9  ;;  %v1145_v21 = vmul.f32 %v2436_v18, %v1123_v5  ;;  %1209 = vmatpush.msra.mxu0 (%p833_p0), %v1206_v28  ;;  %v1256_v9 = vld [vmem:[#allocation16 + $0x18] sm:$0xff] (%p833_p0)  ;;  %v1271_v14 = vld [vmem:[#allocation18 + $0x10] sm:$0xff] (%p833_p0) }
 0x277   :  { %1287 = vmatpush.msra.mxu2 (%p833_p0), %v1282_v26  ;;  %1230 = vmatpush.msra.mxu1 (%p833_p0), %v1189_v31  ;;  %v1195_v19 = vld [vmem:[#allocation21 + $0x18] sm:$0xff] (%p833_p0)  ;;  %v1194_v5 = vld [vmem:[#allocation21 + $0x10] sm:$0xff] (%p833_p0) }
 0x278   : > { %v1147_v18 = vadd.f32 %v1146_v3, %v1145_v21   ;;  %v1134_v29 = vadd.f32 %v2036_v25, %v1133_v13  ;;  %1210 = vmatpush.msra.mxu0 (%p833_p0), %v1205_v30  ;;  %v1179_v1 = vld [vmem:[#allocation19 + $0x18] sm:$0xff] (%p833_p0)  ;;  %v1255_v13 = vld [vmem:[#allocation16 + $0x10] sm:$0xff] (%p833_p0)  ;;  %v1270_v21 = vld [vmem:[#allocation18 + $0x8] sm:$0xff] (%p833_p0) }
 0x279   :  { %1288 = vmatpush.msra.mxu2 (%p833_p0), %v1281_v11  ;;  %1231 = vmatpush.msra.mxu1 (%p833_p0), %v1188_v33  ;;  %v1178_v3 = vld [vmem:[#allocation19 + $0x10] sm:$0xff] (%p833_p0)  ;;  %v3291_v7 = vld [vmem:[#allocation4 + $0x8] sm:$0xff] (%p833_p0)  ;;  %v3321_v33 = vld [vmem:[#allocation4 + $0x30] sm:$0xff] (%p833_p0) }
 0x27a   : > { %2039 = vtanh.f32 %v1147_v18  ;;  %v1138_v6 = vsel %vm1137_vm7, %v2036_v25, %v1134_v29  ;;  %v1267_v25 = vld [vmem:[#allocation16 + $0x70] sm:$0xff] (%p833_p0)  ;;  %1211 = vmatpush.msra.mxu0 (%p833_p0), %v1204_v32  ;;  %v1196_v18 = vld [vmem:[#allocation21 + $0x20] sm:$0xff] (%p833_p0)  ;;  %v1254_v29 = vld [vmem:[#allocation16 + $0x8] sm:$0xff] (%p833_p0) }
 0x27b   : > { %v1143_v15 = vsel %vm1140_vm8, %v1142_v0, %v1138_v6  ;;  %1327 = vmatpush.msra.mxu3 (%p833_p0), %v1267_v25  ;;  %1289 = vmatpush.msra.mxu2 (%p833_p0), %v1280_v34  ;;  %v1269_v6 = vld [vmem:[#allocation18] sm:$0xff] (%p833_p0)  ;;  %v3283_v25 = vld [vmem:[#allocation4 + $0x38] sm:$0xff] (%p833_p0)  ;;  %v2044_v34 = vld [vmem:[%s3387_s9] ss:$0 sm:$0xff] (%p833_p0) }
 0x27c   :  { %1212 = vmatpush.msra.mxu0 (%p833_p0), %v1203_v36  ;;  %1232 = vmatpush.msra.mxu1 (%p833_p0), %v1187_v37  ;;  %v1253_v0 = vld [vmem:[#allocation16] sm:$0xff] (%p833_p0)  ;;  %v3303_v10 = vld [vmem:[#allocation4 + $0x18] sm:$0xff] (%p833_p0) }
 0x27d   :  { %1328 = vmatpush.msra.mxu3 (%p833_p0), %v1266_v27  ;;  %1290 = vmatpush.msra.mxu2 (%p833_p0), %v1279_v38  ;;  %v3297_v27 = vld [vmem:[#allocation4 + $0x10] sm:$0xff] (%p833_p0)  ;;  %v3315_v31 = vld [vmem:[#allocation4 + $0x28] sm:$0xff] (%p833_p0) }
 0x27e   :  { %1213 = vmatpush.msra.mxu0 (%p833_p0), %v1202_v40  ;;  %1233 = vmatpush.msra.mxu1 (%p833_p0), %v1186_v41 }
 0x27f   :  { %835 = sbr.rel (!%p833_p0) target bundleno = 409 (0x199), region = 149  ;;  %1329 = vmatpush.msra.mxu3 (%p833_p0), %v1265_v8  ;;  %1291 = vmatpush.msra.mxu2 (%p833_p0), %v1278_v42  ;;  %v3309_v8 = vld [vmem:[#allocation4 + $0x20] sm:$0xff] (%p833_p0) }
 0x280   : > { %v2040_v4 = vpop.eup %2039  ;;  %1214 = vmatpush.msra.mxu0 (%p833_p0), %v1201_v44  ;;  %1234 = vmatpush.msra.mxu1 (%p833_p0), %v1185_v45  ;;  %v2045_v45 = vld [vmem:[%s3388_s10] ss:$0 sm:$0xff] (%p833_p0) }
 0x281   : > { %v1149_v4 = vmul.f32 %v2040_v4, %v1143_v15   ;;  %1330 = vmatpush.msra.mxu3 (%p833_p0), %v1264_v35  ;;  %1292 = vmatpush.msra.mxu2 (%p833_p0), %v1277_v46  ;;  %v3279_v15 = vld [vmem:[#allocation4] sm:$0xff] (%p833_p0) }
 0x282   :  { %1215 = vmatpush.msra.mxu0 (%p833_p0), %v1200_v48  ;;  %1235 = vmatpush.msra.mxu1 (%p833_p0), %v1184_v49 }
 0x283   : > { %1155 = vst [vmem:[%s1154_s27] sm:$0xff] %v1149_v4  ;;  %1331 = vmatpush.msra.mxu3 (%p833_p0), %v1263_v39  ;;  %1293 = vmatpush.msra.mxu2 (%p833_p0), %v1276_v50 }
 0x284   :  { %1216 = vmatpush.msra.mxu0 %v1199_v52  ;;  %1236 = vmatpush.msra.mxu1 %v1183_v53 }
 0x285   :  { %1332 = vmatpush.msra.mxu3 %v1262_v43  ;;  %1294 = vmatpush.msra.mxu2 %v1275_v54 }
 0x286   :  { %1217 = vmatpush.msra.mxu0 %v1198_v56  ;;  %1237 = vmatpush.msra.mxu1 %v1182_v57 }
 0x287   :  { %1333 = vmatpush.msra.mxu3 %v1261_v47  ;;  %1295 = vmatpush.msra.mxu2 %v1274_v58 }
 0x288   :  { %1218 = vmatpush.msra.mxu0 %v1197_v60  ;;  %1238 = vmatpush.msra.mxu1 %v1181_v61 }
 0x289   :  { %1334 = vmatpush.msra.mxu3 %v1260_v51  ;;  %1296 = vmatpush.msra.mxu2 %v1273_v62 }
 0x28a   :  { %1219 = vmatpush.msra.mxu0 %v1196_v18  ;;  %1239 = vmatpush.msra.mxu1 %v1180_v20  ;;  %v3277_v4 = vld [vmem:[#allocation5] sm:$0xff]  ;;  %v3281_v23 = vld [vmem:[#allocation5 + $0x38] sm:$0xff]  ;;  %v3289_v24 = vld [vmem:[#allocation5 + $0x8] sm:$0xff] }
 0x28b   :  { %1335 = vmatpush.msra.mxu3 %v1259_v55  ;;  %1297 = vmatpush.msra.mxu2 %v1272_v12  ;;  %v3295_v26 = vld [vmem:[#allocation5 + $0x10] sm:$0xff]  ;;  %v3301_v28 = vld [vmem:[#allocation5 + $0x18] sm:$0xff]  ;;  %v3307_v11 = vld [vmem:[#allocation5 + $0x20] sm:$0xff] }
 0x28c   :  { %1220 = vmatpush.msra.mxu0 %v1195_v19  ;;  %1240 = vmatpush.msra.mxu1 %v1179_v1  ;;  %v3313_v30 = vld [vmem:[#allocation5 + $0x28] sm:$0xff]  ;;  %v3319_v32 = vld [vmem:[#allocation5 + $0x30] sm:$0xff] }
 0x28d   :  { %1336 = vmatpush.msra.mxu3 %v1258_v59  ;;  %1298 = vmatpush.msra.mxu2 %v1271_v14 }
 0x28e   :  { %1221 = vmatpush.msra.mxu0 %v1194_v5  ;;  %1241 = vmatpush.msra.mxu1 %v1178_v3 }
 0x28f   :  { %1337 = vmatpush.msra.mxu3 %v1257_v63  ;;  %1299 = vmatpush.msra.mxu2 %v1270_v21 }
 0x290   :  { %1222 = vmatpush.msra.mxu0 %v1193_v16  ;;  %1242 = vmatpush.msra.mxu1 %v1177_v17 }
 0x291   :  { %1338 = vmatpush.msra.mxu3 %v1256_v9  ;;  %1300 = vmatpush.msra.mxu2 %v1269_v6 }
 0x292   :  { %1301 = vmatmul.f32.vlgmr.msra.gmra.mxu2 %v3277_v4  ;;  %1223 = vmatpush.msra.mxu0 %v1192_v2 }
 0x293   :  { %1339 = vmatpush.msra.mxu3 %v1255_v13  ;;  %1243 = vmatpush.msra.mxu1 %v1176_v22 }
 0x294   :  { %1224 = vmatmul.f32.vlgmr.msra.gmra.mxu0 %v3281_v23  ;;  %1244 = vmatmul.f32.vlgmr.msra.gmra.mxu1 %v3283_v25 }
 0x295   :  { %1340 = vmatpush.msra.mxu3 %v1254_v29 }
 0x297   :  { %1341 = vmatpush.msra.mxu3 %v1253_v0 }
 0x298   :  { %1342 = vmatmul.f32.vlgmr.msra.gmra.mxu3 %v3279_v15 }
 0x29a   :  { %1304 = vmatmul.f32.gmra.mxu2 %v3289_v24 }
 0x2a0   :  { %1345 = vmatmul.f32.gmra.mxu3 %v3291_v7 }
 0x2a2   :  { %1307 = vmatmul.f32.gmra.mxu2 %v3295_v26 }
 0x2a8   :  { %1348 = vmatmul.f32.gmra.mxu3 %v3297_v27 }
 0x2aa   :  { %1310 = vmatmul.f32.gmra.mxu2 %v3301_v28 }
 0x2b0   :  { %1351 = vmatmul.f32.gmra.mxu3 %v3303_v10 }
 0x2b2   :  { %1313 = vmatmul.f32.gmra.mxu2 %v3307_v11 }
 0x2b8   :  { %1354 = vmatmul.f32.gmra.mxu3 %v3309_v8 }
 0x2ba   :  { %1316 = vmatmul.f32.gmra.mxu2 %v3313_v30 }
 0x2c0   :  { %1357 = vmatmul.f32.gmra.mxu3 %v3315_v31 }
 0x2c2   :  { %1319 = vmatmul.f32.gmra.mxu2 %v3319_v32 }
 0x2c8   :  { %1360 = vmatmul.f32.gmra.mxu3 %v3321_v33 }
 0x2ca   :  { %1322 = vmatmul.f32.gmra.mxu2 %v3281_v23 }
 0x2d0   :  { %1363 = vmatmul.f32.gmra.mxu3 %v3283_v25 }
 0x311   :  { %v1225_v35 = vpop.f32.mrf.mxu0  ;;  %v1245_v36 = vpop.f32.mrf.mxu1 }
 0x312   :  { %v1246_v37 = vadd.f32 %v1245_v36, %v1225_v35 }
 0x314   :  { %v1252_v38 = vadd.f32 %v2044_v34, %v1246_v37 }
 0x315   :  { %v1302_v39 = vpop.f32.mrf.mxu2 }
 0x31b   :  { %v1343_v40 = vpop.f32.mrf.mxu3 }
 0x31c   :  { %v1344_v41 = vadd.f32 %v1343_v40, %v1302_v39 }
 0x31d   :  { %v1305_v43 = vpop.f32.mrf.mxu2 }
 0x31e   :  { %v1367_v42 = vadd.f32 %v1344_v41, %v1252_v38 }
 0x320   :  { %2048 = vtanh.f32 %v1367_v42 }
 0x323   :  { %v1346_v44 = vpop.f32.mrf.mxu3 }
 0x324   :  { %v1347_v46 = vadd.f32 %v1346_v44, %v1305_v43 }
 0x325   :  { %v1308_v50 = vpop.f32.mrf.mxu2 }
 0x326   :  { %v2049_v47 = vpop.eup %2048  ;;  %v1368_v48 = vadd.f32 %v1347_v46, %v1252_v38  ;;  %v2474_v46 = vmov 0  }
 0x327   :  { %v1387_v49 = vmul.f32 %v2049_v47, %v2045_v45  ;;  %2043 = vset.pattern.permute.xlu1 %v2474_v46  ;;  %2042 = vset.pattern.permute.xlu0 %v2474_v46 }
 0x328   :  { %2050 = vtanh.f32 %v1368_v48  ;;  %2041 = vset.pattern.permute.xlu2 %v2474_v46 }
 0x329   :  { %1395 = vadd.xlane.f32.xlu0 %v1387_v49  ;;  %v2046_v49 = vld [vmem:[#allocation6] ss:$0 sm:$0xff] }
 0x32b   :  { %v1349_v51 = vpop.f32.mrf.mxu3 }
 0x32c   :  { %v1350_v52 = vadd.f32 %v1349_v51, %v1308_v50 }
 0x32d   :  { %v1311_v56 = vpop.f32.mrf.mxu2 }
 0x32e   :  { %v2051_v53 = vpop.eup %2050  ;;  %v1369_v54 = vadd.f32 %v1350_v52, %v1252_v38 }
 0x32f   :  { %v1388_v55 = vmul.f32 %v2051_v53, %v2045_v45 }
 0x330   :  { %2052 = vtanh.f32 %v1369_v54 }
 0x331   :  { %1397 = vadd.xlane.f32.xlu0 %v1388_v55 }
 0x333   :  { %v1352_v57 = vpop.f32.mrf.mxu3 }
 0x334   :  { %v1353_v58 = vadd.f32 %v1352_v57, %v1311_v56 }
 0x335   :  { %v1314_v62 = vpop.f32.mrf.mxu2 }
 0x336   :  { %v2053_v59 = vpop.eup %2052  ;;  %v1370_v60 = vadd.f32 %v1353_v58, %v1252_v38 }
 0x337   :  { %v1389_v61 = vmul.f32 %v2053_v59, %v2045_v45 }
 0x338   :  { %2054 = vtanh.f32 %v1370_v60 }
 0x339   :  { %1399 = vadd.xlane.f32.xlu1 %v1389_v61 }
 0x33b   :  { %v1355_v63 = vpop.f32.mrf.mxu3 }
 0x33c   :  { %v1356_v18 = vadd.f32 %v1355_v63, %v1314_v62 }
 0x33d   :  { %v1317_v14 = vpop.f32.mrf.mxu2 }
 0x33e   :  { %v2055_v20 = vpop.eup %2054  ;;  %v1371_v12 = vadd.f32 %v1356_v18, %v1252_v38 }
 0x33f   :  { %v1390_v9 = vmul.f32 %v2055_v20, %v2045_v45 }
 0x340   :  { %2056 = vtanh.f32 %v1371_v12 }
 0x341   :  { %1401 = vadd.xlane.f32.xlu1 %v1390_v9 }
 0x343   :  { %v1358_v19 = vpop.f32.mrf.mxu3 }
 0x344   :  { %v1359_v1 = vadd.f32 %v1358_v19, %v1317_v14 }
 0x345   :  { %v1320_v21 = vpop.f32.mrf.mxu2 }
 0x346   :  { %v2057_v13 = vpop.eup %2056  ;;  %v1372_v5 = vadd.f32 %v1359_v1, %v1252_v38 }
 0x347   :  { %v1391_v3 = vmul.f32 %v2057_v13, %v2045_v45 }
 0x348   :  { %2058 = vtanh.f32 %v1372_v5 }
 0x349   :  { %1403 = vadd.xlane.f32.xlu2 %v1391_v3 }
 0x34b   :  { %v1361_v29 = vpop.f32.mrf.mxu3 }
 0x34c   :  { %v1362_v16 = vadd.f32 %v1361_v29, %v1320_v21 }
 0x34d   :  { %v1323_v2 = vpop.f32.mrf.mxu2 }
 0x34e   :  { %v2059_v17 = vpop.eup %2058  ;;  %v1373_v6 = vadd.f32 %v1362_v16, %v1252_v38 }
 0x34f   :  { %v1392_v0 = vmul.f32 %v2059_v17, %v2045_v45 }
 0x350   :  { %2060 = vtanh.f32 %v1373_v6 }
 0x351   :  { %1405 = vadd.xlane.f32.xlu2 %v1392_v0 }
 0x353   :  { %v1364_v22 = vpop.f32.mrf.mxu3 }
 0x354   :  { %v1365_v34 = vadd.f32 %v1364_v22, %v1323_v2 }
 0x356   :  { %v2061_v35 = vpop.eup %2060  ;;  %v1374_v36 = vadd.f32 %v1365_v34, %v1252_v38 }
 0x357   :  { %v1393_v37 = vmul.f32 %v2061_v35, %v2045_v45 }
 0x358   :  { %2062 = vtanh.f32 %v1374_v36 }
 0x359   :  { %1407 = vadd.xlane.f32.xlu0 %v1393_v37 }
 0x35e   :  { %v2063_v39 = vpop.eup %2062 }
 0x35f   :  { %v1394_v40 = vmul.f32 %v2063_v39, %v2045_v45 }
 0x361   :  { %1409 = vadd.xlane.f32.xlu1 %v1394_v40 }
 0x39c   :  { %v1396_v41 = vpop.xlane.xlu0 %1395 }
 0x39d   :  { %v1415_v54 = vadd.f32 %v2046_v49, %v1396_v41 }
 0x39f   :  { %v1424_v63 = vsel %vm1423_vm9, %v1415_v54, -inf }
 0x3a4   :  { %v1398_v44 = vpop.xlane.xlu0 %1397 }
 0x3a5   :  { %v1416_v38 = vadd.f32 %v2046_v49, %v1398_v44 }
 0x3a7   :  { %v1425_v58 = vsel %vm1423_vm9, %v1416_v38, -inf }
 0x3ac   :  { %v1400_v42 = vpop.xlane.xlu1 %1399 }
 0x3ad   :  { %v1417_v45 = vadd.f32 %v2046_v49, %v1400_v42 }
 0x3af   :  { %v1426_v18 = vsel %vm1423_vm9, %v1417_v45, -inf }
 0x3b4   :  { %v1402_v47 = vpop.xlane.xlu1 %1401 }
 0x3b5   :  { %v1418_v55 = vadd.f32 %v2046_v49, %v1402_v47 }
 0x3b7   :  { %v1427_v20 = vsel %vm1423_vm9, %v1418_v55, -inf }
 0x3bc   :  { %v1404_v43 = vpop.xlane.xlu2 %1403 }
 0x3bd   :  { %v1419_v52 = vadd.f32 %v2046_v49, %v1404_v43 }
 0x3bf   :  { %v1428_v59 = vsel %vm1423_vm9, %v1419_v52, -inf }
 0x3c0   :  { %v1429_v9 = vmax.f32 %v1424_v63, %v1428_v59 }
 0x3c4   :  { %v1406_v48 = vpop.xlane.xlu2 %1405 }
 0x3c5   :  { %v1420_v51 = vadd.f32 %v2046_v49, %v1406_v48 }
 0x3c7   :  { %v1430_v56 = vsel %vm1423_vm9, %v1420_v51, -inf }
 0x3c8   :  { %v1431_v62 = vmax.f32 %v1425_v58, %v1430_v56 }
 0x3ca   :  { %v1436_v1 = vmax.f32 %v1429_v9, %v1431_v62 }
 0x3cc   :  { %v1408_v50 = vpop.xlane.xlu0 %1407 }
 0x3cd   :  { %v1421_v53 = vadd.f32 %v2046_v49, %v1408_v50 }
 0x3cf   :  { %v1432_v60 = vsel %vm1423_vm9, %v1421_v53, -inf }
 0x3d0   :  { %v1433_v14 = vmax.f32 %v1426_v18, %v1432_v60 }
 0x3d4   :  { %v1410_v57 = vpop.xlane.xlu1 %1409 }
 0x3d5   :  { %v1422_v61 = vadd.f32 %v2046_v49, %v1410_v57 }
 0x3d7   :  { %v1434_v12 = vsel %vm1423_vm9, %v1422_v61, -inf }
 0x3d8   :  { %v1435_v19 = vmax.f32 %v1427_v20, %v1434_v12 }
 0x3da   :  { %v1437_v13 = vmax.f32 %v1433_v14, %v1435_v19 }
 0x3dc   :  { %v1438_v5 = vmax.f32 %v1436_v1, %v1437_v13  ;;  %v1632_v1 = vld [vmem:[#allocation24 + $0xf0] sm:$0xff]  ;;  %v1633_v13 = vld [vmem:[#allocation24 + $0xf8] sm:$0xff] }
 0x3dd   :  { %1634 = vmatpush.msrb.mxu0 %v1632_v1  ;;  %1654 = vmatpush.msrb.mxu1 %v1633_v13  ;;  %v1596_v1 = vld [vmem:[#allocation22 + $0xd0] sm:$0xff]  ;;  %v1597_v13 = vld [vmem:[#allocation22 + $0xd8] sm:$0xff] }
 0x3de   :  { %v1439_v3 = vsub.f32 %v1415_v54, %v1438_v5  ;;  %v1440_v21 = vsub.f32 %v1416_v38, %v1438_v5  ;;  %v1441_v29 = vsub.f32 %v1417_v45, %v1438_v5  ;;  %v1442_v16 = vsub.f32 %v1418_v55, %v1438_v5 }
 0x3df   :  { %v1443_v17 = vsub.f32 %v1419_v52, %v1438_v5  ;;  %v1444_v22 = vsub.f32 %v1420_v51, %v1438_v5  ;;  %v1445_v35 = vsub.f32 %v1421_v53, %v1438_v5  ;;  %v1446_v37 = vsub.f32 %v1422_v61, %v1438_v5  ;;  %v1630_v5 = vld [vmem:[#allocation24 + $0xe0] sm:$0xff] }
 0x3e0   :  { %v1447_v6 = vmul.f32 1.442695, %v1439_v3  ;;  %v1449_v0 = vmul.f32 1.442695, %v1440_v21  ;;  %v1451_v2 = vmul.f32 1.442695, %v1441_v29  ;;  %1635 = vmatpush.msrb.mxu0 %v1630_v5 }
 0x3e1   :  { %v1453_v34 = vmul.f32 1.442695, %v1442_v16  ;;  %v1455_v36 = vmul.f32 1.442695, %v1443_v17  ;;  %v1457_v39 = vmul.f32 1.442695, %v1444_v22 }
 0x3e2   :  { %2064 = vpow2.f32 %v1447_v6  ;;  %v1459_v40 = vmul.f32 1.442695, %v1445_v35  ;;  %v1461_v43 = vmul.f32 1.442695, %v1446_v37  ;;  %v1631_v21 = vld [vmem:[#allocation24 + $0xe8] sm:$0xff]  ;;  %v1628_v16 = vld [vmem:[#allocation24 + $0xd0] sm:$0xff] }
 0x3e3   :  { %2066 = vpow2.f32 %v1449_v0  ;;  %1655 = vmatpush.msrb.mxu1 %v1631_v21  ;;  %v1629_v6 = vld [vmem:[#allocation24 + $0xd8] sm:$0xff]  ;;  %1636 = vmatpush.msrb.mxu0 %v1628_v16  ;;  %v1626_v35 = vld [vmem:[#allocation24 + $0xc0] sm:$0xff]  ;;  %v1624_v37 = vld [vmem:[#allocation24 + $0xb0] sm:$0xff] }
 0x3e4   :  { %2068 = vpow2.f32 %v1451_v2  ;;  %v1594_v5 = vld [vmem:[#allocation22 + $0xc0] sm:$0xff]  ;;  %v1592_v21 = vld [vmem:[#allocation22 + $0xb0] sm:$0xff] }
 0x3e5   :  { %2070 = vpow2.f32 %v1453_v34  ;;  %1656 = vmatpush.msrb.mxu1 %v1629_v6  ;;  %1637 = vmatpush.msrb.mxu0 %v1626_v35  ;;  %v1590_v16 = vld [vmem:[#allocation22 + $0xa0] sm:$0xff]  ;;  %v1588_v6 = vld [vmem:[#allocation22 + $0x90] sm:$0xff] }
 0x3e6   :  { %2072 = vpow2.f32 %v1455_v36  ;;  %v1627_v36 = vld [vmem:[#allocation24 + $0xc8] sm:$0xff]  ;;  %v1584_v35 = vld [vmem:[#allocation22 + $0x70] sm:$0xff] }
 0x3e7   :  { %2074 = vpow2.f32 %v1457_v39  ;;  %v1625_v39 = vld [vmem:[#allocation24 + $0xb8] sm:$0xff]  ;;  %1657 = vmatpush.msrb.mxu1 %v1627_v36  ;;  %1638 = vmatpush.msrb.mxu0 %v1624_v37  ;;  %v1582_v37 = vld [vmem:[#allocation22 + $0x60] sm:$0xff] }
 0x3e8   :  { %v2065_v41 = vpop.eup %2064  ;;  %2076 = vpow2.f32 %v1459_v40  ;;  %v1585_v36 = vld [vmem:[#allocation22 + $0x78] sm:$0xff] }
 0x3e9   :  { %v2067_v42 = vpop.eup %2066  ;;  %v1463_v44 = vsel %vm1423_vm9, %v2065_v41, 0.0  ;;  %2078 = vpow2.f32 %v1461_v43  ;;  %1658 = vmatpush.msrb.mxu1 %v1625_v39  ;;  %v1583_v39 = vld [vmem:[#allocation22 + $0x68] sm:$0xff] }
 0x3ea   :  { %v2069_v46 = vpop.eup %2068  ;;  %v1464_v47 = vsel %vm1423_vm9, %v2067_v42, 0.0 }
 0x3eb   :  { %v2071_v48 = vpop.eup %2070  ;;  %v1465_v49 = vadd.f32 %v1464_v47, %v1463_v44  ;;  %v1466_v50 = vsel %vm1423_vm9, %v2069_v46, 0.0  ;;  %v1623_v47 = vld [vmem:[#allocation24 + $0xa8] sm:$0xff] }
 0x3ec   :  { %v2073_v51 = vpop.eup %2072  ;;  %v1468_v52 = vsel %vm1423_vm9, %v2071_v48, 0.0  ;;  %1659 = vmatpush.msrb.mxu1 %v1623_v47 }
 0x3ed   :  { %v1467_v38 = vadd.f32 %v1466_v50, %v1465_v49  ;;  %v2075_v53 = vpop.eup %2074  ;;  %v1470_v45 = vsel %vm1423_vm9, %v2073_v51, 0.0  ;;  %v1620_v49 = vld [vmem:[#allocation24 + $0x90] sm:$0xff]  ;;  %v1621_v50 = vld [vmem:[#allocation24 + $0x98] sm:$0xff] }
 0x3ee   :  { %v2077_v55 = vpop.eup %2076  ;;  %v1472_v57 = vsel %vm1423_vm9, %v2075_v53, 0.0  ;;  %1660 = vmatpush.msrb.mxu1 %v1621_v50  ;;  %v1575_v50 = vld [vmem:[#allocation22 + $0x28] sm:$0xff] }
 0x3ef   :  { %v1469_v54 = vadd.f32 %v1468_v52, %v1467_v38  ;;  %v2079_v58 = vpop.eup %2078  ;;  %v1474_v60 = vsel %vm1423_vm9, %v2077_v55, 0.0  ;;  %v1618_v38 = vld [vmem:[#allocation24 + $0x80] sm:$0xff]  ;;  %v1619_v52 = vld [vmem:[#allocation24 + $0x88] sm:$0xff] }
 0x3f0   :  { %v1476_v62 = vsel %vm1423_vm9, %v2079_v58, 0.0  ;;  %1661 = vmatpush.msrb.mxu1 %v1619_v52  ;;  %v1573_v52 = vld [vmem:[#allocation22 + $0x18] sm:$0xff] }
 0x3f1   :  { %v1471_v56 = vadd.f32 %v1470_v45, %v1469_v54  ;;  %v1615_v54 = vld [vmem:[#allocation24 + $0x68] sm:$0xff]  ;;  %v1612_v45 = vld [vmem:[#allocation24 + $0x50] sm:$0xff] }
 0x3f3   :  { %v1473_v59 = vadd.f32 %v1472_v57, %v1471_v56  ;;  %v1610_v56 = vld [vmem:[#allocation24 + $0x40] sm:$0xff]  ;;  %v1611_v57 = vld [vmem:[#allocation24 + $0x48] sm:$0xff] }
 0x3f5   :  { %v1475_v61 = vadd.f32 %v1474_v60, %v1473_v59  ;;  %v1609_v59 = vld [vmem:[#allocation24 + $0x38] sm:$0xff]  ;;  %v1606_v60 = vld [vmem:[#allocation24 + $0x20] sm:$0xff] }
 0x3f7   :  { %v1477_v63 = vadd.f32 %v1476_v62, %v1475_v61  ;;  %v1607_v61 = vld [vmem:[#allocation24 + $0x28] sm:$0xff]  ;;  %v1604_v62 = vld [vmem:[#allocation24 + $0x10] sm:$0xff] }
 0x3f9   :  { %2080 = vrcp.f32 %v1477_v63  ;;  %v1489_v9 = vand.u32 2147483648, %v1477_v63  ;;  %v1487_v19 = vand.u32 2147483647, %v1477_v63  ;;  %vm1483_vm11 = vweird.f32 %v1477_v63 }
 0x3fb   :  { %v1490_v29 = vor.u32 1.1754944e-38, %v1489_v9  ;;  %vm1488_vm13 = vcmp.eq.f32.partialorder %v1487_v19, 8.507059e+37  ;;  %v1601_v9 = vld [vmem:[#allocation22 + $0xf8] sm:$0xff]  ;;  %v1599_v19 = vld [vmem:[#allocation22 + $0xe8] sm:$0xff] }
 0x3ff   :  { %v2081_v18 = vpop.eup %2080 }
 0x400   :  { %v1479_v20 = vmul.f32 %v2081_v18, %v1477_v63  ;;  %vm1484_vm10 = vweird.f32 %v2081_v18  ;;  %v1605_v63 = vld [vmem:[#allocation24 + $0x18] sm:$0xff] }
 0x401   :  { %vm1485_vm12 = vmor %vm1483_vm11, %vm1484_vm10 }
 0x402   :  { %v1480_v12 = vsub.f32 1.0, %v1479_v20  ;;  %v1603_v20 = vld [vmem:[#allocation24 + $0x8] sm:$0xff] }
 0x404   :  { %v1481_v14 = vmul.f32 %v2081_v18, %v1480_v12  ;;  %v1600_v12 = vld [vmem:[#allocation22 + $0xf0] sm:$0xff] }
 0x406   :  { %v1482_v3 = vadd.f32 %v2081_v18, %v1481_v14  ;;  %v1598_v14 = vld [vmem:[#allocation22 + $0xe0] sm:$0xff] }
 0x408   :  { %v1486_v17 = vsel %vm1485_vm12, %v2081_v18, %v1482_v3  ;;  %v1602_v18 = vld [vmem:[#allocation24] sm:$0xff]  ;;  %v1595_v3 = vld [vmem:[#allocation22 + $0xc8] sm:$0xff] }
 0x409   :  { %v1491_v0 = vsel %vm1488_vm13, %v1490_v29, %v1486_v17  ;;  %v1593_v29 = vld [vmem:[#allocation22 + $0xb8] sm:$0xff]  ;;  %v1591_v17 = vld [vmem:[#allocation22 + $0xa8] sm:$0xff] }
 0x40a   :  { %v1494_v2 = vmul.f32 %v2069_v46, %v1491_v0  ;;  %v1493_v22 = vmul.f32 %v2067_v42, %v1491_v0  ;;  %v1492_v34 = vmul.f32 %v2065_v41, %v1491_v0  ;;  %v1497_v40 = vmul.f32 %v2075_v53, %v1491_v0  ;;  %v1622_v46 = vld [vmem:[#allocation24 + $0xa0] sm:$0xff]  ;;  %v1616_v53 = vld [vmem:[#allocation24 + $0x70] sm:$0xff] }
 0x40b   :  { %v1495_v43 = vmul.f32 %v2071_v48, %v1491_v0  ;;  %v1499_v44 = vmul.f32 %v2079_v58, %v1491_v0  ;;  %v1496_v42 = vmul.f32 %v2073_v51, %v1491_v0  ;;  %v1498_v41 = vmul.f32 %v2077_v55, %v1491_v0  ;;  %1639 = vmatpush.msrb.mxu0 %v1622_v46  ;;  %v1617_v48 = vld [vmem:[#allocation24 + $0x78] sm:$0xff]  ;;  %v1614_v51 = vld [vmem:[#allocation24 + $0x60] sm:$0xff]  ;;  %v1608_v58 = vld [vmem:[#allocation24 + $0x30] sm:$0xff] }
 0x40c   :  { %1512 = vperm.xlu1 %2043, %v1494_v2   ;;  %1507 = vperm.xlu0 %2042, %v1493_v22   ;;  %v1613_v55 = vld [vmem:[#allocation24 + $0x58] sm:$0xff]  ;;  %v1586_v2 = vld [vmem:[#allocation22 + $0x80] sm:$0xff]  ;;  %v1587_v22 = vld [vmem:[#allocation22 + $0x88] sm:$0xff] }
 0x40d   :  { %1502 = vperm.xlu2 %2041, %v1492_v34   ;;  %1640 = vmatpush.msrb.mxu0 %v1620_v49  ;;  %v1589_v0 = vld [vmem:[#allocation22 + $0x98] sm:$0xff]  ;;  %v1574_v49 = vld [vmem:[#allocation22 + $0x20] sm:$0xff] }
 0x40e   :  { %1662 = vmatpush.msrb.mxu1 %v1617_v48  ;;  %v1577_v46 = vld [vmem:[#allocation22 + $0x38] sm:$0xff]  ;;  %v1571_v48 = vld [vmem:[#allocation22 + $0x8] sm:$0xff] }
 0x40f   :  { %1641 = vmatpush.msrb.mxu0 %v1618_v38  ;;  %v1572_v38 = vld [vmem:[#allocation22 + $0x10] sm:$0xff] }
 0x410   :  { %1663 = vmatpush.msrb.mxu1 %v1615_v54  ;;  %v1753_v54 = vld [vmem:[#allocation25 + $0xf8] sm:$0xff] }
 0x411   :  { %1642 = vmatpush.msrb.mxu0 %v1616_v53  ;;  %v1570_v53 = vld [vmem:[#allocation22] sm:$0xff]  ;;  %1778 = vmatpush.msrb.mxu3 %v1753_v54  ;;  %v1740_v54 = vld [vmem:[#allocation25 + $0x90] sm:$0xff] }
 0x412   :  { %1664 = vmatpush.msrb.mxu1 %v1613_v55  ;;  %v1752_v55 = vld [vmem:[#allocation25 + $0xf0] sm:$0xff] }
 0x413   :  { %1643 = vmatpush.msrb.mxu0 %v1614_v51  ;;  %v1737_v51 = vld [vmem:[#allocation25 + $0x78] sm:$0xff]  ;;  %1779 = vmatpush.msrb.mxu3 %v1752_v55  ;;  %v1739_v55 = vld [vmem:[#allocation25 + $0x88] sm:$0xff] }
 0x414   :  { %1527 = vperm.xlu1 %2043, %v1497_v40   ;;  %1665 = vmatpush.msrb.mxu1 %v1611_v57  ;;  %v1580_v40 = vld [vmem:[#allocation22 + $0x50] sm:$0xff] }
 0x415   :  { %1517 = vperm.xlu2 %2041, %v1495_v43   ;;  %1644 = vmatpush.msrb.mxu0 %v1612_v45  ;;  %v1581_v43 = vld [vmem:[#allocation22 + $0x58] sm:$0xff]  ;;  %v1736_v45 = vld [vmem:[#allocation25 + $0x70] sm:$0xff] }
 0x416   :  { %1666 = vmatpush.msrb.mxu1 %v1609_v59  ;;  %1758 = vmatpush.msrb.mxu2 %v1737_v51  ;;  %v1724_v51 = vld [vmem:[#allocation25 + $0x10] sm:$0xff] }
 0x417   :  { %1645 = vmatpush.msrb.mxu0 %v1610_v56 }
 0x418   :  { %1667 = vmatpush.msrb.mxu1 %v1607_v61  ;;  %1759 = vmatpush.msrb.mxu2 %v1736_v45  ;;  %v1723_v45 = vld [vmem:[#allocation25 + $0x8] sm:$0xff] }
 0x419   :  { %1646 = vmatpush.msrb.mxu0 %v1608_v58  ;;  %v1735_v58 = vld [vmem:[#allocation25 + $0x68] sm:$0xff] }
 0x41a   :  { %1668 = vmatpush.msrb.mxu1 %v1605_v63  ;;  %1760 = vmatpush.msrb.mxu2 %v1735_v58  ;;  %v1714_v58 = vld [vmem:[%s3392_s14] sm:$0x3]  ;;  %s2475_s14 = smov [#allocation27]  }
 0x41b   :  { %1647 = vmatpush.msrb.mxu0 %v1606_v60 }
 0x41c   :  { %1537 = vperm.xlu1 %2043, %v1499_v44   ;;  %1669 = vmatpush.msrb.mxu1 %v1603_v20  ;;  %v1578_v44 = vld [vmem:[#allocation22 + $0x40] sm:$0xff] }
 0x41d   :  { %1522 = vperm.xlu2 %2041, %v1496_v42   ;;  %1648 = vmatpush.msrb.mxu0 %v1604_v62  ;;  %v1579_v42 = vld [vmem:[#allocation22 + $0x48] sm:$0xff] }
 0x41e   :  { %1694 = vmatpush.msra.mxu1 %v1601_v9  ;;  %v1751_v62 = vld [vmem:[#allocation25 + $0xe8] sm:$0xff] }
 0x41f   :  { %1649 = vmatpush.msrb.mxu0 %v1602_v18  ;;  %v1734_v18 = vld [vmem:[#allocation25 + $0x60] sm:$0xff]  ;;  %1780 = vmatpush.msrb.mxu3 %v1751_v62 }
 0x420   :  { %1695 = vmatpush.msra.mxu1 %v1599_v19  ;;  %v1733_v19 = vld [vmem:[#allocation25 + $0x58] sm:$0xff]  ;;  %1761 = vmatpush.msrb.mxu2 %v1734_v18 }
 0x421   :  { %1674 = vmatpush.msra.mxu0 %v1600_v12 }
 0x422   :  { %1696 = vmatpush.msra.mxu1 %v1597_v13  ;;  %v1732_v13 = vld [vmem:[#allocation25 + $0x50] sm:$0xff]  ;;  %1762 = vmatpush.msrb.mxu2 %v1733_v19 }
 0x423   :  { %1675 = vmatpush.msra.mxu0 %v1598_v14  ;;  %v1750_v14 = vld [vmem:[#allocation25 + $0xe0] sm:$0xff] }
 0x424   :  { %1697 = vmatpush.msra.mxu1 %v1595_v3  ;;  %1781 = vmatpush.msrb.mxu3 %v1750_v14 }
 0x425   :  { %1532 = vperm.xlu2 %2041, %v1498_v41   ;;  %1676 = vmatpush.msra.mxu0 %v1596_v1  ;;  %v1576_v41 = vld [vmem:[#allocation22 + $0x30] sm:$0xff] }
 0x426   :  { %1698 = vmatpush.msra.mxu1 %v1593_v29  ;;  %v1731_v29 = vld [vmem:[#allocation25 + $0x48] sm:$0xff]  ;;  %1763 = vmatpush.msrb.mxu2 %v1732_v13 }
 0x427   :  { %1677 = vmatpush.msra.mxu0 %v1594_v5 }
 0x428   :  { %1699 = vmatpush.msra.mxu1 %v1591_v17  ;;  %1764 = vmatpush.msrb.mxu2 %v1731_v29 }
 0x429   :  { %1678 = vmatpush.msra.mxu0 %v1592_v21 }
 0x42a   :  { %1700 = vmatpush.msra.mxu1 %v1589_v0  ;;  %v1730_v0 = vld [vmem:[#allocation25 + $0x40] sm:$0xff] }
 0x42b   :  { %1679 = vmatpush.msra.mxu0 %v1590_v16  ;;  %1765 = vmatpush.msrb.mxu2 %v1730_v0 }
 0x42c   :  { %1701 = vmatpush.msra.mxu1 %v1587_v22  ;;  %v1729_v22 = vld [vmem:[#allocation25 + $0x38] sm:$0xff] }
 0x42d   :  { %1680 = vmatpush.msra.mxu0 %v1588_v6  ;;  %v1747_v6 = vld [vmem:[#allocation25 + $0xc8] sm:$0xff]  ;;  %1766 = vmatpush.msrb.mxu2 %v1729_v22 }
 0x42e   :  { %1702 = vmatpush.msra.mxu1 %v1585_v36  ;;  %v1745_v36 = vld [vmem:[#allocation25 + $0xb8] sm:$0xff] }
 0x42f   :  { %1681 = vmatpush.msra.mxu0 %v1586_v2 }
 0x430   :  { %1703 = vmatpush.msra.mxu1 %v1583_v39 }
 0x431   :  { %1682 = vmatpush.msra.mxu0 %v1584_v35 }
 0x432   :  { %1704 = vmatpush.msra.mxu1 %v1581_v43 }
 0x433   :  { %1683 = vmatpush.msra.mxu0 %v1582_v37  ;;  %v1728_v37 = vld [vmem:[#allocation25 + $0x30] sm:$0xff] }
 0x434   :  { %1705 = vmatpush.msra.mxu1 %v1579_v42  ;;  %1767 = vmatpush.msrb.mxu2 %v1728_v37 }
 0x435   :  { %1684 = vmatpush.msra.mxu0 %v1580_v40  ;;  %v1744_v40 = vld [vmem:[#allocation25 + $0xb0] sm:$0xff] }
 0x436   :  { %1706 = vmatpush.msra.mxu1 %v1577_v46 }
 0x437   :  { %1685 = vmatpush.msra.mxu0 %v1578_v44 }
 0x438   :  { %1707 = vmatpush.msra.mxu1 %v1575_v50  ;;  %v1726_v50 = vld [vmem:[#allocation25 + $0x20] sm:$0xff] }
 0x439   :  { %1686 = vmatpush.msra.mxu0 %v1576_v41 }
 0x43a   :  { %1708 = vmatpush.msra.mxu1 %v1573_v52  ;;  %v1741_v52 = vld [vmem:[#allocation25 + $0x98] sm:$0xff] }
 0x43b   :  { %1687 = vmatpush.msra.mxu0 %v1574_v49 }
 0x43c   :  { %1709 = vmatpush.msra.mxu1 %v1571_v48 }
 0x43d   :  { %1688 = vmatpush.msra.mxu0 %v1572_v38  ;;  %v1725_v38 = vld [vmem:[#allocation25 + $0x18] sm:$0xff] }
 0x43f   :  { %1689 = vmatpush.msra.mxu0 %v1570_v53 }
 0x467   :  { %v1503_v34 = vpop.permute.xlu2 %1502 }
 0x468   :  { %v1555_v59 = vmul.f32 %v1503_v34, %v3277_v4  ;;  %v1540_v20 = vmul.f32 %v1503_v34, %v3279_v15 }
 0x46f   :  { %v3349_v47 = vpop.permute.xlu2 %1517 }
 0x470   :  { %v1558_v4 = vmul.f32 %v3349_v47, %v3301_v28  ;;  %v1543_v2 = vmul.f32 %v3349_v47, %v3303_v10  ;;  %v1727_v10 = vld [vmem:[#allocation25 + $0x28] sm:$0xff] }
 0x471   :  { %v1743_v47 = vld [vmem:[#allocation25 + $0xa8] sm:$0xff]  ;;  %1768 = vmatpush.msrb.mxu2 %v1727_v10 }
 0x473   :  { %1769 = vmatpush.msrb.mxu2 %v1726_v50 }
 0x475   :  { %1770 = vmatpush.msrb.mxu2 %v1725_v38 }
 0x477   :  { %v1523_v63 = vpop.permute.xlu2 %1522  ;;  %1771 = vmatpush.msrb.mxu2 %v1724_v51 }
 0x478   :  { %v1559_v5 = vmul.f32 %v1523_v63, %v3307_v11  ;;  %v1746_v11 = vld [vmem:[#allocation25 + $0xc0] sm:$0xff] }
 0x479   :  { %1772 = vmatpush.msrb.mxu2 %v1723_v45 }
 0x47e   :  { %v1513_v56 = vpop.permute.xlu1 %1512  ;;  %v1508_v57 = vpop.permute.xlu0 %1507 }
 0x47f   :  { %v1541_v60 = vmul.f32 %v1508_v57, %v3291_v7  ;;  %v1556_v61 = vmul.f32 %v1508_v57, %v3289_v24  ;;  %v1557_v12 = vmul.f32 %v1513_v56, %v3295_v26  ;;  %v1749_v24 = vld [vmem:[#allocation25 + $0xd8] sm:$0xff]  ;;  %v1542_v15 = vmul.f32 %v1513_v56, %v3297_v27  ;;  %v1748_v26 = vld [vmem:[#allocation25 + $0xd0] sm:$0xff]  ;;  %v1533_v27 = vpop.permute.xlu2 %1532  ;;  %v1722_v56 = vld [vmem:[#allocation25] sm:$0xff] }
 0x480   :  { %1782 = vmatpush.msrb.mxu3 %v1749_v24  ;;  %v1561_v39 = vmul.f32 %v1533_v27, %v3319_v32  ;;  %v1738_v57 = vld [vmem:[#allocation25 + $0x80] sm:$0xff]  ;;  %1773 = vmatpush.msrb.mxu2 %v1722_v56 }
 0x481   :  { %v1563_v9 = vadd.f32 %v1556_v61, %v1555_v59  ;;  %v1548_v7 = vadd.f32 %v1541_v60, %v1540_v20  ;;  %v1716_v59 = vperm.slane %v1714_v58, 0  ;;  %v1717_v60 = vperm.slane %v1714_v58, 1 }
 0x482   :  { %1783 = vmatpush.msrb.mxu3 %v1748_v26 }
 0x483   :  { %v1564_v1 = vadd.f32 %v1563_v9, %v1557_v12  ;;  %v1549_v16 = vadd.f32 %v1548_v7, %v1542_v15  ;;  %v2047_v9 = vld [vmem:[%s3394_s16] ss:$0 sm:$0xff]  ;;  %s1826_s16 = sshll.u32 %s2475_s14, 4  ;;  %s1827_s16 = int_to_ptr.vmem [resolvable:$true] %s1826_s16 }
 0x484   :  { %1784 = vmatpush.msrb.mxu3 %v1747_v6 }
 0x485   :  { %v1565_v3 = vadd.f32 %v1564_v1, %v1558_v4  ;;  %v1550_v34 = vadd.f32 %v1549_v16, %v1543_v2 }
 0x486   :  { %v1528_v21 = vpop.permute.xlu1 %1527  ;;  %1785 = vmatpush.msrb.mxu3 %v1746_v11 }
 0x487   :  { %v1560_v17 = vmul.f32 %v1528_v21, %v3313_v30  ;;  %v1566_v28 = vadd.f32 %v1565_v3, %v1559_v5  ;;  %v1544_v30 = vmul.f32 %v1523_v63, %v3309_v8  ;;  %v1545_v44 = vmul.f32 %v1528_v21, %v3315_v31  ;;  %v1742_v8 = vld [vmem:[#allocation25 + $0xa0] sm:$0xff] }
 0x488   :  { %1786 = vmatpush.msrb.mxu3 %v1745_v36  ;;  %v1546_v31 = vmul.f32 %v1533_v27, %v3321_v33 }
 0x489   :  { %v1567_v35 = vadd.f32 %v1566_v28, %v1560_v17  ;;  %v1551_v42 = vadd.f32 %v1550_v34, %v1544_v30 }
 0x48a   :  { %1787 = vmatpush.msrb.mxu3 %v1744_v40 }
 0x48b   :  { %v1568_v46 = vadd.f32 %v1567_v35, %v1561_v39  ;;  %v1552_v32 = vadd.f32 %v1551_v42, %v1545_v44 }
 0x48c   :  { %1788 = vmatpush.msrb.mxu3 %v1743_v47 }
 0x48d   :  { %v1553_v53 = vadd.f32 %v1552_v32, %v1546_v31 }
 0x48e   :  { %v1538_v43 = vpop.permute.xlu1 %1537  ;;  %1789 = vmatpush.msrb.mxu3 %v1742_v8 }
 0x48f   :  { %v1562_v41 = vmul.f32 %v1538_v43, %v3281_v23  ;;  %v1547_v23 = vmul.f32 %v1538_v43, %v3283_v25 }
 0x490   :  { %1790 = vmatpush.msrb.mxu3 %v1741_v52 }
 0x491   :  { %v1569_v49 = vadd.f32 %v1568_v46, %v1562_v41  ;;  %v1554_v48 = vadd.f32 %v1553_v53, %v1547_v23 }
 0x492   :  { %1791 = vmatpush.msrb.mxu3 %v1740_v54 }
 0x493   :  { %1650 = vmatmul.f32.vlgmr.msrb.gmra.mxu0 %v1569_v49  ;;  %1670 = vmatmul.f32.vlgmr.msrb.gmra.mxu1 %v1569_v49 }
 0x494   :  { %1792 = vmatpush.msrb.mxu3 %v1739_v55 }
 0x496   :  { %1793 = vmatpush.msrb.mxu3 %v1738_v57 }
 0x49b   :  { %1690 = vmatmul.f32.vlgmr.msra.gmra.mxu0 %v1554_v48  ;;  %1710 = vmatmul.f32.vlgmr.msra.gmra.mxu1 %v1554_v48 }
 0x510   :  { %v1651_v33 = vpop.f32.mrf.mxu0  ;;  %v1671_v25 = vpop.f32.mrf.mxu1 }
 0x518   :  { %v1691_v61 = vpop.f32.mrf.mxu0  ;;  %v1711_v62 = vpop.f32.mrf.mxu1 }
 0x519   :  { %v1692_v63 = vadd.f32 %v1691_v61, %v1651_v33  ;;  %v1712_v18 = vadd.f32 %v1711_v62, %v1671_v25 }
 0x51b   :  { %v1720_v20 = vadd.f32 %v1716_v59, %v1692_v63  ;;  %v1721_v12 = vadd.f32 %v1717_v60, %v1712_v18 }
 0x51d   :  { %1774 = vmatmul.f32.vlgmr.msrb.gmra.mxu2 %v1720_v20  ;;  %1794 = vmatmul.f32.vlgmr.msrb.gmra.mxu3 %v1721_v12 }
 0x5a0   :  { %v1775_v14 = vpop.f32.mrf.mxu2  ;;  %v1795_v4 = vpop.f32.mrf.mxu3 }
 0x5a1   :  { %v1776_v19 = vadd.f32 %v2047_v9, %v1775_v14 }
 0x5a3   :  { %v1796_v7 = vadd.f32 %v1795_v4, %v1776_v19 }
 0x5a5   :  { %1798 = vmax.xlane.f32.xlu0 %v1796_v7 }
 0x618   :  { %v1799_v1 = vpop.xlane.xlu0 %1798 }
 0x619   :  { %v1800_v24 = vsub.f32 %v1796_v7, %v1799_v1 }
 0x61b   :  { %v1801_v13 = vmul.f32 1.442695, %v1800_v24 }
 0x61d   :  { %2082 = vpow2.f32 %v1801_v13 }
 0x623   :  { %v2083_v5 = vpop.eup %2082 }
 0x624   :  { %1803 = vadd.xlane.f32.xlu2 %v2083_v5 }
 0x697   :  { %v1804_v15 = vpop.xlane.xlu2 %1803 }
 0x698   :  { %2084 = vrcp.f32 %v1804_v15  ;;  %v1816_v29 = vand.u32 2147483648, %v1804_v15  ;;  %v1814_v17 = vand.u32 2147483647, %v1804_v15  ;;  %vm1810_vm15 = vweird.f32 %v1804_v15 }
 0x69a   :  { %v1817_v6 = vor.u32 1.1754944e-38, %v1816_v29  ;;  %vm1815_vm1 = vcmp.eq.f32.partialorder %v1814_v17, 8.507059e+37 }
 0x69e   :  { %v2085_v3 = vpop.eup %2084 }
 0x69f   :  { %v1806_v26 = vmul.f32 %v2085_v3, %v1804_v15  ;;  %vm1811_vm14 = vweird.f32 %v2085_v3 }
 0x6a0   :  { %vm1812_vm0 = vmor %vm1810_vm15, %vm1811_vm14 }
 0x6a1   :  { %v1807_v21 = vsub.f32 1.0, %v1806_v26 }
 0x6a3   :  { %v1808_v16 = vmul.f32 %v2085_v3, %v1807_v21 }
 0x6a5   :  { %v1809_v28 = vadd.f32 %v2085_v3, %v1808_v16 }
 0x6a7   :  { %v1813_v0 = vsel %vm1812_vm0, %v2085_v3, %v1809_v28 }
 0x6a8   :  { %v1818_v2 = vsel %vm1815_vm1, %v1817_v6, %v1813_v0 }
 0x6a9   :  { %v1819_v11 = vmul.f32 %v2083_v5, %v1818_v2 }
 0x6ab   :  { %1820 = vst [vmem:[#allocation27] sm:$0xff] %v1819_v11 }
 0x6ac   :  { %1831 = dma.vmem_to_hbm [thread:$0]  %s1827_s16, 128, %s1829_s25, [#allocation9]  }
 0x6ad   :  { %2432 = dma.done.wait [#allocation9], 128  }
 0x6ae   :  { %2433 = vsyncadd [#allocation9], 4294967168 }
 0x6af   :  { %1836 = vsyncpa [#allocation8], 1 }
 0x6b0   :  { %1837 = vsyncpa [#allocation11], 1 }
 0x6b1   :  { %1838 = vsyncpa [#allocation14], 1 }
 0x6b2   :  { %1839 = vsyncpa [#allocation17], 1 }
 0x6b3   :  { %1840 = vsyncpa [#allocation20], 1 }
 0x6b4   :  { %1841 = vsyncpa [#allocation23], 1 }
 0x6b5   :  { %1842 = vsyncpa [#allocation26], 1 }
 0x6b6   :  { %1843 = vsyncpa [#allocation9], 1 }

</bundles_post_ra>
